<compile_context>
chip_gen: v6e
topology: v6e:2x2x1
jax: 0.10.0
libtpu: 0.0.40
codegen_flags: <defaults>
</compile_context>

<pallas_src>
import jax
import jax.numpy as jnp
from jax.experimental import pallas as pl
from jax.experimental.pallas import tpu as pltpu


def _round_up(x, m):
    return (x + m - 1) // m * m


# ---------------------------------------------------------------------------
# Kernel 1/3: generic tiled matmul + bias (parallel grid) -- used for the
# hoisted input-gate matmul and for the deferred output projection.
# ---------------------------------------------------------------------------
def _matmul_bias_kernel(a_ref, b_ref, bias_ref, o_ref):
    o_ref[...] = (jnp.dot(a_ref[...], b_ref[...],
                          preferred_element_type=jnp.float32)
                  + bias_ref[...]).astype(o_ref.dtype)


def _matmul_bias(a, b, bias):
    """a: (M, K) f32, b: (K, N) f32, bias: (1, N) f32 -> (M, N) f32."""
    M, K = a.shape
    _, N = b.shape
    tm = 256 if M > 256 else _round_up(M, 8)
    tn = 512 if N > 512 else _round_up(N, 128)
    Mp = _round_up(M, tm)
    Np = _round_up(N, tn)
    if Mp != M:
        a = jnp.pad(a, ((0, Mp - M), (0, 0)))
    if Np != N:
        b = jnp.pad(b, ((0, 0), (0, Np - N)))
        bias = jnp.pad(bias, ((0, 0), (0, Np - N)))

    out = pl.pallas_call(
        _matmul_bias_kernel,
        out_shape=jax.ShapeDtypeStruct((Mp, Np), jnp.float32),
        grid=(Mp // tm, Np // tn),
        in_specs=[
            pl.BlockSpec((tm, K), lambda i, j: (i, 0)),
            pl.BlockSpec((K, tn), lambda i, j: (0, j)),
            pl.BlockSpec((1, tn), lambda i, j: (0, j)),
        ],
        out_specs=pl.BlockSpec((tm, tn), lambda i, j: (i, j)),
        compiler_params=pltpu.CompilerParams(
            dimension_semantics=("parallel", "parallel")),
    )(a, b, bias)
    return out[:M, :N]


# ---------------------------------------------------------------------------
# Kernel 2/3: the serial LSTM recurrence.  Single pallas_call invocation; the
# whole precomputed gates_x (T, Bp, 4*Hp) and W_hh^T (Hp, 4*Hp) are resident in
# VMEM; time is walked with an in-kernel fori_loop (no per-step grid/DMA cost).
# ---------------------------------------------------------------------------
def _lstm_recurrence_kernel(gx_ref, whh_ref, h_all_ref, h_scr, c_scr):
    T = gx_ref.shape[0]
    Hp = h_scr.shape[1]

    h_scr[...] = jnp.zeros_like(h_scr)
    c_scr[...] = jnp.zeros_like(c_scr)

    def step(t, carry):
        # gates_x[t] already contains x_t @ W_ih^T + (b_ih + b_hh)
        gates = gx_ref[t] + jnp.dot(h_scr[...], whh_ref[...],
                                    preferred_element_type=jnp.float32)
        # PyTorch gate order i, f, g, o; each slice is 128-lane aligned (Hp % 128 == 0).
        i_g = jax.nn.sigmoid(gates[:, 0 * Hp:1 * Hp])
        f_g = jax.nn.sigmoid(gates[:, 1 * Hp:2 * Hp])
        g_g = jnp.tanh(gates[:, 2 * Hp:3 * Hp])
        o_g = jax.nn.sigmoid(gates[:, 3 * Hp:4 * Hp])
        c_new = f_g * c_scr[...] + i_g * g_g
        h_new = o_g * jnp.tanh(c_new)
        c_scr[...] = c_new
        h_scr[...] = h_new
        h_all_ref[t] = h_new
        return carry

    jax.lax.fori_loop(0, T, step, 0, unroll=(T <= 16))


# ---------------------------------------------------------------------------
# Weight preparation: stack per-gate transposed weights into lane-aligned
# (K, 4*Hp) layout (zeros in the padded lanes of each gate block).
# ---------------------------------------------------------------------------
def _stack_gate_weights(w, H, Hp):
    """w: (4H, K) torch LSTM weight (i,f,g,o stacked) -> (K, 4*Hp), W^T per gate."""
    K = w.shape[1]
    w4 = w.astype(jnp.float32).reshape(4, H, K)       # (4, H, K)
    w4 = jnp.pad(w4, ((0, 0), (0, Hp - H), (0, 0)))   # (4, Hp, K)
    w4 = jnp.transpose(w4, (2, 0, 1))                 # (K, 4, Hp)
    return w4.reshape(K, 4 * Hp)


@jax.jit
def decoder_rnn_forward(features, captions, params):
    """Equivalent of DecoderRNN.forward.

    features : (B, E)  float32
    captions : (B, L)  int32
    returns  : (B, L, V) float32
    """
    embed_w = params["embed"]          # (V, E)
    w_ih = params["w_ih"]              # (4H, E)
    w_hh = params["w_hh"]              # (4H, H)
    b_ih = params["b_ih"]              # (4H,)
    b_hh = params["b_hh"]              # (4H,)
    w_out = params["w_out"]            # (V, H)
    b_out = params["b_out"]            # (V,)

    B, L = captions.shape
    E = embed_w.shape[1]
    H = w_hh.shape[1]
    V = w_out.shape[0]
    T = L                              # 1 feature step + (L-1) embedded tokens

    Bp = _round_up(B, 8)               # sublane padding
    Hp = _round_up(H, 128)             # lane-aligned gate blocks
    Vp = _round_up(V, 128)             # lane-dense logits

    # ---- XLA glue: embedding gather + prepend image features, time-major, pad B ----
    emb = jnp.take(embed_w, captions[:, :-1], axis=0)            # (B, L-1, E)
    x = jnp.concatenate([features[:, None, :], emb], axis=1)     # (B, T, E)
    x_tm = jnp.transpose(x.astype(jnp.float32), (1, 0, 2))       # (T, B, E)
    x_tm = jnp.pad(x_tm, ((0, 0), (0, Bp - B), (0, 0)))          # (T, Bp, E)
    x_flat = x_tm.reshape(T * Bp, E)

    # ---- padded / lane-aligned weights ----
    wih_p = _stack_gate_weights(w_ih, H, Hp)                               # (E, 4Hp)
    whh_p = jnp.pad(_stack_gate_weights(w_hh, H, Hp), ((0, Hp - H), (0, 0)))  # (Hp, 4Hp)
    bias = (b_ih + b_hh).astype(jnp.float32).reshape(4, H)
    bias_p = jnp.pad(bias, ((0, 0), (0, Hp - H))).reshape(1, 4 * Hp)       # (1, 4Hp)
    wout_p = jnp.pad(jnp.transpose(w_out).astype(jnp.float32),
                     ((0, Hp - H), (0, Vp - V)))                           # (Hp, Vp)
    bout_p = jnp.pad(b_out.astype(jnp.float32), (0, Vp - V))[None, :]      # (1, Vp)

    # ---- 1) hoisted input-gate matmul for all timesteps (parallel Pallas matmul) ----
    gx = _matmul_bias(x_flat, wih_p, bias_p).reshape(T, Bp, 4 * Hp)

    # ---- 2) serial recurrence: one pallas_call, fori_loop over time inside ----
    h_all = pl.pallas_call(
        _lstm_recurrence_kernel,
        out_shape=jax.ShapeDtypeStruct((T, Bp, Hp), jnp.float32),
        in_specs=[
            pl.BlockSpec(memory_space=pltpu.MemorySpace.VMEM),
            pl.BlockSpec(memory_space=pltpu.MemorySpace.VMEM),
        ],
        out_specs=pl.BlockSpec(memory_space=pltpu.MemorySpace.VMEM),
        scratch_shapes=[
            pltpu.VMEM((Bp, Hp), jnp.float32),   # h state
            pltpu.VMEM((Bp, Hp), jnp.float32),   # c state
        ],
    )(gx, whh_p)

    # ---- 3) deferred output projection over all (T*Bp) rows, batch-major output ----
    # Transpose the small hidden tensor (not the large logits tensor) to batch-major.
    h_bm = jnp.transpose(h_all, (1, 0, 2)).reshape(Bp * T, Hp)   # (Bp*T, Hp)
    logits = _matmul_bias(h_bm, wout_p, bout_p).reshape(Bp, T, Vp)

    return logits[:B, :, :V]                                     # (B, T, V)


# ---------------------------------------------------------------------------
# Pure-JAX reference (same math as torch: embed -> LSTM -> linear).
# ---------------------------------------------------------------------------
def _reference_forward(features, captions, params):
    embed_w = params["embed"]
    emb = jnp.take(embed_w, captions[:, :-1], axis=0)
    x = jnp.concatenate([features[:, None, :], emb], axis=1)     # (B, T, E)
    B = x.shape[0]
    H = params["w_hh"].shape[1]
    wih_t = params["w_ih"].T
    whh_t = params["w_hh"].T
    bias = params["b_ih"] + params["b_hh"]

    def step(carry, x_t):
        h, c = carry
        gates = x_t @ wih_t + h @ whh_t + bias
        i = jax.nn.sigmoid(gates[:, 0 * H:1 * H])
        f = jax.nn.sigmoid(gates[:, 1 * H:2 * H])
        g = jnp.tanh(gates[:, 2 * H:3 * H])
        o = jax.nn.sigmoid(gates[:, 3 * H:4 * H])
        c = f * c + i * g
        h = o * jnp.tanh(c)
        return (h, c), h

    init = (jnp.zeros((B, H), jnp.float32), jnp.zeros((B, H), jnp.float32))
    _, hiddens = jax.lax.scan(step, init, jnp.transpose(x, (1, 0, 2)))
    hiddens = jnp.transpose(hiddens, (1, 0, 2))                  # (B, T, H)
    return hiddens @ params["w_out"].T + params["b_out"]


def init_params(key, embed_size, hidden_size, vocab_size):
    ks = jax.random.split(key, 7)
    s = 0.1
    return {
        "embed": jax.random.normal(ks[0], (vocab_size, embed_size), jnp.float32) * s,
        "w_ih": jax.random.normal(ks[1], (4 * hidden_size, embed_size), jnp.float32) * s,
        "w_hh": jax.random.normal(ks[2], (4 * hidden_size, hidden_size), jnp.float32) * s,
        "b_ih": jax.random.normal(ks[3], (4 * hidden_size,), jnp.float32) * s,
        "b_hh": jax.random.normal(ks[4], (4 * hidden_size,), jnp.float32) * s,
        "w_out": jax.random.normal(ks[5], (vocab_size, hidden_size), jnp.float32) * s,
        "b_out": jax.random.normal(ks[6], (vocab_size,), jnp.float32) * s,
    }


if __name__ == "__main__":
    embed_size, hidden_size, vocab_size = 32, 32, 64
    batch, cap_len = 2, 9          # -> T = 9 (1 feature step + 8 embedded tokens)

    key = jax.random.PRNGKey(0)
    k_par, k_feat, k_cap = jax.random.split(key, 3)
    params = init_params(k_par, embed_size, hidden_size, vocab_size)

    features = jax.random.normal(k_feat, (batch, embed_size), jnp.float32)
    captions = jax.random.randint(k_cap, (batch, cap_len), 0, vocab_size, jnp.int32)

    out = decoder_rnn_forward(features, captions, params)
    out = jax.block_until_ready(out)

    ref = _reference_forward(features, captions, params)
    assert out.shape == (batch, cap_len, vocab_size), out.shape
    assert jnp.allclose(out, ref, atol=1e-4, rtol=1e-4), "mismatch vs reference"

    # TODO(synk): beam_search is a host-side search loop (sorting/topk over Python
    # lists of candidates) and is not implemented as a kernel.
    print("KERNEL_OK")
</pallas_src>

<mosaic_0001>
module attributes {stable_mosaic.version = 11 : i64} {
  func.func @_matmul_bias_kernel(%arg0: i32, %arg1: i32, %arg2: memref<72x32xf32, #tpu.memory_space<vmem>>, %arg3: memref<32x512xf32, #tpu.memory_space<vmem>>, %arg4: memref<1x512xf32, #tpu.memory_space<vmem>>, %arg5: memref<72x512xf32, #tpu.memory_space<vmem>>) attributes {dimension_semantics = [#tpu.dimension_semantics<parallel>, #tpu.dimension_semantics<parallel>], iteration_bounds = array<i64: 1, 1>, scalar_prefetch = 0 : i64, scratch_operands = 0 : i64, tpu.core_type = #tpu.core_type<tc>, window_params = [{transform_indices = @transform_0, window_bounds = array<i64: 72, 32>}, {transform_indices = @transform_1, window_bounds = array<i64: 32, 512>}, {transform_indices = @transform_2, window_bounds = array<i64: 1, 512>}, {transform_indices = @transform_3, window_bounds = array<i64: 72, 512>}]} {
    %c0 = arith.constant 0 : index
    %c0_0 = arith.constant 0 : index
    %0 = vector.load %arg2[%c0, %c0_0] : memref<72x32xf32, #tpu.memory_space<vmem>>, vector<72x32xf32>
    %c0_1 = arith.constant 0 : index
    %c0_2 = arith.constant 0 : index
    %1 = vector.load %arg3[%c0_1, %c0_2] : memref<32x512xf32, #tpu.memory_space<vmem>>, vector<32x512xf32>
    %cst = arith.constant dense<0.000000e+00> : vector<72x512xf32>
    %2 = tpu.matmul %0, %1, %cst {dimension_numbers = #tpu.dot_dimension_numbers<[1], [0], [0], [1], [0, 0, 1, 1], [], []>} : vector<72x32xf32>, vector<32x512xf32>, vector<72x512xf32> -> vector<72x512xf32>
    %c0_3 = arith.constant 0 : index
    %c0_4 = arith.constant 0 : index
    %3 = vector.load %arg4[%c0_3, %c0_4] : memref<1x512xf32, #tpu.memory_space<vmem>>, vector<1x512xf32>
    %4 = vector.broadcast %3 : vector<1x512xf32> to vector<72x512xf32>
    %5 = arith.addf %2, %4 : vector<72x512xf32>
    %c0_5 = arith.constant 0 : index
    %c0_6 = arith.constant 0 : index
    %6 = vector.load %arg5[%c0_5, %c0_6] : memref<72x512xf32, #tpu.memory_space<vmem>>, vector<72x512xf32>
    tpu.vector_store %arg5[%c0_5, %c0_6], %5 {strides = array<i32>} : memref<72x512xf32, #tpu.memory_space<vmem>>, vector<72x512xf32>,
    return
  }
  func.func @transform_0(%arg0: i32, %arg1: i32) -> (i32, i32) {
    %c0_i32 = arith.constant 0 : i32
    %c0_i32_0 = arith.constant 0 : i32
    return %arg0, %c0_i32 : i32, i32
  }
  func.func @transform_1(%arg0: i32, %arg1: i32) -> (i32, i32) {
    %c0_i32 = arith.constant 0 : i32
    %c0_i32_0 = arith.constant 0 : i32
    return %c0_i32, %arg1 : i32, i32
  }
  func.func @transform_2(%arg0: i32, %arg1: i32) -> (i32, i32) {
    %c0_i32 = arith.constant 0 : i32
    %c0_i32_0 = arith.constant 0 : i32
    return %c0_i32, %arg1 : i32, i32
  }
  func.func @transform_3(%arg0: i32, %arg1: i32) -> (i32, i32) {
    %c0_i32 = arith.constant 0 : i32
    return %arg0, %arg1 : i32, i32
  }
}

module attributes {stable_mosaic.version = 11 : i64} {
  func.func @_matmul_bias_kernel(%arg0: i32, %arg1: i32, %arg2: memref<72x128xf32, #tpu.memory_space<vmem>>, %arg3: memref<128x128xf32, #tpu.memory_space<vmem>>, %arg4: memref<1x128xf32, #tpu.memory_space<vmem>>, %arg5: memref<72x128xf32, #tpu.memory_space<vmem>>) attributes {dimension_semantics = [#tpu.dimension_semantics<parallel>, #tpu.dimension_semantics<parallel>], iteration_bounds = array<i64: 1, 1>, scalar_prefetch = 0 : i64, scratch_operands = 0 : i64, tpu.core_type = #tpu.core_type<tc>, window_params = [{transform_indices = @transform_0, window_bounds = array<i64: 72, 128>}, {transform_indices = @transform_1, window_bounds = array<i64: 128, 128>}, {transform_indices = @transform_2, window_bounds = array<i64: 1, 128>}, {transform_indices = @transform_3, window_bounds = array<i64: 72, 128>}]} {
    %c0 = arith.constant 0 : index
    %c0_0 = arith.constant 0 : index
    %0 = vector.load %arg2[%c0, %c0_0] : memref<72x128xf32, #tpu.memory_space<vmem>>, vector<72x128xf32>
    %c0_1 = arith.constant 0 : index
    %c0_2 = arith.constant 0 : index
    %1 = vector.load %arg3[%c0_1, %c0_2] : memref<128x128xf32, #tpu.memory_space<vmem>>, vector<128x128xf32>
    %cst = arith.constant dense<0.000000e+00> : vector<72x128xf32>
    %2 = tpu.matmul %0, %1, %cst {dimension_numbers = #tpu.dot_dimension_numbers<[1], [0], [0], [1], [0, 0, 1, 1], [], []>} : vector<72x128xf32>, vector<128x128xf32>, vector<72x128xf32> -> vector<72x128xf32>
    %c0_3 = arith.constant 0 : index
    %c0_4 = arith.constant 0 : index
    %3 = vector.load %arg4[%c0_3, %c0_4] : memref<1x128xf32, #tpu.memory_space<vmem>>, vector<1x128xf32>
    %4 = vector.broadcast %3 : vector<1x128xf32> to vector<72x128xf32>
    %5 = arith.addf %2, %4 : vector<72x128xf32>
    %c0_5 = arith.constant 0 : index
    %c0_6 = arith.constant 0 : index
    %6 = vector.load %arg5[%c0_5, %c0_6] : memref<72x128xf32, #tpu.memory_space<vmem>>, vector<72x128xf32>
    tpu.vector_store %arg5[%c0_5, %c0_6], %5 {strides = array<i32>} : memref<72x128xf32, #tpu.memory_space<vmem>>, vector<72x128xf32>,
    return
  }
  func.func @transform_0(%arg0: i32, %arg1: i32) -> (i32, i32) {
    %c0_i32 = arith.constant 0 : i32
    %c0_i32_0 = arith.constant 0 : i32
    return %arg0, %c0_i32 : i32, i32
  }
  func.func @transform_1(%arg0: i32, %arg1: i32) -> (i32, i32) {
    %c0_i32 = arith.constant 0 : i32
    %c0_i32_0 = arith.constant 0 : i32
    return %c0_i32, %arg1 : i32, i32
  }
  func.func @transform_2(%arg0: i32, %arg1: i32) -> (i32, i32) {
    %c0_i32 = arith.constant 0 : i32
    %c0_i32_0 = arith.constant 0 : i32
    return %c0_i32, %arg1 : i32, i32
  }
  func.func @transform_3(%arg0: i32, %arg1: i32) -> (i32, i32) {
    %c0_i32 = arith.constant 0 : i32
    return %arg0, %arg1 : i32, i32
  }
}

module attributes {stable_mosaic.version = 11 : i64} {
  func.func @_lstm_recurrence_kernel(%arg0: memref<9x8x512xf32, #tpu.memory_space<vmem>>, %arg1: memref<128x512xf32, #tpu.memory_space<vmem>>, %arg2: memref<9x8x128xf32, #tpu.memory_space<vmem>>, %arg3: memref<8x128xf32, #tpu.memory_space<vmem>>, %arg4: memref<8x128xf32, #tpu.memory_space<vmem>>) attributes {dimension_semantics = [], scalar_prefetch = 0 : i64, scratch_operands = 2 : i64, tpu.core_type = #tpu.core_type<tc>} {
    %cst = arith.constant 0.000000e+00 : f32
    %0 = vector.broadcast %cst : f32 to vector<8x128xf32>
    %c0 = arith.constant 0 : index
    %c0_0 = arith.constant 0 : index
    %1 = vector.load %arg3[%c0, %c0_0] : memref<8x128xf32, #tpu.memory_space<vmem>>, vector<8x128xf32>
    tpu.vector_store %arg3[%c0, %c0_0], %0 {strides = array<i32>} : memref<8x128xf32, #tpu.memory_space<vmem>>, vector<8x128xf32>,
    %cst_1 = arith.constant 0.000000e+00 : f32
    %2 = vector.broadcast %cst_1 : f32 to vector<8x128xf32>
    %c0_2 = arith.constant 0 : index
    %c0_3 = arith.constant 0 : index
    %3 = vector.load %arg4[%c0_2, %c0_3] : memref<8x128xf32, #tpu.memory_space<vmem>>, vector<8x128xf32>
    tpu.vector_store %arg4[%c0_2, %c0_3], %2 {strides = array<i32>} : memref<8x128xf32, #tpu.memory_space<vmem>>, vector<8x128xf32>,
    %c0_i32 = arith.constant 0 : i32
    %4 = arith.index_cast %c0_i32 : i32 to index
    %c0_4 = arith.constant 0 : index
    %c0_5 = arith.constant 0 : index
    %5 = vector.load %arg0[%4, %c0_4, %c0_5] : memref<9x8x512xf32, #tpu.memory_space<vmem>>, vector<1x8x512xf32>
    %6 = vector.shape_cast %5 : vector<1x8x512xf32> to vector<8x512xf32>
    %c0_6 = arith.constant 0 : index
    %c0_7 = arith.constant 0 : index
    %7 = vector.load %arg3[%c0_6, %c0_7] : memref<8x128xf32, #tpu.memory_space<vmem>>, vector<8x128xf32>
    %c0_8 = arith.constant 0 : index
    %c0_9 = arith.constant 0 : index
    %8 = vector.load %arg1[%c0_8, %c0_9] : memref<128x512xf32, #tpu.memory_space<vmem>>, vector<128x512xf32>
    %cst_10 = arith.constant dense<0.000000e+00> : vector<8x512xf32>
    %9 = tpu.matmul %7, %8, %cst_10 {dimension_numbers = #tpu.dot_dimension_numbers<[1], [0], [0], [1], [0, 0, 1, 1], [], []>} : vector<8x128xf32>, vector<128x512xf32>, vector<8x512xf32> -> vector<8x512xf32>
    %10 = arith.addf %6, %9 : vector<8x512xf32>
    %11 = vector.extract_strided_slice %10 {offsets = [0, 0], sizes = [8, 128], strides = [1, 1]} : vector<8x512xf32> to vector<8x128xf32>
    %12 = arith.negf %11 : vector<8x128xf32>
    %13 = math.exp %12 : vector<8x128xf32>
    %cst_11 = arith.constant 1.000000e+00 : f32
    %14 = vector.broadcast %cst_11 : f32 to vector<8x128xf32>
    %15 = arith.addf %14, %13 : vector<8x128xf32>
    %16 = arith.divf %14, %15 : vector<8x128xf32>
    %17 = vector.extract_strided_slice %10 {offsets = [0, 128], sizes = [8, 128], strides = [1, 1]} : vector<8x512xf32> to vector<8x128xf32>
    %18 = arith.negf %17 : vector<8x128xf32>
    %19 = math.exp %18 : vector<8x128xf32>
    %cst_12 = arith.constant 1.000000e+00 : f32
    %20 = vector.broadcast %cst_12 : f32 to vector<8x128xf32>
    %21 = arith.addf %20, %19 : vector<8x128xf32>
    %22 = arith.divf %20, %21 : vector<8x128xf32>
    %23 = vector.extract_strided_slice %10 {offsets = [0, 256], sizes = [8, 128], strides = [1, 1]} : vector<8x512xf32> to vector<8x128xf32>
    %24 = math.tanh %23 : vector<8x128xf32>
    %25 = vector.extract_strided_slice %10 {offsets = [0, 384], sizes = [8, 128], strides = [1, 1]} : vector<8x512xf32> to vector<8x128xf32>
    %26 = arith.negf %25 : vector<8x128xf32>
    %27 = math.exp %26 : vector<8x128xf32>
    %cst_13 = arith.constant 1.000000e+00 : f32
    %28 = vector.broadcast %cst_13 : f32 to vector<8x128xf32>
    %29 = arith.addf %28, %27 : vector<8x128xf32>
    %30 = arith.divf %28, %29 : vector<8x128xf32>
    %c0_14 = arith.constant 0 : index
    %c0_15 = arith.constant 0 : index
    %31 = vector.load %arg4[%c0_14, %c0_15] : memref<8x128xf32, #tpu.memory_space<vmem>>, vector<8x128xf32>
    %32 = arith.mulf %22, %31 : vector<8x128xf32>
    %33 = arith.mulf %16, %24 : vector<8x128xf32>
    %34 = arith.addf %32, %33 : vector<8x128xf32>
    %35 = math.tanh %34 : vector<8x128xf32>
    %36 = arith.mulf %30, %35 : vector<8x128xf32>
    %c0_16 = arith.constant 0 : index
    %c0_17 = arith.constant 0 : index
    %37 = vector.load %arg4[%c0_16, %c0_17] : memref<8x128xf32, #tpu.memory_space<vmem>>, vector<8x128xf32>
    tpu.vector_store %arg4[%c0_16, %c0_17], %34 {strides = array<i32>} : memref<8x128xf32, #tpu.memory_space<vmem>>, vector<8x128xf32>,
    %c0_18 = arith.constant 0 : index
    %c0_19 = arith.constant 0 : index
    %38 = vector.load %arg3[%c0_18, %c0_19] : memref<8x128xf32, #tpu.memory_space<vmem>>, vector<8x128xf32>
    tpu.vector_store %arg3[%c0_18, %c0_19], %36 {strides = array<i32>} : memref<8x128xf32, #tpu.memory_space<vmem>>, vector<8x128xf32>,
    %39 = arith.index_cast %c0_i32 : i32 to index
    %c0_20 = arith.constant 0 : index
    %c0_21 = arith.constant 0 : index
    %40 = vector.load %arg2[%39, %c0_20, %c0_21] : memref<9x8x128xf32, #tpu.memory_space<vmem>>, vector<1x8x128xf32>
    %41 = vector.shape_cast %40 : vector<1x8x128xf32> to vector<8x128xf32>
    %42 = vector.shape_cast %36 : vector<8x128xf32> to vector<1x8x128xf32>
    tpu.vector_store %arg2[%39, %c0_20, %c0_21], %42 {strides = array<i32>} : memref<9x8x128xf32, #tpu.memory_space<vmem>>, vector<1x8x128xf32>,
    %c1_i32 = arith.constant 1 : i32
    %43 = arith.index_cast %c1_i32 : i32 to index
    %c0_22 = arith.constant 0 : index
    %c0_23 = arith.constant 0 : index
    %44 = vector.load %arg0[%43, %c0_22, %c0_23] : memref<9x8x512xf32, #tpu.memory_space<vmem>>, vector<1x8x512xf32>
    %45 = vector.shape_cast %44 : vector<1x8x512xf32> to vector<8x512xf32>
    %c0_24 = arith.constant 0 : index
    %c0_25 = arith.constant 0 : index
    %46 = vector.load %arg3[%c0_24, %c0_25] : memref<8x128xf32, #tpu.memory_space<vmem>>, vector<8x128xf32>
    %c0_26 = arith.constant 0 : index
    %c0_27 = arith.constant 0 : index
    %47 = vector.load %arg1[%c0_26, %c0_27] : memref<128x512xf32, #tpu.memory_space<vmem>>, vector<128x512xf32>
    %cst_28 = arith.constant dense<0.000000e+00> : vector<8x512xf32>
    %48 = tpu.matmul %46, %47, %cst_28 {dimension_numbers = #tpu.dot_dimension_numbers<[1], [0], [0], [1], [0, 0, 1, 1], [], []>} : vector<8x128xf32>, vector<128x512xf32>, vector<8x512xf32> -> vector<8x512xf32>
    %49 = arith.addf %45, %48 : vector<8x512xf32>
    %50 = vector.extract_strided_slice %49 {offsets = [0, 0], sizes = [8, 128], strides = [1, 1]} : vector<8x512xf32> to vector<8x128xf32>
    %51 = arith.negf %50 : vector<8x128xf32>
    %52 = math.exp %51 : vector<8x128xf32>
    %cst_29 = arith.constant 1.000000e+00 : f32
    %53 = vector.broadcast %cst_29 : f32 to vector<8x128xf32>
    %54 = arith.addf %53, %52 : vector<8x128xf32>
    %55 = arith.divf %53, %54 : vector<8x128xf32>
    %56 = vector.extract_strided_slice %49 {offsets = [0, 128], sizes = [8, 128], strides = [1, 1]} : vector<8x512xf32> to vector<8x128xf32>
    %57 = arith.negf %56 : vector<8x128xf32>
    %58 = math.exp %57 : vector<8x128xf32>
    %cst_30 = arith.constant 1.000000e+00 : f32
    %59 = vector.broadcast %cst_30 : f32 to vector<8x128xf32>
    %60 = arith.addf %59, %58 : vector<8x128xf32>
    %61 = arith.divf %59, %60 : vector<8x128xf32>
    %62 = vector.extract_strided_slice %49 {offsets = [0, 256], sizes = [8, 128], strides = [1, 1]} : vector<8x512xf32> to vector<8x128xf32>
    %63 = math.tanh %62 : vector<8x128xf32>
    %64 = vector.extract_strided_slice %49 {offsets = [0, 384], sizes = [8, 128], strides = [1, 1]} : vector<8x512xf32> to vector<8x128xf32>
    %65 = arith.negf %64 : vector<8x128xf32>
    %66 = math.exp %65 : vector<8x128xf32>
    %cst_31 = arith.constant 1.000000e+00 : f32
    %67 = vector.broadcast %cst_31 : f32 to vector<8x128xf32>
    %68 = arith.addf %67, %66 : vector<8x128xf32>
    %69 = arith.divf %67, %68 : vector<8x128xf32>
    %c0_32 = arith.constant 0 : index
    %c0_33 = arith.constant 0 : index
    %70 = vector.load %arg4[%c0_32, %c0_33] : memref<8x128xf32, #tpu.memory_space<vmem>>, vector<8x128xf32>
    %71 = arith.mulf %61, %70 : vector<8x128xf32>
    %72 = arith.mulf %55, %63 : vector<8x128xf32>
    %73 = arith.addf %71, %72 : vector<8x128xf32>
    %74 = math.tanh %73 : vector<8x128xf32>
    %75 = arith.mulf %69, %74 : vector<8x128xf32>
    %c0_34 = arith.constant 0 : index
    %c0_35 = arith.constant 0 : index
    %76 = vector.load %arg4[%c0_34, %c0_35] : memref<8x128xf32, #tpu.memory_space<vmem>>, vector<8x128xf32>
    tpu.vector_store %arg4[%c0_34, %c0_35], %73 {strides = array<i32>} : memref<8x128xf32, #tpu.memory_space<vmem>>, vector<8x128xf32>,
    %c0_36 = arith.constant 0 : index
    %c0_37 = arith.constant 0 : index
    %77 = vector.load %arg3[%c0_36, %c0_37] : memref<8x128xf32, #tpu.memory_space<vmem>>, vector<8x128xf32>
    tpu.vector_store %arg3[%c0_36, %c0_37], %75 {strides = array<i32>} : memref<8x128xf32, #tpu.memory_space<vmem>>, vector<8x128xf32>,
    %78 = arith.index_cast %c1_i32 : i32 to index
    %c0_38 = arith.constant 0 : index
    %c0_39 = arith.constant 0 : index
    %79 = vector.load %arg2[%78, %c0_38, %c0_39] : memref<9x8x128xf32, #tpu.memory_space<vmem>>, vector<1x8x128xf32>
    %80 = vector.shape_cast %79 : vector<1x8x128xf32> to vector<8x128xf32>
    %81 = vector.shape_cast %75 : vector<8x128xf32> to vector<1x8x128xf32>
    tpu.vector_store %arg2[%78, %c0_38, %c0_39], %81 {strides = array<i32>} : memref<9x8x128xf32, #tpu.memory_space<vmem>>, vector<1x8x128xf32>,
    %c2_i32 = arith.constant 2 : i32
    %82 = arith.index_cast %c2_i32 : i32 to index
    %c0_40 = arith.constant 0 : index
    %c0_41 = arith.constant 0 : index
    %83 = vector.load %arg0[%82, %c0_40, %c0_41] : memref<9x8x512xf32, #tpu.memory_space<vmem>>, vector<1x8x512xf32>
    %84 = vector.shape_cast %83 : vector<1x8x512xf32> to vector<8x512xf32>
    %c0_42 = arith.constant 0 : index
    %c0_43 = arith.constant 0 : index
    %85 = vector.load %arg3[%c0_42, %c0_43] : memref<8x128xf32, #tpu.memory_space<vmem>>, vector<8x128xf32>
    %c0_44 = arith.constant 0 : index
    %c0_45 = arith.constant 0 : index
    %86 = vector.load %arg1[%c0_44, %c0_45] : memref<128x512xf32, #tpu.memory_space<vmem>>, vector<128x512xf32>
    %cst_46 = arith.constant dense<0.000000e+00> : vector<8x512xf32>
    %87 = tpu.matmul %85, %86, %cst_46 {dimension_numbers = #tpu.dot_dimension_numbers<[1], [0], [0], [1], [0, 0, 1, 1], [], []>} : vector<8x128xf32>, vector<128x512xf32>, vector<8x512xf32> -> vector<8x512xf32>
    %88 = arith.addf %84, %87 : vector<8x512xf32>
    %89 = vector.extract_strided_slice %88 {offsets = [0, 0], sizes = [8, 128], strides = [1, 1]} : vector<8x512xf32> to vector<8x128xf32>
    %90 = arith.negf %89 : vector<8x128xf32>
    %91 = math.exp %90 : vector<8x128xf32>
    %cst_47 = arith.constant 1.000000e+00 : f32
    %92 = vector.broadcast %cst_47 : f32 to vector<8x128xf32>
    %93 = arith.addf %92, %91 : vector<8x128xf32>
    %94 = arith.divf %92, %93 : vector<8x128xf32>
    %95 = vector.extract_strided_slice %88 {offsets = [0, 128], sizes = [8, 128], strides = [1, 1]} : vector<8x512xf32> to vector<8x128xf32>
    %96 = arith.negf %95 : vector<8x128xf32>
    %97 = math.exp %96 : vector<8x128xf32>
    %cst_48 = arith.constant 1.000000e+00 : f32
    %98 = vector.broadcast %cst_48 : f32 to vector<8x128xf32>
    %99 = arith.addf %98, %97 : vector<8x128xf32>
    %100 = arith.divf %98, %99 : vector<8x128xf32>
    %101 = vector.extract_strided_slice %88 {offsets = [0, 256], sizes = [8, 128], strides = [1, 1]} : vector<8x512xf32> to vector<8x128xf32>
    %102 = math.tanh %101 : vector<8x128xf32>
    %103 = vector.extract_strided_slice %88 {offsets = [0, 384], sizes = [8, 128], strides = [1, 1]} : vector<8x512xf32> to vector<8x128xf32>
    %104 = arith.negf %103 : vector<8x128xf32>
    %105 = math.exp %104 : vector<8x128xf32>
    %cst_49 = arith.constant 1.000000e+00 : f32
    %106 = vector.broadcast %cst_49 : f32 to vector<8x128xf32>
    %107 = arith.addf %106, %105 : vector<8x128xf32>
    %108 = arith.divf %106, %107 : vector<8x128xf32>
    %c0_50 = arith.constant 0 : index
    %c0_51 = arith.constant 0 : index
    %109 = vector.load %arg4[%c0_50, %c0_51] : memref<8x128xf32, #tpu.memory_space<vmem>>, vector<8x128xf32>
    %110 = arith.mulf %100, %109 : vector<8x128xf32>
    %111 = arith.mulf %94, %102 : vector<8x128xf32>
    %112 = arith.addf %110, %111 : vector<8x128xf32>
    %113 = math.tanh %112 : vector<8x128xf32>
    %114 = arith.mulf %108, %113 : vector<8x128xf32>
    %c0_52 = arith.constant 0 : index
    %c0_53 = arith.constant 0 : index
    %115 = vector.load %arg4[%c0_52, %c0_53] : memref<8x128xf32, #tpu.memory_space<vmem>>, vector<8x128xf32>
    tpu.vector_store %arg4[%c0_52, %c0_53], %112 {strides = array<i32>} : memref<8x128xf32, #tpu.memory_space<vmem>>, vector<8x128xf32>,
    %c0_54 = arith.constant 0 : index
    %c0_55 = arith.constant 0 : index
    %116 = vector.load %arg3[%c0_54, %c0_55] : memref<8x128xf32, #tpu.memory_space<vmem>>, vector<8x128xf32>
    tpu.vector_store %arg3[%c0_54, %c0_55], %114 {strides = array<i32>} : memref<8x128xf32, #tpu.memory_space<vmem>>, vector<8x128xf32>,
    %117 = arith.index_cast %c2_i32 : i32 to index
    %c0_56 = arith.constant 0 : index
    %c0_57 = arith.constant 0 : index
    %118 = vector.load %arg2[%117, %c0_56, %c0_57] : memref<9x8x128xf32, #tpu.memory_space<vmem>>, vector<1x8x128xf32>
    %119 = vector.shape_cast %118 : vector<1x8x128xf32> to vector<8x128xf32>
    %120 = vector.shape_cast %114 : vector<8x128xf32> to vector<1x8x128xf32>
    tpu.vector_store %arg2[%117, %c0_56, %c0_57], %120 {strides = array<i32>} : memref<9x8x128xf32, #tpu.memory_space<vmem>>, vector<1x8x128xf32>,
    %c3_i32 = arith.constant 3 : i32
    %121 = arith.index_cast %c3_i32 : i32 to index
    %c0_58 = arith.constant 0 : index
    %c0_59 = arith.constant 0 : index
    %122 = vector.load %arg0[%121, %c0_58, %c0_59] : memref<9x8x512xf32, #tpu.memory_space<vmem>>, vector<1x8x512xf32>
    %123 = vector.shape_cast %122 : vector<1x8x512xf32> to vector<8x512xf32>
    %c0_60 = arith.constant 0 : index
    %c0_61 = arith.constant 0 : index
    %124 = vector.load %arg3[%c0_60, %c0_61] : memref<8x128xf32, #tpu.memory_space<vmem>>, vector<8x128xf32>
    %c0_62 = arith.constant 0 : index
    %c0_63 = arith.constant 0 : index
    %125 = vector.load %arg1[%c0_62, %c0_63] : memref<128x512xf32, #tpu.memory_space<vmem>>, vector<128x512xf32>
    %cst_64 = arith.constant dense<0.000000e+00> : vector<8x512xf32>
    %126 = tpu.matmul %124, %125, %cst_64 {dimension_numbers = #tpu.dot_dimension_numbers<[1], [0], [0], [1], [0, 0, 1, 1], [], []>} : vector<8x128xf32>, vector<128x512xf32>, vector<8x512xf32> -> vector<8x512xf32>
    %127 = arith.addf %123, %126 : vector<8x512xf32>
    %128 = vector.extract_strided_slice %127 {offsets = [0, 0], sizes = [8, 128], strides = [1, 1]} : vector<8x512xf32> to vector<8x128xf32>
    %129 = arith.negf %128 : vector<8x128xf32>
    %130 = math.exp %129 : vector<8x128xf32>
    %cst_65 = arith.constant 1.000000e+00 : f32
    %131 = vector.broadcast %cst_65 : f32 to vector<8x128xf32>
    %132 = arith.addf %131, %130 : vector<8x128xf32>
    %133 = arith.divf %131, %132 : vector<8x128xf32>
    %134 = vector.extract_strided_slice %127 {offsets = [0, 128], sizes = [8, 128], strides = [1, 1]} : vector<8x512xf32> to vector<8x128xf32>
    %135 = arith.negf %134 : vector<8x128xf32>
    %136 = math.exp %135 : vector<8x128xf32>
    %cst_66 = arith.constant 1.000000e+00 : f32
    %137 = vector.broadcast %cst_66 : f32 to vector<8x128xf32>
    %138 = arith.addf %137, %136 : vector<8x128xf32>
    %139 = arith.divf %137, %138 : vector<8x128xf32>
    %140 = vector.extract_strided_slice %127 {offsets = [0, 256], sizes = [8, 128], strides = [1, 1]} : vector<8x512xf32> to vector<8x128xf32>
    %141 = math.tanh %140 : vector<8x128xf32>
    %142 = vector.extract_strided_slice %127 {offsets = [0, 384], sizes = [8, 128], strides = [1, 1]} : vector<8x512xf32> to vector<8x128xf32>
    %143 = arith.negf %142 : vector<8x128xf32>
    %144 = math.exp %143 : vector<8x128xf32>
    %cst_67 = arith.constant 1.000000e+00 : f32
    %145 = vector.broadcast %cst_67 : f32 to vector<8x128xf32>
    %146 = arith.addf %145, %144 : vector<8x128xf32>
    %147 = arith.divf %145, %146 : vector<8x128xf32>
    %c0_68 = arith.constant 0 : index
    %c0_69 = arith.constant 0 : index
    %148 = vector.load %arg4[%c0_68, %c0_69] : memref<8x128xf32, #tpu.memory_space<vmem>>, vector<8x128xf32>
    %149 = arith.mulf %139, %148 : vector<8x128xf32>
    %150 = arith.mulf %133, %141 : vector<8x128xf32>
    %151 = arith.addf %149, %150 : vector<8x128xf32>
    %152 = math.tanh %151 : vector<8x128xf32>
    %153 = arith.mulf %147, %152 : vector<8x128xf32>
    %c0_70 = arith.constant 0 : index
    %c0_71 = arith.constant 0 : index
    %154 = vector.load %arg4[%c0_70, %c0_71] : memref<8x128xf32, #tpu.memory_space<vmem>>, vector<8x128xf32>
    tpu.vector_store %arg4[%c0_70, %c0_71], %151 {strides = array<i32>} : memref<8x128xf32, #tpu.memory_space<vmem>>, vector<8x128xf32>,
    %c0_72 = arith.constant 0 : index
    %c0_73 = arith.constant 0 : index
    %155 = vector.load %arg3[%c0_72, %c0_73] : memref<8x128xf32, #tpu.memory_space<vmem>>, vector<8x128xf32>
    tpu.vector_store %arg3[%c0_72, %c0_73], %153 {strides = array<i32>} : memref<8x128xf32, #tpu.memory_space<vmem>>, vector<8x128xf32>,
    %156 = arith.index_cast %c3_i32 : i32 to index
    %c0_74 = arith.constant 0 : index
    %c0_75 = arith.constant 0 : index
    %157 = vector.load %arg2[%156, %c0_74, %c0_75] : memref<9x8x128xf32, #tpu.memory_space<vmem>>, vector<1x8x128xf32>
    %158 = vector.shape_cast %157 : vector<1x8x128xf32> to vector<8x128xf32>
    %159 = vector.shape_cast %153 : vector<8x128xf32> to vector<1x8x128xf32>
    tpu.vector_store %arg2[%156, %c0_74, %c0_75], %159 {strides = array<i32>} : memref<9x8x128xf32, #tpu.memory_space<vmem>>, vector<1x8x128xf32>,
    %c4_i32 = arith.constant 4 : i32
    %160 = arith.index_cast %c4_i32 : i32 to index
    %c0_76 = arith.constant 0 : index
    %c0_77 = arith.constant 0 : index
    %161 = vector.load %arg0[%160, %c0_76, %c0_77] : memref<9x8x512xf32, #tpu.memory_space<vmem>>, vector<1x8x512xf32>
    %162 = vector.shape_cast %161 : vector<1x8x512xf32> to vector<8x512xf32>
    %c0_78 = arith.constant 0 : index
    %c0_79 = arith.constant 0 : index
    %163 = vector.load %arg3[%c0_78, %c0_79] : memref<8x128xf32, #tpu.memory_space<vmem>>, vector<8x128xf32>
    %c0_80 = arith.constant 0 : index
    %c0_81 = arith.constant 0 : index
    %164 = vector.load %arg1[%c0_80, %c0_81] : memref<128x512xf32, #tpu.memory_space<vmem>>, vector<128x512xf32>
    %cst_82 = arith.constant dense<0.000000e+00> : vector<8x512xf32>
    %165 = tpu.matmul %163, %164, %cst_82 {dimension_numbers = #tpu.dot_dimension_numbers<[1], [0], [0], [1], [0, 0, 1, 1], [], []>} : vector<8x128xf32>, vector<128x512xf32>, vector<8x512xf32> -> vector<8x512xf32>
    %166 = arith.addf %162, %165 : vector<8x512xf32>
    %167 = vector.extract_strided_slice %166 {offsets = [0, 0], sizes = [8, 128], strides = [1, 1]} : vector<8x512xf32> to vector<8x128xf32>
    %168 = arith.negf %167 : vector<8x128xf32>
    %169 = math.exp %168 : vector<8x128xf32>
    %cst_83 = arith.constant 1.000000e+00 : f32
    %170 = vector.broadcast %cst_83 : f32 to vector<8x128xf32>
    %171 = arith.addf %170, %169 : vector<8x128xf32>
    %172 = arith.divf %170, %171 : vector<8x128xf32>
    %173 = vector.extract_strided_slice %166 {offsets = [0, 128], sizes = [8, 128], strides = [1, 1]} : vector<8x512xf32> to vector<8x128xf32>
    %174 = arith.negf %173 : vector<8x128xf32>
    %175 = math.exp %174 : vector<8x128xf32>
    %cst_84 = arith.constant 1.000000e+00 : f32
    %176 = vector.broadcast %cst_84 : f32 to vector<8x128xf32>
    %177 = arith.addf %176, %175 : vector<8x128xf32>
    %178 = arith.divf %176, %177 : vector<8x128xf32>
    %179 = vector.extract_strided_slice %166 {offsets = [0, 256], sizes = [8, 128], strides = [1, 1]} : vector<8x512xf32> to vector<8x128xf32>
    %180 = math.tanh %179 : vector<8x128xf32>
    %181 = vector.extract_strided_slice %166 {offsets = [0, 384], sizes = [8, 128], strides = [1, 1]} : vector<8x512xf32> to vector<8x128xf32>
    %182 = arith.negf %181 : vector<8x128xf32>
    %183 = math.exp %182 : vector<8x128xf32>
    %cst_85 = arith.constant 1.000000e+00 : f32
    %184 = vector.broadcast %cst_85 : f32 to vector<8x128xf32>
    %185 = arith.addf %184, %183 : vector<8x128xf32>
    %186 = arith.divf %184, %185 : vector<8x128xf32>
    %c0_86 = arith.constant 0 : index
    %c0_87 = arith.constant 0 : index
    %187 = vector.load %arg4[%c0_86, %c0_87] : memref<8x128xf32, #tpu.memory_space<vmem>>, vector<8x128xf32>
    %188 = arith.mulf %178, %187 : vector<8x128xf32>
    %189 = arith.mulf %172, %180 : vector<8x128xf32>
    %190 = arith.addf %188, %189 : vector<8x128xf32>
    %191 = math.tanh %190 : vector<8x128xf32>
    %192 = arith.mulf %186, %191 : vector<8x128xf32>
    %c0_88 = arith.constant 0 : index
    %c0_89 = arith.constant 0 : index
    %193 = vector.load %arg4[%c0_88, %c0_89] : memref<8x128xf32, #tpu.memory_space<vmem>>, vector<8x128xf32>
    tpu.vector_store %arg4[%c0_88, %c0_89], %190 {strides = array<i32>} : memref<8x128xf32, #tpu.memory_space<vmem>>, vector<8x128xf32>,
    %c0_90 = arith.constant 0 : index
    %c0_91 = arith.constant 0 : index
    %194 = vector.load %arg3[%c0_90, %c0_91] : memref<8x128xf32, #tpu.memory_space<vmem>>, vector<8x128xf32>
    tpu.vector_store %arg3[%c0_90, %c0_91], %192 {strides = array<i32>} : memref<8x128xf32, #tpu.memory_space<vmem>>, vector<8x128xf32>,
    %195 = arith.index_cast %c4_i32 : i32 to index
    %c0_92 = arith.constant 0 : index
    %c0_93 = arith.constant 0 : index
    %196 = vector.load %arg2[%195, %c0_92, %c0_93] : memref<9x8x128xf32, #tpu.memory_space<vmem>>, vector<1x8x128xf32>
    %197 = vector.shape_cast %196 : vector<1x8x128xf32> to vector<8x128xf32>
    %198 = vector.shape_cast %192 : vector<8x128xf32> to vector<1x8x128xf32>
    tpu.vector_store %arg2[%195, %c0_92, %c0_93], %198 {strides = array<i32>} : memref<9x8x128xf32, #tpu.memory_space<vmem>>, vector<1x8x128xf32>,
    %c5_i32 = arith.constant 5 : i32
    %199 = arith.index_cast %c5_i32 : i32 to index
    %c0_94 = arith.constant 0 : index
    %c0_95 = arith.constant 0 : index
    %200 = vector.load %arg0[%199, %c0_94, %c0_95] : memref<9x8x512xf32, #tpu.memory_space<vmem>>, vector<1x8x512xf32>
    %201 = vector.shape_cast %200 : vector<1x8x512xf32> to vector<8x512xf32>
    %c0_96 = arith.constant 0 : index
    %c0_97 = arith.constant 0 : index
    %202 = vector.load %arg3[%c0_96, %c0_97] : memref<8x128xf32, #tpu.memory_space<vmem>>, vector<8x128xf32>
    %c0_98 = arith.constant 0 : index
    %c0_99 = arith.constant 0 : index
    %203 = vector.load %arg1[%c0_98, %c0_99] : memref<128x512xf32, #tpu.memory_space<vmem>>, vector<128x512xf32>
    %cst_100 = arith.constant dense<0.000000e+00> : vector<8x512xf32>
    %204 = tpu.matmul %202, %203, %cst_100 {dimension_numbers = #tpu.dot_dimension_numbers<[1], [0], [0], [1], [0, 0, 1, 1], [], []>} : vector<8x128xf32>, vector<128x512xf32>, vector<8x512xf32> -> vector<8x512xf32>
    %205 = arith.addf %201, %204 : vector<8x512xf32>
    %206 = vector.extract_strided_slice %205 {offsets = [0, 0], sizes = [8, 128], strides = [1, 1]} : vector<8x512xf32> to vector<8x128xf32>
    %207 = arith.negf %206 : vector<8x128xf32>
    %208 = math.exp %207 : vector<8x128xf32>
    %cst_101 = arith.constant 1.000000e+00 : f32
    %209 = vector.broadcast %cst_101 : f32 to vector<8x128xf32>
    %210 = arith.addf %209, %208 : vector<8x128xf32>
    %211 = arith.divf %209, %210 : vector<8x128xf32>
    %212 = vector.extract_strided_slice %205 {offsets = [0, 128], sizes = [8, 128], strides = [1, 1]} : vector<8x512xf32> to vector<8x128xf32>
    %213 = arith.negf %212 : vector<8x128xf32>
    %214 = math.exp %213 : vector<8x128xf32>
    %cst_102 = arith.constant 1.000000e+00 : f32
    %215 = vector.broadcast %cst_102 : f32 to vector<8x128xf32>
    %216 = arith.addf %215, %214 : vector<8x128xf32>
    %217 = arith.divf %215, %216 : vector<8x128xf32>
    %218 = vector.extract_strided_slice %205 {offsets = [0, 256], sizes = [8, 128], strides = [1, 1]} : vector<8x512xf32> to vector<8x128xf32>
    %219 = math.tanh %218 : vector<8x128xf32>
    %220 = vector.extract_strided_slice %205 {offsets = [0, 384], sizes = [8, 128], strides = [1, 1]} : vector<8x512xf32> to vector<8x128xf32>
    %221 = arith.negf %220 : vector<8x128xf32>
    %222 = math.exp %221 : vector<8x128xf32>
    %cst_103 = arith.constant 1.000000e+00 : f32
    %223 = vector.broadcast %cst_103 : f32 to vector<8x128xf32>
    %224 = arith.addf %223, %222 : vector<8x128xf32>
    %225 = arith.divf %223, %224 : vector<8x128xf32>
    %c0_104 = arith.constant 0 : index
    %c0_105 = arith.constant 0 : index
    %226 = vector.load %arg4[%c0_104, %c0_105] : memref<8x128xf32, #tpu.memory_space<vmem>>, vector<8x128xf32>
    %227 = arith.mulf %217, %226 : vector<8x128xf32>
    %228 = arith.mulf %211, %219 : vector<8x128xf32>
    %229 = arith.addf %227, %228 : vector<8x128xf32>
    %230 = math.tanh %229 : vector<8x128xf32>
    %231 = arith.mulf %225, %230 : vector<8x128xf32>
    %c0_106 = arith.constant 0 : index
    %c0_107 = arith.constant 0 : index
    %232 = vector.load %arg4[%c0_106, %c0_107] : memref<8x128xf32, #tpu.memory_space<vmem>>, vector<8x128xf32>
    tpu.vector_store %arg4[%c0_106, %c0_107], %229 {strides = array<i32>} : memref<8x128xf32, #tpu.memory_space<vmem>>, vector<8x128xf32>,
    %c0_108 = arith.constant 0 : index
    %c0_109 = arith.constant 0 : index
    %233 = vector.load %arg3[%c0_108, %c0_109] : memref<8x128xf32, #tpu.memory_space<vmem>>, vector<8x128xf32>
    tpu.vector_store %arg3[%c0_108, %c0_109], %231 {strides = array<i32>} : memref<8x128xf32, #tpu.memory_space<vmem>>, vector<8x128xf32>,
    %234 = arith.index_cast %c5_i32 : i32 to index
    %c0_110 = arith.constant 0 : index
    %c0_111 = arith.constant 0 : index
    %235 = vector.load %arg2[%234, %c0_110, %c0_111] : memref<9x8x128xf32, #tpu.memory_space<vmem>>, vector<1x8x128xf32>
    %236 = vector.shape_cast %235 : vector<1x8x128xf32> to vector<8x128xf32>
    %237 = vector.shape_cast %231 : vector<8x128xf32> to vector<1x8x128xf32>
    tpu.vector_store %arg2[%234, %c0_110, %c0_111], %237 {strides = array<i32>} : memref<9x8x128xf32, #tpu.memory_space<vmem>>, vector<1x8x128xf32>,
    %c6_i32 = arith.constant 6 : i32
    %238 = arith.index_cast %c6_i32 : i32 to index
    %c0_112 = arith.constant 0 : index
    %c0_113 = arith.constant 0 : index
    %239 = vector.load %arg0[%238, %c0_112, %c0_113] : memref<9x8x512xf32, #tpu.memory_space<vmem>>, vector<1x8x512xf32>
    %240 = vector.shape_cast %239 : vector<1x8x512xf32> to vector<8x512xf32>
    %c0_114 = arith.constant 0 : index
    %c0_115 = arith.constant 0 : index
    %241 = vector.load %arg3[%c0_114, %c0_115] : memref<8x128xf32, #tpu.memory_space<vmem>>, vector<8x128xf32>
    %c0_116 = arith.constant 0 : index
    %c0_117 = arith.constant 0 : index
    %242 = vector.load %arg1[%c0_116, %c0_117] : memref<128x512xf32, #tpu.memory_space<vmem>>, vector<128x512xf32>
    %cst_118 = arith.constant dense<0.000000e+00> : vector<8x512xf32>
    %243 = tpu.matmul %241, %242, %cst_118 {dimension_numbers = #tpu.dot_dimension_numbers<[1], [0], [0], [1], [0, 0, 1, 1], [], []>} : vector<8x128xf32>, vector<128x512xf32>, vector<8x512xf32> -> vector<8x512xf32>
    %244 = arith.addf %240, %243 : vector<8x512xf32>
    %245 = vector.extract_strided_slice %244 {offsets = [0, 0], sizes = [8, 128], strides = [1, 1]} : vector<8x512xf32> to vector<8x128xf32>
    %246 = arith.negf %245 : vector<8x128xf32>
    %247 = math.exp %246 : vector<8x128xf32>
    %cst_119 = arith.constant 1.000000e+00 : f32
    %248 = vector.broadcast %cst_119 : f32 to vector<8x128xf32>
    %249 = arith.addf %248, %247 : vector<8x128xf32>
    %250 = arith.divf %248, %249 : vector<8x128xf32>
    %251 = vector.extract_strided_slice %244 {offsets = [0, 128], sizes = [8, 128], strides = [1, 1]} : vector<8x512xf32> to vector<8x128xf32>
    %252 = arith.negf %251 : vector<8x128xf32>
    %253 = math.exp %252 : vector<8x128xf32>
    %cst_120 = arith.constant 1.000000e+00 : f32
    %254 = vector.broadcast %cst_120 : f32 to vector<8x128xf32>
    %255 = arith.addf %254, %253 : vector<8x128xf32>
    %256 = arith.divf %254, %255 : vector<8x128xf32>
    %257 = vector.extract_strided_slice %244 {offsets = [0, 256], sizes = [8, 128], strides = [1, 1]} : vector<8x512xf32> to vector<8x128xf32>
    %258 = math.tanh %257 : vector<8x128xf32>
    %259 = vector.extract_strided_slice %244 {offsets = [0, 384], sizes = [8, 128], strides = [1, 1]} : vector<8x512xf32> to vector<8x128xf32>
    %260 = arith.negf %259 : vector<8x128xf32>
    %261 = math.exp %260 : vector<8x128xf32>
    %cst_121 = arith.constant 1.000000e+00 : f32
    %262 = vector.broadcast %cst_121 : f32 to vector<8x128xf32>
    %263 = arith.addf %262, %261 : vector<8x128xf32>
    %264 = arith.divf %262, %263 : vector<8x128xf32>
    %c0_122 = arith.constant 0 : index
    %c0_123 = arith.constant 0 : index
    %265 = vector.load %arg4[%c0_122, %c0_123] : memref<8x128xf32, #tpu.memory_space<vmem>>, vector<8x128xf32>
    %266 = arith.mulf %256, %265 : vector<8x128xf32>
    %267 = arith.mulf %250, %258 : vector<8x128xf32>
    %268 = arith.addf %266, %267 : vector<8x128xf32>
    %269 = math.tanh %268 : vector<8x128xf32>
    %270 = arith.mulf %264, %269 : vector<8x128xf32>
    %c0_124 = arith.constant 0 : index
    %c0_125 = arith.constant 0 : index
    %271 = vector.load %arg4[%c0_124, %c0_125] : memref<8x128xf32, #tpu.memory_space<vmem>>, vector<8x128xf32>
    tpu.vector_store %arg4[%c0_124, %c0_125], %268 {strides = array<i32>} : memref<8x128xf32, #tpu.memory_space<vmem>>, vector<8x128xf32>,
    %c0_126 = arith.constant 0 : index
    %c0_127 = arith.constant 0 : index
    %272 = vector.load %arg3[%c0_126, %c0_127] : memref<8x128xf32, #tpu.memory_space<vmem>>, vector<8x128xf32>
    tpu.vector_store %arg3[%c0_126, %c0_127], %270 {strides = array<i32>} : memref<8x128xf32, #tpu.memory_space<vmem>>, vector<8x128xf32>,
    %273 = arith.index_cast %c6_i32 : i32 to index
    %c0_128 = arith.constant 0 : index
    %c0_129 = arith.constant 0 : index
    %274 = vector.load %arg2[%273, %c0_128, %c0_129] : memref<9x8x128xf32, #tpu.memory_space<vmem>>, vector<1x8x128xf32>
    %275 = vector.shape_cast %274 : vector<1x8x128xf32> to vector<8x128xf32>
    %276 = vector.shape_cast %270 : vector<8x128xf32> to vector<1x8x128xf32>
    tpu.vector_store %arg2[%273, %c0_128, %c0_129], %276 {strides = array<i32>} : memref<9x8x128xf32, #tpu.memory_space<vmem>>, vector<1x8x128xf32>,
    %c7_i32 = arith.constant 7 : i32
    %277 = arith.index_cast %c7_i32 : i32 to index
    %c0_130 = arith.constant 0 : index
    %c0_131 = arith.constant 0 : index
    %278 = vector.load %arg0[%277, %c0_130, %c0_131] : memref<9x8x512xf32, #tpu.memory_space<vmem>>, vector<1x8x512xf32>
    %279 = vector.shape_cast %278 : vector<1x8x512xf32> to vector<8x512xf32>
    %c0_132 = arith.constant 0 : index
    %c0_133 = arith.constant 0 : index
    %280 = vector.load %arg3[%c0_132, %c0_133] : memref<8x128xf32, #tpu.memory_space<vmem>>, vector<8x128xf32>
    %c0_134 = arith.constant 0 : index
    %c0_135 = arith.constant 0 : index
    %281 = vector.load %arg1[%c0_134, %c0_135] : memref<128x512xf32, #tpu.memory_space<vmem>>, vector<128x512xf32>
    %cst_136 = arith.constant dense<0.000000e+00> : vector<8x512xf32>
    %282 = tpu.matmul %280, %281, %cst_136 {dimension_numbers = #tpu.dot_dimension_numbers<[1], [0], [0], [1], [0, 0, 1, 1], [], []>} : vector<8x128xf32>, vector<128x512xf32>, vector<8x512xf32> -> vector<8x512xf32>
    %283 = arith.addf %279, %282 : vector<8x512xf32>
    %284 = vector.extract_strided_slice %283 {offsets = [0, 0], sizes = [8, 128], strides = [1, 1]} : vector<8x512xf32> to vector<8x128xf32>
    %285 = arith.negf %284 : vector<8x128xf32>
    %286 = math.exp %285 : vector<8x128xf32>
    %cst_137 = arith.constant 1.000000e+00 : f32
    %287 = vector.broadcast %cst_137 : f32 to vector<8x128xf32>
    %288 = arith.addf %287, %286 : vector<8x128xf32>
    %289 = arith.divf %287, %288 : vector<8x128xf32>
    %290 = vector.extract_strided_slice %283 {offsets = [0, 128], sizes = [8, 128], strides = [1, 1]} : vector<8x512xf32> to vector<8x128xf32>
    %291 = arith.negf %290 : vector<8x128xf32>
    %292 = math.exp %291 : vector<8x128xf32>
    %cst_138 = arith.constant 1.000000e+00 : f32
    %293 = vector.broadcast %cst_138 : f32 to vector<8x128xf32>
    %294 = arith.addf %293, %292 : vector<8x128xf32>
    %295 = arith.divf %293, %294 : vector<8x128xf32>
    %296 = vector.extract_strided_slice %283 {offsets = [0, 256], sizes = [8, 128], strides = [1, 1]} : vector<8x512xf32> to vector<8x128xf32>
    %297 = math.tanh %296 : vector<8x128xf32>
    %298 = vector.extract_strided_slice %283 {offsets = [0, 384], sizes = [8, 128], strides = [1, 1]} : vector<8x512xf32> to vector<8x128xf32>
    %299 = arith.negf %298 : vector<8x128xf32>
    %300 = math.exp %299 : vector<8x128xf32>
    %cst_139 = arith.constant 1.000000e+00 : f32
    %301 = vector.broadcast %cst_139 : f32 to vector<8x128xf32>
    %302 = arith.addf %301, %300 : vector<8x128xf32>
    %303 = arith.divf %301, %302 : vector<8x128xf32>
    %c0_140 = arith.constant 0 : index
    %c0_141 = arith.constant 0 : index
    %304 = vector.load %arg4[%c0_140, %c0_141] : memref<8x128xf32, #tpu.memory_space<vmem>>, vector<8x128xf32>
    %305 = arith.mulf %295, %304 : vector<8x128xf32>
    %306 = arith.mulf %289, %297 : vector<8x128xf32>
    %307 = arith.addf %305, %306 : vector<8x128xf32>
    %308 = math.tanh %307 : vector<8x128xf32>
    %309 = arith.mulf %303, %308 : vector<8x128xf32>
    %c0_142 = arith.constant 0 : index
    %c0_143 = arith.constant 0 : index
    %310 = vector.load %arg4[%c0_142, %c0_143] : memref<8x128xf32, #tpu.memory_space<vmem>>, vector<8x128xf32>
    tpu.vector_store %arg4[%c0_142, %c0_143], %307 {strides = array<i32>} : memref<8x128xf32, #tpu.memory_space<vmem>>, vector<8x128xf32>,
    %c0_144 = arith.constant 0 : index
    %c0_145 = arith.constant 0 : index
    %311 = vector.load %arg3[%c0_144, %c0_145] : memref<8x128xf32, #tpu.memory_space<vmem>>, vector<8x128xf32>
    tpu.vector_store %arg3[%c0_144, %c0_145], %309 {strides = array<i32>} : memref<8x128xf32, #tpu.memory_space<vmem>>, vector<8x128xf32>,
    %312 = arith.index_cast %c7_i32 : i32 to index
    %c0_146 = arith.constant 0 : index
    %c0_147 = arith.constant 0 : index
    %313 = vector.load %arg2[%312, %c0_146, %c0_147] : memref<9x8x128xf32, #tpu.memory_space<vmem>>, vector<1x8x128xf32>
    %314 = vector.shape_cast %313 : vector<1x8x128xf32> to vector<8x128xf32>
    %315 = vector.shape_cast %309 : vector<8x128xf32> to vector<1x8x128xf32>
    tpu.vector_store %arg2[%312, %c0_146, %c0_147], %315 {strides = array<i32>} : memref<9x8x128xf32, #tpu.memory_space<vmem>>, vector<1x8x128xf32>,
    %c8_i32 = arith.constant 8 : i32
    %316 = arith.index_cast %c8_i32 : i32 to index
    %c0_148 = arith.constant 0 : index
    %c0_149 = arith.constant 0 : index
    %317 = vector.load %arg0[%316, %c0_148, %c0_149] : memref<9x8x512xf32, #tpu.memory_space<vmem>>, vector<1x8x512xf32>
    %318 = vector.shape_cast %317 : vector<1x8x512xf32> to vector<8x512xf32>
    %c0_150 = arith.constant 0 : index
    %c0_151 = arith.constant 0 : index
    %319 = vector.load %arg3[%c0_150, %c0_151] : memref<8x128xf32, #tpu.memory_space<vmem>>, vector<8x128xf32>
    %c0_152 = arith.constant 0 : index
    %c0_153 = arith.constant 0 : index
    %320 = vector.load %arg1[%c0_152, %c0_153] : memref<128x512xf32, #tpu.memory_space<vmem>>, vector<128x512xf32>
    %cst_154 = arith.constant dense<0.000000e+00> : vector<8x512xf32>
    %321 = tpu.matmul %319, %320, %cst_154 {dimension_numbers = #tpu.dot_dimension_numbers<[1], [0], [0], [1], [0, 0, 1, 1], [], []>} : vector<8x128xf32>, vector<128x512xf32>, vector<8x512xf32> -> vector<8x512xf32>
    %322 = arith.addf %318, %321 : vector<8x512xf32>
    %323 = vector.extract_strided_slice %322 {offsets = [0, 0], sizes = [8, 128], strides = [1, 1]} : vector<8x512xf32> to vector<8x128xf32>
    %324 = arith.negf %323 : vector<8x128xf32>
    %325 = math.exp %324 : vector<8x128xf32>
    %cst_155 = arith.constant 1.000000e+00 : f32
    %326 = vector.broadcast %cst_155 : f32 to vector<8x128xf32>
    %327 = arith.addf %326, %325 : vector<8x128xf32>
    %328 = arith.divf %326, %327 : vector<8x128xf32>
    %329 = vector.extract_strided_slice %322 {offsets = [0, 128], sizes = [8, 128], strides = [1, 1]} : vector<8x512xf32> to vector<8x128xf32>
    %330 = arith.negf %329 : vector<8x128xf32>
    %331 = math.exp %330 : vector<8x128xf32>
    %cst_156 = arith.constant 1.000000e+00 : f32
    %332 = vector.broadcast %cst_156 : f32 to vector<8x128xf32>
    %333 = arith.addf %332, %331 : vector<8x128xf32>
    %334 = arith.divf %332, %333 : vector<8x128xf32>
    %335 = vector.extract_strided_slice %322 {offsets = [0, 256], sizes = [8, 128], strides = [1, 1]} : vector<8x512xf32> to vector<8x128xf32>
    %336 = math.tanh %335 : vector<8x128xf32>
    %337 = vector.extract_strided_slice %322 {offsets = [0, 384], sizes = [8, 128], strides = [1, 1]} : vector<8x512xf32> to vector<8x128xf32>
    %338 = arith.negf %337 : vector<8x128xf32>
    %339 = math.exp %338 : vector<8x128xf32>
    %cst_157 = arith.constant 1.000000e+00 : f32
    %340 = vector.broadcast %cst_157 : f32 to vector<8x128xf32>
    %341 = arith.addf %340, %339 : vector<8x128xf32>
    %342 = arith.divf %340, %341 : vector<8x128xf32>
    %c0_158 = arith.constant 0 : index
    %c0_159 = arith.constant 0 : index
    %343 = vector.load %arg4[%c0_158, %c0_159] : memref<8x128xf32, #tpu.memory_space<vmem>>, vector<8x128xf32>
    %344 = arith.mulf %334, %343 : vector<8x128xf32>
    %345 = arith.mulf %328, %336 : vector<8x128xf32>
    %346 = arith.addf %344, %345 : vector<8x128xf32>
    %347 = math.tanh %346 : vector<8x128xf32>
    %348 = arith.mulf %342, %347 : vector<8x128xf32>
    %c0_160 = arith.constant 0 : index
    %c0_161 = arith.constant 0 : index
    %349 = vector.load %arg4[%c0_160, %c0_161] : memref<8x128xf32, #tpu.memory_space<vmem>>, vector<8x128xf32>
    tpu.vector_store %arg4[%c0_160, %c0_161], %346 {strides = array<i32>} : memref<8x128xf32, #tpu.memory_space<vmem>>, vector<8x128xf32>,
    %c0_162 = arith.constant 0 : index
    %c0_163 = arith.constant 0 : index
    %350 = vector.load %arg3[%c0_162, %c0_163] : memref<8x128xf32, #tpu.memory_space<vmem>>, vector<8x128xf32>
    tpu.vector_store %arg3[%c0_162, %c0_163], %348 {strides = array<i32>} : memref<8x128xf32, #tpu.memory_space<vmem>>, vector<8x128xf32>,
    %351 = arith.index_cast %c8_i32 : i32 to index
    %c0_164 = arith.constant 0 : index
    %c0_165 = arith.constant 0 : index
    %352 = vector.load %arg2[%351, %c0_164, %c0_165] : memref<9x8x128xf32, #tpu.memory_space<vmem>>, vector<1x8x128xf32>
    %353 = vector.shape_cast %352 : vector<1x8x128xf32> to vector<8x128xf32>
    %354 = vector.shape_cast %348 : vector<8x128xf32> to vector<1x8x128xf32>
    tpu.vector_store %arg2[%351, %c0_164, %c0_165], %354 {strides = array<i32>} : memref<9x8x128xf32, #tpu.memory_space<vmem>>, vector<1x8x128xf32>,
    %c9_i32 = arith.constant 9 : i32
    return
  }
}

</mosaic_0001>

<bundles_post_ra>
// kernel: decoder_rnn_forward.5
= control target key start
LH: loop header
LB: loop body
LE: loop exit
PB: predicated region body
PF: predicated region fallthrough
CT: control target
= control target key end

     0   :  { %v288_v0 = vmov 0.0   ;;  %vm289_vm0 = vmmov 0   ;;  %s465_s1 = inlined_call_operand.vmem [shape: f32[128,128], index: 1, kind: input, shape index: {}]   ;;  %s466_s0 = inlined_call_operand.vmem [shape: f32[72,128], index: 0, kind: input, shape index: {}]   ;;  %s467_s2 = inlined_call_operand.vmem [shape: f32[1,128], index: 2, kind: input, shape index: {}]   ;;  %s468_s3 = inlined_call_operand.vmem [shape: f32[72,128], index: 3, kind: output, shape index: {}]  }
   0x1   :  { %195 = vmatprep.subr.mxu0 %v288_v0  ;;  %v38_v1 = vld [vmem:[%s465_s1 + $0x78] sm:$0xff]  ;;  %254 = vmatprep.subr.mxu1 %v288_v0  ;;  %v37_v2 = vld [vmem:[%s465_s1 + $0x70] sm:$0xff]  ;;  %v36_v3 = vld [vmem:[%s465_s1 + $0x68] sm:$0xff] }
   0x2   :  { %196 = vmatpush3.msra.mxu0 %v38_v1  ;;  %270 = vmatpush3.msra.mxu1 %v38_v1  ;;  %v35_v4 = vld [vmem:[%s465_s1 + $0x60] sm:$0xff]  ;;  %v34_v5 = vld [vmem:[%s465_s1 + $0x58] sm:$0xff]  ;;  %v33_v6 = vld [vmem:[%s465_s1 + $0x50] sm:$0xff] }
   0x3   :  { %197 = vmatprep.subr.mxu0 %v288_v0  ;;  %255 = vmatprep.subr.mxu1 %v288_v0  ;;  %v32_v7 = vld [vmem:[%s465_s1 + $0x48] sm:$0xff]  ;;  %v31_v8 = vld [vmem:[%s465_s1 + $0x40] sm:$0xff]  ;;  %v30_v9 = vld [vmem:[%s465_s1 + $0x38] sm:$0xff] }
   0x4   :  { %198 = vmatpush3.msra.mxu0 %v37_v2  ;;  %271 = vmatpush3.msra.mxu1 %v37_v2  ;;  %v29_v10 = vld [vmem:[%s465_s1 + $0x30] sm:$0xff]  ;;  %v28_v11 = vld [vmem:[%s465_s1 + $0x28] sm:$0xff]  ;;  %v27_v12 = vld [vmem:[%s465_s1 + $0x20] sm:$0xff] }
   0x5   :  { %199 = vmatprep.subr.mxu0 %v288_v0  ;;  %256 = vmatprep.subr.mxu1 %v288_v0  ;;  %v26_v13 = vld [vmem:[%s465_s1 + $0x18] sm:$0xff]  ;;  %v25_v14 = vld [vmem:[%s465_s1 + $0x10] sm:$0xff]  ;;  %v24_v15 = vld [vmem:[%s465_s1 + $0x8] sm:$0xff] }
   0x6   :  { %200 = vmatpush3.msra.mxu0 %v36_v3  ;;  %272 = vmatpush3.msra.mxu1 %v36_v3  ;;  %v23_v16 = vld [vmem:[%s465_s1] sm:$0xff]  ;;  %v19_v18 = vld [vmem:[%s466_s0 + $0x28] sm:$0xff]  ;;  %v20_v20 = vld [vmem:[%s466_s0 + $0x30] sm:$0xff] }
   0x7   :  { %201 = vmatprep.subr.mxu0 %v288_v0  ;;  %257 = vmatprep.subr.mxu1 %v288_v0  ;;  %v14_v17 = vld [vmem:[%s466_s0] sm:$0xff]  ;;  %v15_v19 = vld [vmem:[%s466_s0 + $0x8] sm:$0xff]  ;;  %v16_v21 = vld [vmem:[%s466_s0 + $0x10] sm:$0xff] }
   0x8   :  { %202 = vmatpush3.msra.mxu0 %v35_v4  ;;  %273 = vmatpush3.msra.mxu1 %v35_v4  ;;  %v21_v22 = vld [vmem:[%s466_s0 + $0x38] sm:$0xff]  ;;  %v22_v24 = vld [vmem:[%s466_s0 + $0x40] sm:$0xff] }
   0x9   :  { %203 = vmatprep.subr.mxu0 %v288_v0  ;;  %258 = vmatprep.subr.mxu1 %v288_v0  ;;  %v17_v23 = vld [vmem:[%s466_s0 + $0x18] sm:$0xff]  ;;  %v18_v25 = vld [vmem:[%s466_s0 + $0x20] sm:$0xff] }
   0xa   :  { %204 = vmatpush3.msra.mxu0 %v34_v5  ;;  %274 = vmatpush3.msra.mxu1 %v34_v5  ;;  %v169_v26 = vld [vmem:[%s467_s2] ss:$0 sm:$0xff] }
   0xb   :  { %205 = vmatprep.subr.mxu0 %v288_v0  ;;  %259 = vmatprep.subr.mxu1 %v288_v0 }
   0xc   :  { %206 = vmatpush3.msra.mxu0 %v33_v6  ;;  %275 = vmatpush3.msra.mxu1 %v33_v6 }
   0xd   :  { %207 = vmatprep.subr.mxu0 %v288_v0  ;;  %260 = vmatprep.subr.mxu1 %v288_v0 }
   0xe   :  { %208 = vmatpush3.msra.mxu0 %v32_v7  ;;  %276 = vmatpush3.msra.mxu1 %v32_v7 }
   0xf   :  { %209 = vmatprep.subr.mxu0 %v288_v0  ;;  %261 = vmatprep.subr.mxu1 %v288_v0 }
  0x10   :  { %210 = vmatpush3.msra.mxu0 %v31_v8  ;;  %277 = vmatpush3.msra.mxu1 %v31_v8 }
  0x11   :  { %211 = vmatprep.subr.mxu0 %v288_v0  ;;  %262 = vmatprep.subr.mxu1 %v288_v0 }
  0x12   :  { %212 = vmatpush3.msra.mxu0 %v30_v9  ;;  %278 = vmatpush3.msra.mxu1 %v30_v9 }
  0x13   :  { %213 = vmatprep.subr.mxu0 %v288_v0  ;;  %263 = vmatprep.subr.mxu1 %v288_v0 }
  0x14   :  { %214 = vmatpush3.msra.mxu0 %v29_v10  ;;  %279 = vmatpush3.msra.mxu1 %v29_v10 }
  0x15   :  { %215 = vmatprep.subr.mxu0 %v288_v0  ;;  %264 = vmatprep.subr.mxu1 %v288_v0 }
  0x16   :  { %216 = vmatpush3.msra.mxu0 %v28_v11  ;;  %280 = vmatpush3.msra.mxu1 %v28_v11 }
  0x17   :  { %217 = vmatprep.subr.mxu0 %v288_v0  ;;  %265 = vmatprep.subr.mxu1 %v288_v0 }
  0x18   :  { %218 = vmatpush3.msra.mxu0 %v27_v12  ;;  %281 = vmatpush3.msra.mxu1 %v27_v12 }
  0x19   :  { %219 = vmatprep.subr.mxu0 %v288_v0  ;;  %266 = vmatprep.subr.mxu1 %v288_v0 }
  0x1a   :  { %220 = vmatpush3.msra.mxu0 %v26_v13  ;;  %282 = vmatpush3.msra.mxu1 %v26_v13 }
  0x1b   :  { %221 = vmatprep.subr.mxu0 %v288_v0  ;;  %267 = vmatprep.subr.mxu1 %v288_v0 }
  0x1c   :  { %222 = vmatpush3.msra.mxu0 %v25_v14  ;;  %283 = vmatpush3.msra.mxu1 %v25_v14 }
  0x1d   :  { %223 = vmatprep.subr.mxu0 %v288_v0  ;;  %268 = vmatprep.subr.mxu1 %v288_v0 }
  0x1e   :  { %224 = vmatpush3.msra.mxu0 %v24_v15  ;;  %284 = vmatpush3.msra.mxu1 %v24_v15 }
  0x1f   :  { %225 = vmatprep.subr.mxu0 %v288_v0  ;;  %227 = vmatprep.mubr.msk.f32.mxu0 %vm289_vm0, %v288_v0 }
  0x20   :  { %226 = vmatpush3.msra.mxu0 %v23_v16  ;;  %269 = vmatprep.subr.mxu1 %v288_v0 }
  0x21   :  { %228 = vmatmul.mubr.f32.vlgmr.msra.gmra.mxu0 %v14_v17  ;;  %285 = vmatpush3.msra.mxu1 %v23_v16 }
  0x22   :  { %242 = vmatprep.mubr.msk.f32.mxu1 %vm289_vm0, %v288_v0  ;;  %230 = vmatprep.mubr.msk.f32.mxu0 %vm289_vm0, %v288_v0 }
  0x23   :  { %243 = vmatmul.mubr.f32.vlgmr.msra.gmra.mxu1 %v19_v18 }
  0x24   :  { %245 = vmatprep.mubr.msk.f32.mxu1 %vm289_vm0, %v288_v0 }
  0x25   :  { %231 = vmatmul.mubr.f32.gmra.mxu0 %v15_v19 }
  0x26   :  { %233 = vmatprep.mubr.msk.f32.mxu0 %vm289_vm0, %v288_v0 }
  0x27   :  { %246 = vmatmul.mubr.f32.gmra.mxu1 %v20_v20 }
  0x28   :  { %248 = vmatprep.mubr.msk.f32.mxu1 %vm289_vm0, %v288_v0 }
  0x29   :  { %234 = vmatmul.mubr.f32.gmra.mxu0 %v16_v21 }
  0x2a   :  { %236 = vmatprep.mubr.msk.f32.mxu0 %vm289_vm0, %v288_v0 }
  0x2b   :  { %249 = vmatmul.mubr.f32.gmra.mxu1 %v21_v22 }
  0x2c   :  { %251 = vmatprep.mubr.msk.f32.mxu1 %vm289_vm0, %v288_v0 }
  0x2d   :  { %237 = vmatmul.mubr.f32.gmra.mxu0 %v17_v23 }
  0x2e   :  { %239 = vmatprep.mubr.msk.f32.mxu0 %vm289_vm0, %v288_v0 }
  0x2f   :  { %252 = vmatmul.mubr.f32.gmra.mxu1 %v22_v24 }
  0x31   :  { %240 = vmatmul.mubr.f32.gmra.mxu0 %v18_v25 }
  0xe1   :  { %v112_v27 = vpop.f32.mrf.mxu0 }
  0xe2   :  { %v113_v28 = vadd.f32 %v169_v26, %v112_v27 }
  0xe3   :  { %v229_v29 = vpop.f32.mrf.mxu0  ;;  %v137_v30 = vpop.f32.mrf.mxu1 }
  0xe4   :  { %156 = vst [vmem:[%s468_s3] sm:$0xff] %v113_v28  ;;  %v138_v31 = vadd.f32 %v169_v26, %v137_v30 }
  0xe5   :  { %v117_v32 = vpop.f32.mrf.mxu0  ;;  %v244_v33 = vpop.f32.mrf.mxu1 }
  0xe6   :  { %161 = vst [vmem:[%s468_s3 + $0x28] sm:$0xff] %v138_v31  ;;  %v118_v34 = vadd.f32 %v169_v26, %v117_v32 }
  0xe7   :  { %v232_v35 = vpop.f32.mrf.mxu0  ;;  %v142_v36 = vpop.f32.mrf.mxu1 }
  0xe8   :  { %157 = vst [vmem:[%s468_s3 + $0x8] sm:$0xff] %v118_v34  ;;  %v143_v37 = vadd.f32 %v169_v26, %v142_v36 }
  0xe9   :  { %v122_v38 = vpop.f32.mrf.mxu0  ;;  %v247_v39 = vpop.f32.mrf.mxu1 }
  0xea   :  { %162 = vst [vmem:[%s468_s3 + $0x30] sm:$0xff] %v143_v37  ;;  %v123_v40 = vadd.f32 %v169_v26, %v122_v38 }
  0xeb   :  { %v235_v41 = vpop.f32.mrf.mxu0  ;;  %v147_v42 = vpop.f32.mrf.mxu1 }
  0xec   :  { %158 = vst [vmem:[%s468_s3 + $0x10] sm:$0xff] %v123_v40  ;;  %v148_v43 = vadd.f32 %v169_v26, %v147_v42 }
  0xed   :  { %v127_v44 = vpop.f32.mrf.mxu0  ;;  %v250_v45 = vpop.f32.mrf.mxu1 }
  0xee   :  { %163 = vst [vmem:[%s468_s3 + $0x38] sm:$0xff] %v148_v43  ;;  %v128_v46 = vadd.f32 %v169_v26, %v127_v44 }
  0xef   :  { %v238_v47 = vpop.f32.mrf.mxu0  ;;  %v152_v48 = vpop.f32.mrf.mxu1 }
  0xf0   :  { %159 = vst [vmem:[%s468_s3 + $0x18] sm:$0xff] %v128_v46  ;;  %v153_v49 = vadd.f32 %v169_v26, %v152_v48 }
  0xf1   :  { %v132_v50 = vpop.f32.mrf.mxu0  ;;  %v253_v51 = vpop.f32.mrf.mxu1 }
  0xf2   :  { %164 = vst [vmem:[%s468_s3 + $0x40] sm:$0xff] %v153_v49  ;;  %v133_v52 = vadd.f32 %v169_v26, %v132_v50 }
  0xf3   :  { %v241_v53 = vpop.f32.mrf.mxu0 }
  0xf4   :  { %160 = vst [vmem:[%s468_s3 + $0x20] sm:$0xff] %v133_v52 }

// kernel: decoder_rnn_forward.3
= control target key start
LH: loop header
LB: loop body
LE: loop exit
PB: predicated region body
PF: predicated region fallthrough
CT: control target
= control target key end

     0   :  { %v386_v3 = vmov 0.0   ;;  %vm61_vm0 = vcmask 261120   ;;  %v41_v26 = vlaneseq  ;;  %s673_s1 = inlined_call_operand.vmem [shape: f32[32,512], index: 1, kind: input, shape index: {}]   ;;  %s674_s0 = inlined_call_operand.vmem [shape: f32[72,32], index: 0, kind: input, shape index: {}]   ;;  %s675_s2 = inlined_call_operand.vmem [shape: f32[1,512], index: 2, kind: input, shape index: {}]   ;;  %s676_s3 = inlined_call_operand.vmem [shape: f32[72,512], index: 3, kind: output, shape index: {}]  }
   0x1   :  { %v36_v0 = vld [vmem:[%s673_s1 + $0x68] sm:$0xff]  ;;  %v38_v1 = vld [vmem:[%s673_s1 + $0x78] sm:$0xff]  ;;  %v35_v2 = vld [vmem:[%s673_s1 + $0x60] sm:$0xff]  ;;  %153 = vmatprep.mubr.f32.mxu0 %v386_v3  ;;  %272 = vmatprep.mubr.f32.mxu1 %v386_v3 }
   0x2   :  { %113 = vmatprep.subr.mxu0 %v36_v0  ;;  %232 = vmatprep.subr.mxu1 %v38_v1  ;;  %v37_v4 = vld [vmem:[%s673_s1 + $0x70] sm:$0xff]  ;;  %v32_v5 = vld [vmem:[%s673_s1 + $0x48] sm:$0xff]  ;;  %v34_v6 = vld [vmem:[%s673_s1 + $0x58] sm:$0xff]  ;;  %v42_v27 = vshrl.u32 %v41_v26, 7 }
   0x3   :  { %114 = vmatpush1.msra.mxu0 %v35_v2  ;;  %233 = vmatpush1.msra.mxu1 %v37_v4  ;;  %v31_v7 = vld [vmem:[%s673_s1 + $0x40] sm:$0xff]  ;;  %v33_v8 = vld [vmem:[%s673_s1 + $0x50] sm:$0xff]  ;;  %v28_v9 = vld [vmem:[%s673_s1 + $0x28] sm:$0xff] }
   0x4   :  { %115 = vmatprep.subr.mxu0 %v32_v5  ;;  %234 = vmatprep.subr.mxu1 %v34_v6  ;;  %v30_v10 = vld [vmem:[%s673_s1 + $0x38] sm:$0xff]  ;;  %v27_v11 = vld [vmem:[%s673_s1 + $0x20] sm:$0xff]  ;;  %v29_v12 = vld [vmem:[%s673_s1 + $0x30] sm:$0xff]  ;;  %v43_v28 = vsub.s32 0, %v42_v27  ;;  %v51_v29 = vsub.s32 2, %v42_v27  ;;  %v47_v31 = vsub.s32 1, %v42_v27 }
   0x5   :  { %116 = vmatpush1.msra.mxu0 %v31_v7  ;;  %235 = vmatpush1.msra.mxu1 %v33_v8  ;;  %v24_v13 = vld [vmem:[%s673_s1 + $0x8] sm:$0xff]  ;;  %v26_v14 = vld [vmem:[%s673_s1 + $0x18] sm:$0xff]  ;;  %v23_v15 = vld [vmem:[%s673_s1] sm:$0xff]  ;;  %v55_v32 = vsub.s32 3, %v42_v27 }
   0x6   :  { %117 = vmatprep.subr.mxu0 %v28_v9  ;;  %236 = vmatprep.subr.mxu1 %v30_v10  ;;  %v25_v16 = vld [vmem:[%s673_s1 + $0x10] sm:$0xff]  ;;  %v14_v17 = vld [vmem:[%s674_s0] sm:$0xff]  ;;  %v15_v18 = vld [vmem:[%s674_s0 + $0x8] sm:$0xff] }
   0x7   :  { %118 = vmatpush1.msra.mxu0 %v27_v11  ;;  %237 = vmatpush1.msra.mxu1 %v29_v12  ;;  %v16_v19 = vld [vmem:[%s674_s0 + $0x10] sm:$0xff]  ;;  %v17_v20 = vld [vmem:[%s674_s0 + $0x18] sm:$0xff]  ;;  %v18_v21 = vld [vmem:[%s674_s0 + $0x20] sm:$0xff] }
   0x8   :  { %119 = vmatprep.subr.mxu0 %v24_v13  ;;  %238 = vmatprep.subr.mxu1 %v26_v14  ;;  %v19_v22 = vld [vmem:[%s674_s0 + $0x28] sm:$0xff]  ;;  %v20_v23 = vld [vmem:[%s674_s0 + $0x30] sm:$0xff]  ;;  %v21_v24 = vld [vmem:[%s674_s0 + $0x38] sm:$0xff] }
   0x9   :  { %120 = vmatpush1.msra.mxu0 %v23_v15  ;;  %239 = vmatpush1.msra.mxu1 %v25_v16  ;;  %v22_v25 = vld [vmem:[%s674_s0 + $0x40] sm:$0xff] }
   0xa   :  { %367 = vmatmul.mubr.msk.f32.vlgmr.msra.gmra.mxu0 %vm61_vm0, %v14_v17  ;;  %376 = vmatmul.mubr.msk.f32.vlgmr.msra.gmra.mxu1 %vm61_vm0, %v14_v17  ;;  %v39_v30 = vld [vmem:[%s675_s2] sm:$0xf] }
   0xb   :  { %159 = vmatprep.mubr.f32.mxu0 %v386_v3  ;;  %278 = vmatprep.mubr.f32.mxu1 %v386_v3  ;;  %v521_v33 = vrot.slane %v39_v30, %v43_v28  ;;  %v523_v34 = vrot.slane %v39_v30, %v51_v29  ;;  %v525_v35 = vrot.slane %v39_v30, %v47_v31 }
   0xc   :  { %v527_v36 = vrot.slane %v39_v30, %v55_v32 }
   0xe   :  { %368 = vmatmul.mubr.msk.f32.gmra.mxu0 %vm61_vm0, %v15_v18  ;;  %377 = vmatmul.mubr.msk.f32.gmra.mxu1 %vm61_vm0, %v15_v18 }
   0xf   :  { %165 = vmatprep.mubr.f32.mxu0 %v386_v3  ;;  %284 = vmatprep.mubr.f32.mxu1 %v386_v3 }
  0x12   :  { %369 = vmatmul.mubr.msk.f32.gmra.mxu0 %vm61_vm0, %v16_v19  ;;  %378 = vmatmul.mubr.msk.f32.gmra.mxu1 %vm61_vm0, %v16_v19 }
  0x13   :  { %171 = vmatprep.mubr.f32.mxu0 %v386_v3  ;;  %290 = vmatprep.mubr.f32.mxu1 %v386_v3 }
  0x16   :  { %370 = vmatmul.mubr.msk.f32.gmra.mxu0 %vm61_vm0, %v17_v20  ;;  %379 = vmatmul.mubr.msk.f32.gmra.mxu1 %vm61_vm0, %v17_v20 }
  0x17   :  { %177 = vmatprep.mubr.f32.mxu0 %v386_v3  ;;  %296 = vmatprep.mubr.f32.mxu1 %v386_v3 }
  0x1a   :  { %371 = vmatmul.mubr.msk.f32.gmra.mxu0 %vm61_vm0, %v18_v21  ;;  %380 = vmatmul.mubr.msk.f32.gmra.mxu1 %vm61_vm0, %v18_v21 }
  0x1b   :  { %183 = vmatprep.mubr.f32.mxu0 %v386_v3  ;;  %302 = vmatprep.mubr.f32.mxu1 %v386_v3 }
  0x1e   :  { %372 = vmatmul.mubr.msk.f32.gmra.mxu0 %vm61_vm0, %v19_v22  ;;  %381 = vmatmul.mubr.msk.f32.gmra.mxu1 %vm61_vm0, %v19_v22 }
  0x1f   :  { %189 = vmatprep.mubr.f32.mxu0 %v386_v3  ;;  %308 = vmatprep.mubr.f32.mxu1 %v386_v3 }
  0x22   :  { %373 = vmatmul.mubr.msk.f32.gmra.mxu0 %vm61_vm0, %v20_v23  ;;  %382 = vmatmul.mubr.msk.f32.gmra.mxu1 %vm61_vm0, %v20_v23 }
  0x23   :  { %195 = vmatprep.mubr.f32.mxu0 %v386_v3  ;;  %314 = vmatprep.mubr.f32.mxu1 %v386_v3 }
  0x26   :  { %374 = vmatmul.mubr.msk.f32.gmra.mxu0 %vm61_vm0, %v21_v24  ;;  %383 = vmatmul.mubr.msk.f32.gmra.mxu1 %vm61_vm0, %v21_v24 }
  0x27   :  { %201 = vmatprep.mubr.f32.mxu0 %v386_v3  ;;  %320 = vmatprep.mubr.f32.mxu1 %v386_v3 }
  0x2a   :  { %375 = vmatmul.mubr.msk.f32.gmra.mxu0 %vm61_vm0, %v22_v25  ;;  %384 = vmatmul.mubr.msk.f32.gmra.mxu1 %vm61_vm0, %v22_v25 }
  0xca   :  { %v155_v37 = vpop.f32.mrf.mxu0  ;;  %v274_v38 = vpop.f32.mrf.mxu1 }
  0xcb   :  { %v156_v39 = vadd.f32 %v155_v37, %v521_v33  ;;  %v275_v40 = vadd.f32 %v274_v38, %v523_v34 }
  0xcc   :  { %v157_v41 = vpop.f32.mrf.mxu0  ;;  %v276_v42 = vpop.f32.mrf.mxu1 }
  0xcd   :  { %327 = vst [vmem:[%s676_s3] sm:$0xff] %v156_v39  ;;  %329 = vst [vmem:[%s676_s3 + $0x10] sm:$0xff] %v275_v40  ;;  %v158_v43 = vadd.f32 %v157_v41, %v525_v35  ;;  %v277_v44 = vadd.f32 %v276_v42, %v527_v36 }
  0xce   :  { %v161_v45 = vpop.f32.mrf.mxu0  ;;  %v280_v46 = vpop.f32.mrf.mxu1 }
  0xcf   :  { %328 = vst [vmem:[%s676_s3 + $0x8] sm:$0xff] %v158_v43  ;;  %330 = vst [vmem:[%s676_s3 + $0x18] sm:$0xff] %v277_v44  ;;  %v162_v47 = vadd.f32 %v161_v45, %v521_v33  ;;  %v281_v48 = vadd.f32 %v280_v46, %v523_v34 }
  0xd0   :  { %v163_v49 = vpop.f32.mrf.mxu0  ;;  %v282_v50 = vpop.f32.mrf.mxu1 }
  0xd1   :  { %331 = vst [vmem:[%s676_s3 + $0x20] sm:$0xff] %v162_v47  ;;  %333 = vst [vmem:[%s676_s3 + $0x30] sm:$0xff] %v281_v48  ;;  %v164_v51 = vadd.f32 %v163_v49, %v525_v35  ;;  %v283_v52 = vadd.f32 %v282_v50, %v527_v36 }
  0xd2   :  { %v167_v53 = vpop.f32.mrf.mxu0  ;;  %v286_v54 = vpop.f32.mrf.mxu1 }
  0xd3   :  { %332 = vst [vmem:[%s676_s3 + $0x28] sm:$0xff] %v164_v51  ;;  %334 = vst [vmem:[%s676_s3 + $0x38] sm:$0xff] %v283_v52  ;;  %v168_v55 = vadd.f32 %v167_v53, %v521_v33  ;;  %v287_v56 = vadd.f32 %v286_v54, %v523_v34 }
  0xd4   :  { %v169_v57 = vpop.f32.mrf.mxu0  ;;  %v288_v58 = vpop.f32.mrf.mxu1 }
  0xd5   :  { %335 = vst [vmem:[%s676_s3 + $0x40] sm:$0xff] %v168_v55  ;;  %337 = vst [vmem:[%s676_s3 + $0x50] sm:$0xff] %v287_v56  ;;  %v170_v59 = vadd.f32 %v169_v57, %v525_v35  ;;  %v289_v60 = vadd.f32 %v288_v58, %v527_v36 }
  0xd6   :  { %v173_v61 = vpop.f32.mrf.mxu0  ;;  %v292_v62 = vpop.f32.mrf.mxu1 }
  0xd7   :  { %336 = vst [vmem:[%s676_s3 + $0x48] sm:$0xff] %v170_v59  ;;  %338 = vst [vmem:[%s676_s3 + $0x58] sm:$0xff] %v289_v60  ;;  %v174_v63 = vadd.f32 %v173_v61, %v521_v33  ;;  %v293_v0 = vadd.f32 %v292_v62, %v523_v34 }
  0xd8   :  { %v175_v1 = vpop.f32.mrf.mxu0  ;;  %v294_v2 = vpop.f32.mrf.mxu1 }
  0xd9   :  { %339 = vst [vmem:[%s676_s3 + $0x60] sm:$0xff] %v174_v63  ;;  %341 = vst [vmem:[%s676_s3 + $0x70] sm:$0xff] %v293_v0  ;;  %v176_v3 = vadd.f32 %v175_v1, %v525_v35  ;;  %v295_v4 = vadd.f32 %v294_v2, %v527_v36 }
  0xda   :  { %v179_v5 = vpop.f32.mrf.mxu0  ;;  %v298_v6 = vpop.f32.mrf.mxu1 }
  0xdb   :  { %340 = vst [vmem:[%s676_s3 + $0x68] sm:$0xff] %v176_v3  ;;  %342 = vst [vmem:[%s676_s3 + $0x78] sm:$0xff] %v295_v4  ;;  %v180_v7 = vadd.f32 %v179_v5, %v521_v33  ;;  %v299_v8 = vadd.f32 %v298_v6, %v523_v34 }
  0xdc   :  { %v181_v9 = vpop.f32.mrf.mxu0  ;;  %v300_v10 = vpop.f32.mrf.mxu1 }
  0xdd   :  { %343 = vst [vmem:[%s676_s3 + $0x80] sm:$0xff] %v180_v7  ;;  %345 = vst [vmem:[%s676_s3 + $0x90] sm:$0xff] %v299_v8  ;;  %v182_v11 = vadd.f32 %v181_v9, %v525_v35  ;;  %v301_v12 = vadd.f32 %v300_v10, %v527_v36 }
  0xde   :  { %v185_v13 = vpop.f32.mrf.mxu0  ;;  %v304_v14 = vpop.f32.mrf.mxu1 }
  0xdf   :  { %344 = vst [vmem:[%s676_s3 + $0x88] sm:$0xff] %v182_v11  ;;  %346 = vst [vmem:[%s676_s3 + $0x98] sm:$0xff] %v301_v12  ;;  %v186_v15 = vadd.f32 %v185_v13, %v521_v33  ;;  %v305_v16 = vadd.f32 %v304_v14, %v523_v34 }
  0xe0   :  { %v187_v17 = vpop.f32.mrf.mxu0  ;;  %v306_v18 = vpop.f32.mrf.mxu1 }
  0xe1   :  { %347 = vst [vmem:[%s676_s3 + $0xa0] sm:$0xff] %v186_v15  ;;  %349 = vst [vmem:[%s676_s3 + $0xb0] sm:$0xff] %v305_v16  ;;  %v188_v19 = vadd.f32 %v187_v17, %v525_v35  ;;  %v307_v20 = vadd.f32 %v306_v18, %v527_v36 }
  0xe2   :  { %v191_v21 = vpop.f32.mrf.mxu0  ;;  %v310_v22 = vpop.f32.mrf.mxu1 }
  0xe3   :  { %348 = vst [vmem:[%s676_s3 + $0xa8] sm:$0xff] %v188_v19  ;;  %350 = vst [vmem:[%s676_s3 + $0xb8] sm:$0xff] %v307_v20  ;;  %v192_v23 = vadd.f32 %v191_v21, %v521_v33  ;;  %v311_v24 = vadd.f32 %v310_v22, %v523_v34 }
  0xe4   :  { %v193_v25 = vpop.f32.mrf.mxu0  ;;  %v312_v26 = vpop.f32.mrf.mxu1 }
  0xe5   :  { %351 = vst [vmem:[%s676_s3 + $0xc0] sm:$0xff] %v192_v23  ;;  %353 = vst [vmem:[%s676_s3 + $0xd0] sm:$0xff] %v311_v24  ;;  %v194_v27 = vadd.f32 %v193_v25, %v525_v35  ;;  %v313_v28 = vadd.f32 %v312_v26, %v527_v36 }
  0xe6   :  { %v197_v29 = vpop.f32.mrf.mxu0  ;;  %v316_v30 = vpop.f32.mrf.mxu1 }
  0xe7   :  { %352 = vst [vmem:[%s676_s3 + $0xc8] sm:$0xff] %v194_v27  ;;  %354 = vst [vmem:[%s676_s3 + $0xd8] sm:$0xff] %v313_v28  ;;  %v198_v31 = vadd.f32 %v197_v29, %v521_v33  ;;  %v317_v32 = vadd.f32 %v316_v30, %v523_v34 }
  0xe8   :  { %v199_v37 = vpop.f32.mrf.mxu0  ;;  %v318_v38 = vpop.f32.mrf.mxu1 }
  0xe9   :  { %355 = vst [vmem:[%s676_s3 + $0xe0] sm:$0xff] %v198_v31  ;;  %357 = vst [vmem:[%s676_s3 + $0xf0] sm:$0xff] %v317_v32  ;;  %v200_v39 = vadd.f32 %v199_v37, %v525_v35  ;;  %v319_v40 = vadd.f32 %v318_v38, %v527_v36 }
  0xea   :  { %v203_v41 = vpop.f32.mrf.mxu0  ;;  %v322_v42 = vpop.f32.mrf.mxu1 }
  0xeb   :  { %356 = vst [vmem:[%s676_s3 + $0xe8] sm:$0xff] %v200_v39  ;;  %358 = vst [vmem:[%s676_s3 + $0xf8] sm:$0xff] %v319_v40  ;;  %v204_v43 = vadd.f32 %v203_v41, %v521_v33  ;;  %v323_v44 = vadd.f32 %v322_v42, %v523_v34 }
  0xec   :  { %v205_v45 = vpop.f32.mrf.mxu0  ;;  %v324_v46 = vpop.f32.mrf.mxu1 }
  0xed   :  { %359 = vst [vmem:[%s676_s3 + $0x100] sm:$0xff] %v204_v43  ;;  %361 = vst [vmem:[%s676_s3 + $0x110] sm:$0xff] %v323_v44  ;;  %v206_v47 = vadd.f32 %v205_v45, %v525_v35  ;;  %v325_v48 = vadd.f32 %v324_v46, %v527_v36 }
  0xef   :  { %360 = vst [vmem:[%s676_s3 + $0x108] sm:$0xff] %v206_v47  ;;  %362 = vst [vmem:[%s676_s3 + $0x118] sm:$0xff] %v325_v48 }

// kernel: decoder_rnn_forward.4
= control target key start
LH: loop header
LB: loop body
LE: loop exit
PB: predicated region body
PF: predicated region fallthrough
CT: control target
= control target key end

     0   :  { %v4040_v3 = vmov 0.0   ;;  %s4035_s1 = inlined_call_operand.vmem [shape: f32[128,512], index: 1, kind: input, shape index: {}]   ;;  %s4036_s0 = inlined_call_operand.vmem [shape: f32[9,8,512], index: 0, kind: input, shape index: {}]   ;;  %s4037_s2 = inlined_call_operand.vmem [shape: f32[9,8,128], index: 2, kind: output, shape index: {}]  }
   0x1   :  { %v2451_v0 = vld [vmem:[%s4035_s1 + $0x1e8] sm:$0xff]  ;;  %v2456_v1 = vld [vmem:[%s4035_s1 + $0x1e0] sm:$0xff]  ;;  %146 = vmatprep.mubr.f32.mxu0 %v4040_v3  ;;  %217 = vmatprep.mubr.f32.mxu1 %v4040_v3  ;;  %v2498_v9 = vld [vmem:[%s4035_s1 + $0x1f8] sm:$0xff] }
   0x2   :  { %4108 = vst [vmem:[#allocation4_spill] sm:$0xff] %v2451_v0  ;;  %v2461_v2 = vld [vmem:[%s4035_s1 + $0x1c8] sm:$0xff]  ;;  %82 = vmatprep.subr.mxu0 %v2451_v0  ;;  %v2469_v4 = vld [vmem:[%s4035_s1 + $0x1c0] sm:$0xff]  ;;  %4109 = vst [vmem:[#allocation5_spill] sm:$0xff] %v2498_v9  ;;  %153 = vmatprep.subr.mxu1 %v2498_v9 }
   0x3   :  { %83 = vmatpush1.msra.mxu0 %v2456_v1  ;;  %v2475_v5 = vld [vmem:[%s4035_s1 + $0x1a8] sm:$0xff]  ;;  %v2481_v6 = vld [vmem:[%s4035_s1 + $0x1a0] sm:$0xff]  ;;  %v2510_v11 = vld [vmem:[%s4035_s1 + $0x1f0] sm:$0xff] }
   0x4   :  { %84 = vmatprep.subr.mxu0 %v2461_v2  ;;  %v2487_v7 = vld [vmem:[%s4035_s1 + $0x188] sm:$0xff]  ;;  %v2493_v8 = vld [vmem:[%s4035_s1 + $0x180] sm:$0xff]  ;;  %154 = vmatpush1.msra.mxu1 %v2510_v11  ;;  %v2522_v13 = vld [vmem:[%s4035_s1 + $0x1d8] sm:$0xff] }
   0x5   :  { %85 = vmatpush1.msra.mxu0 %v2469_v4  ;;  %v2504_v10 = vld [vmem:[%s4035_s1 + $0x168] sm:$0xff]  ;;  %v2516_v12 = vld [vmem:[%s4035_s1 + $0x160] sm:$0xff]  ;;  %v2527_v14 = vld [vmem:[%s4035_s1 + $0x1d0] sm:$0xff]  ;;  %155 = vmatprep.subr.mxu1 %v2522_v13 }
   0x6   :  { %86 = vmatprep.subr.mxu0 %v2475_v5  ;;  %v2533_v15 = vld [vmem:[%s4035_s1 + $0x148] sm:$0xff]  ;;  %v2539_v16 = vld [vmem:[%s4035_s1 + $0x1b8] sm:$0xff]  ;;  %v2545_v17 = vld [vmem:[%s4035_s1 + $0x140] sm:$0xff]  ;;  %156 = vmatpush1.msra.mxu1 %v2527_v14 }
   0x7   :  { %87 = vmatpush1.msra.mxu0 %v2481_v6  ;;  %v2551_v18 = vld [vmem:[%s4035_s1 + $0x1b0] sm:$0xff]  ;;  %v2556_v19 = vld [vmem:[%s4035_s1 + $0x198] sm:$0xff]  ;;  %v2562_v20 = vld [vmem:[%s4035_s1 + $0x128] sm:$0xff]  ;;  %157 = vmatprep.subr.mxu1 %v2539_v16 }
   0x8   :  { %88 = vmatprep.subr.mxu0 %v2487_v7  ;;  %v2568_v21 = vld [vmem:[%s4035_s1 + $0x190] sm:$0xff]  ;;  %v2574_v22 = vld [vmem:[%s4035_s1 + $0x120] sm:$0xff]  ;;  %158 = vmatpush1.msra.mxu1 %v2551_v18  ;;  %v2580_v23 = vld [vmem:[%s4035_s1 + $0x178] sm:$0xff] }
   0x9   :  { %89 = vmatpush1.msra.mxu0 %v2493_v8  ;;  %v2586_v24 = vld [vmem:[%s4035_s1 + $0x108] sm:$0xff]  ;;  %159 = vmatprep.subr.mxu1 %v2556_v19  ;;  %v2592_v25 = vld [vmem:[%s4035_s1 + $0x170] sm:$0xff]  ;;  %v2598_v26 = vld [vmem:[%s4035_s1 + $0x100] sm:$0xff] }
   0xa   :  { %90 = vmatprep.subr.mxu0 %v2504_v10  ;;  %160 = vmatpush1.msra.mxu1 %v2568_v21  ;;  %v2604_v27 = vld [vmem:[%s4035_s1 + $0x158] sm:$0xff]  ;;  %v2610_v28 = vld [vmem:[%s4035_s1 + $0xe8] sm:$0xff]  ;;  %v2616_v29 = vld [vmem:[%s4035_s1 + $0x150] sm:$0xff] }
   0xb   :  { %91 = vmatpush1.msra.mxu0 %v2516_v12  ;;  %161 = vmatprep.subr.mxu1 %v2580_v23  ;;  %v2622_v30 = vld [vmem:[%s4035_s1 + $0xe0] sm:$0xff]  ;;  %v2628_v31 = vld [vmem:[%s4035_s1 + $0x138] sm:$0xff]  ;;  %v2634_v32 = vld [vmem:[%s4035_s1 + $0xc8] sm:$0xff] }
   0xc   :  { %92 = vmatprep.subr.mxu0 %v2533_v15  ;;  %162 = vmatpush1.msra.mxu1 %v2592_v25  ;;  %v2640_v33 = vld [vmem:[%s4035_s1 + $0x130] sm:$0xff]  ;;  %v2646_v34 = vld [vmem:[%s4035_s1 + $0xc0] sm:$0xff]  ;;  %v2652_v35 = vld [vmem:[%s4035_s1 + $0x118] sm:$0xff] }
   0xd   :  { %93 = vmatpush1.msra.mxu0 %v2545_v17  ;;  %163 = vmatprep.subr.mxu1 %v2604_v27  ;;  %v2658_v36 = vld [vmem:[%s4035_s1 + $0xa8] sm:$0xff]  ;;  %v2664_v37 = vld [vmem:[%s4035_s1 + $0x110] sm:$0xff]  ;;  %v2670_v38 = vld [vmem:[%s4035_s1 + $0xa0] sm:$0xff] }
   0xe   :  { %94 = vmatprep.subr.mxu0 %v2562_v20  ;;  %164 = vmatpush1.msra.mxu1 %v2616_v29  ;;  %v2676_v39 = vld [vmem:[%s4035_s1 + $0xf8] sm:$0xff]  ;;  %v2682_v40 = vld [vmem:[%s4035_s1 + $0x88] sm:$0xff]  ;;  %v2688_v41 = vld [vmem:[%s4035_s1 + $0xf0] sm:$0xff] }
   0xf   :  { %95 = vmatpush1.msra.mxu0 %v2574_v22  ;;  %165 = vmatprep.subr.mxu1 %v2628_v31  ;;  %v2694_v42 = vld [vmem:[%s4035_s1 + $0x80] sm:$0xff]  ;;  %v2700_v43 = vld [vmem:[%s4035_s1 + $0xd8] sm:$0xff]  ;;  %v2706_v44 = vld [vmem:[%s4035_s1 + $0x68] sm:$0xff] }
  0x10   :  { %96 = vmatprep.subr.mxu0 %v2586_v24  ;;  %166 = vmatpush1.msra.mxu1 %v2640_v33  ;;  %4110 = vst [vmem:[#allocation6_spill] sm:$0xff] %v2706_v44  ;;  %v2712_v45 = vld [vmem:[%s4035_s1 + $0xd0] sm:$0xff]  ;;  %v2718_v46 = vld [vmem:[%s4035_s1 + $0x60] sm:$0xff]  ;;  %v2724_v47 = vld [vmem:[%s4035_s1 + $0xb8] sm:$0xff] }
  0x11   :  { %97 = vmatpush1.msra.mxu0 %v2598_v26  ;;  %167 = vmatprep.subr.mxu1 %v2652_v35  ;;  %4111 = vst [vmem:[#allocation7_spill] sm:$0xff] %v2718_v46  ;;  %v2730_v48 = vld [vmem:[%s4035_s1 + $0x48] sm:$0xff]  ;;  %v2736_v49 = vld [vmem:[%s4035_s1 + $0xb0] sm:$0xff]  ;;  %v2742_v50 = vld [vmem:[%s4035_s1 + $0x40] sm:$0xff] }
  0x12   :  { %98 = vmatprep.subr.mxu0 %v2610_v28  ;;  %168 = vmatpush1.msra.mxu1 %v2664_v37  ;;  %4112 = vst [vmem:[#allocation8_spill] sm:$0xff] %v2730_v48  ;;  %4113 = vst [vmem:[#allocation9_spill] sm:$0xff] %v2742_v50  ;;  %v2748_v51 = vld [vmem:[%s4035_s1 + $0x98] sm:$0xff]  ;;  %v2754_v52 = vld [vmem:[%s4035_s1 + $0x28] sm:$0xff] }
  0x13   :  { %99 = vmatpush1.msra.mxu0 %v2622_v30  ;;  %169 = vmatprep.subr.mxu1 %v2676_v39  ;;  %4114 = vst [vmem:[#allocation10_spill] sm:$0xff] %v2754_v52  ;;  %v2760_v53 = vld [vmem:[%s4035_s1 + $0x90] sm:$0xff]  ;;  %v2766_v54 = vld [vmem:[%s4035_s1 + $0x20] sm:$0xff]  ;;  %v2772_v55 = vld [vmem:[%s4035_s1 + $0x78] sm:$0xff] }
  0x14   :  { %100 = vmatprep.subr.mxu0 %v2634_v32  ;;  %170 = vmatpush1.msra.mxu1 %v2688_v41  ;;  %4115 = vst [vmem:[#allocation11_spill] sm:$0xff] %v2760_v53  ;;  %4116 = vst [vmem:[#allocation12_spill] sm:$0xff] %v2766_v54  ;;  %v2778_v56 = vld [vmem:[%s4035_s1 + $0x8] sm:$0xff]  ;;  %v2784_v57 = vld [vmem:[%s4035_s1 + $0x70] sm:$0xff] }
  0x15   :  { %101 = vmatpush1.msra.mxu0 %v2646_v34  ;;  %171 = vmatprep.subr.mxu1 %v2700_v43  ;;  %4117 = vst [vmem:[#allocation13_spill] sm:$0xff] %v2772_v55  ;;  %4118 = vst [vmem:[#allocation14_spill] sm:$0xff] %v2778_v56  ;;  %v2790_v58 = vld [vmem:[%s4035_s1] sm:$0xff]  ;;  %v2796_v59 = vld [vmem:[%s4035_s1 + $0x58] sm:$0xff] }
  0x16   :  { %102 = vmatprep.subr.mxu0 %v2658_v36  ;;  %172 = vmatpush1.msra.mxu1 %v2712_v45  ;;  %4119 = vst [vmem:[#allocation15_spill] sm:$0xff] %v2784_v57  ;;  %4120 = vst [vmem:[#allocation16_spill] sm:$0xff] %v2790_v58  ;;  %v2803_v60 = vld [vmem:[%s4035_s1 + $0x50] sm:$0xff]  ;;  %v2810_v61 = vld [vmem:[%s4035_s1 + $0x38] sm:$0xff] }
  0x17   :  { %103 = vmatpush1.msra.mxu0 %v2670_v38  ;;  %173 = vmatprep.subr.mxu1 %v2724_v47  ;;  %4121 = vst [vmem:[#allocation17_spill] sm:$0xff] %v2796_v59  ;;  %4122 = vst [vmem:[#allocation18_spill] sm:$0xff] %v2803_v60  ;;  %v2817_v62 = vld [vmem:[%s4035_s1 + $0x30] sm:$0xff]  ;;  %v2824_v63 = vld [vmem:[%s4035_s1 + $0x18] sm:$0xff] }
  0x18   :  { %104 = vmatprep.subr.mxu0 %v2682_v40  ;;  %174 = vmatpush1.msra.mxu1 %v2736_v49  ;;  %4123 = vst [vmem:[#allocation19_spill] sm:$0xff] %v2810_v61  ;;  %4124 = vst [vmem:[#allocation20_spill] sm:$0xff] %v2817_v62 }
  0x19   :  { %105 = vmatpush1.msra.mxu0 %v2694_v42  ;;  %175 = vmatprep.subr.mxu1 %v2748_v51  ;;  %4125 = vst [vmem:[#allocation21_spill] sm:$0xff] %v2824_v63 }
  0x1a   :  { %106 = vmatprep.subr.mxu0 %v2706_v44  ;;  %176 = vmatpush1.msra.mxu1 %v2760_v53 }
  0x1b   :  { %107 = vmatpush1.msra.mxu0 %v2718_v46  ;;  %177 = vmatprep.subr.mxu1 %v2772_v55 }
  0x1c   :  { %108 = vmatprep.subr.mxu0 %v2730_v48  ;;  %178 = vmatpush1.msra.mxu1 %v2784_v57 }
  0x1d   :  { %109 = vmatpush1.msra.mxu0 %v2742_v50  ;;  %179 = vmatprep.subr.mxu1 %v2796_v59 }
  0x1e   :  { %110 = vmatprep.subr.mxu0 %v2754_v52  ;;  %180 = vmatpush1.msra.mxu1 %v2803_v60 }
  0x1f   :  { %111 = vmatpush1.msra.mxu0 %v2766_v54  ;;  %181 = vmatprep.subr.mxu1 %v2810_v61 }
  0x20   :  { %112 = vmatprep.subr.mxu0 %v2778_v56  ;;  %182 = vmatpush1.msra.mxu1 %v2817_v62 }
  0x21   :  { %113 = vmatpush1.msra.mxu0 %v2790_v58  ;;  %v2830_v58 = vld [vmem:[%s4035_s1 + $0x10] sm:$0xff]  ;;  %183 = vmatprep.subr.mxu1 %v2824_v63 }
  0x22   :  { %147 = vmatmul.mubr.f32.vlgmr.msra.gmra.mxu0 %v4040_v3  ;;  %4126 = vst [vmem:[#allocation22_spill] sm:$0xff] %v2830_v58  ;;  %326 = vmatprep.subr.mxu0 %v2451_v0 }
  0x23   :  { %327 = vmatpush1.msra.mxu0 %v2456_v1  ;;  %184 = vmatpush1.msra.mxu1 %v2830_v58 }
  0x24   :  { %328 = vmatprep.subr.mxu0 %v2461_v2  ;;  %218 = vmatmul.mubr.f32.vlgmr.msra.gmra.mxu1 %v4040_v3  ;;  %v4127_v3 = vld [vmem:[#allocation16_spill] sm:$0xff] }
  0x25   :  { %329 = vmatpush1.msra.mxu0 %v2469_v4  ;;  %397 = vmatprep.subr.mxu1 %v2498_v9 }
  0x26   :  { %398 = vmatpush1.msra.mxu1 %v2510_v11  ;;  %330 = vmatprep.subr.mxu0 %v2475_v5 }
  0x27   :  { %399 = vmatprep.subr.mxu1 %v2522_v13  ;;  %331 = vmatpush1.msra.mxu0 %v2481_v6 }
  0x28   :  { %400 = vmatpush1.msra.mxu1 %v2527_v14  ;;  %332 = vmatprep.subr.mxu0 %v2487_v7 }
  0x29   :  { %401 = vmatprep.subr.mxu1 %v2539_v16  ;;  %333 = vmatpush1.msra.mxu0 %v2493_v8 }
  0x2a   :  { %402 = vmatpush1.msra.mxu1 %v2551_v18  ;;  %334 = vmatprep.subr.mxu0 %v2504_v10 }
  0x2b   :  { %403 = vmatprep.subr.mxu1 %v2556_v19  ;;  %335 = vmatpush1.msra.mxu0 %v2516_v12 }
  0x2c   :  { %404 = vmatpush1.msra.mxu1 %v2568_v21  ;;  %336 = vmatprep.subr.mxu0 %v2533_v15 }
  0x2d   :  { %405 = vmatprep.subr.mxu1 %v2580_v23  ;;  %337 = vmatpush1.msra.mxu0 %v2545_v17 }
  0x2e   :  { %406 = vmatpush1.msra.mxu1 %v2592_v25  ;;  %338 = vmatprep.subr.mxu0 %v2562_v20 }
  0x2f   :  { %407 = vmatprep.subr.mxu1 %v2604_v27  ;;  %339 = vmatpush1.msra.mxu0 %v2574_v22 }
  0x30   :  { %408 = vmatpush1.msra.mxu1 %v2616_v29  ;;  %340 = vmatprep.subr.mxu0 %v2586_v24 }
  0x31   :  { %409 = vmatprep.subr.mxu1 %v2628_v31  ;;  %341 = vmatpush1.msra.mxu0 %v2598_v26 }
  0x32   :  { %410 = vmatpush1.msra.mxu1 %v2640_v33  ;;  %342 = vmatprep.subr.mxu0 %v2610_v28 }
  0x33   :  { %411 = vmatprep.subr.mxu1 %v2652_v35  ;;  %343 = vmatpush1.msra.mxu0 %v2622_v30 }
  0x34   :  { %412 = vmatpush1.msra.mxu1 %v2664_v37  ;;  %344 = vmatprep.subr.mxu0 %v2634_v32 }
  0x35   :  { %413 = vmatprep.subr.mxu1 %v2676_v39  ;;  %345 = vmatpush1.msra.mxu0 %v2646_v34 }
  0x36   :  { %414 = vmatpush1.msra.mxu1 %v2688_v41  ;;  %346 = vmatprep.subr.mxu0 %v2658_v36 }
  0x37   :  { %415 = vmatprep.subr.mxu1 %v2700_v43  ;;  %347 = vmatpush1.msra.mxu0 %v2670_v38 }
  0x38   :  { %416 = vmatpush1.msra.mxu1 %v2712_v45  ;;  %348 = vmatprep.subr.mxu0 %v2682_v40 }
  0x39   :  { %417 = vmatprep.subr.mxu1 %v2724_v47  ;;  %349 = vmatpush1.msra.mxu0 %v2694_v42 }
  0x3a   :  { %418 = vmatpush1.msra.mxu1 %v2736_v49  ;;  %350 = vmatprep.subr.mxu0 %v2706_v44 }
  0x3b   :  { %419 = vmatprep.subr.mxu1 %v2748_v51  ;;  %351 = vmatpush1.msra.mxu0 %v2718_v46 }
  0x3c   :  { %420 = vmatpush1.msra.mxu1 %v2760_v53  ;;  %352 = vmatprep.subr.mxu0 %v2730_v48  ;;  %v4128_v48 = vmov 0.0  }
  0x3d   :  { %421 = vmatprep.subr.mxu1 %v2772_v55  ;;  %353 = vmatpush1.msra.mxu0 %v2742_v50 }
  0x3e   :  { %422 = vmatpush1.msra.mxu1 %v2784_v57  ;;  %354 = vmatprep.subr.mxu0 %v2754_v52 }
  0x3f   :  { %423 = vmatprep.subr.mxu1 %v2796_v59  ;;  %355 = vmatpush1.msra.mxu0 %v2766_v54 }
  0x40   :  { %424 = vmatpush1.msra.mxu1 %v2803_v60  ;;  %356 = vmatprep.subr.mxu0 %v2778_v56  ;;  %v13_v56 = vld [vmem:[%s4036_s0] sm:$0xff]  ;;  %v15_v60 = vld [vmem:[%s4036_s0 + $0x10] sm:$0xff] }
  0x41   :  { %425 = vmatprep.subr.mxu1 %v2810_v61  ;;  %357 = vmatpush1.msra.mxu0 %v4127_v3  ;;  %v14_v3 = vld [vmem:[%s4036_s0 + $0x8] sm:$0xff] }
  0x42   :  { %426 = vmatpush1.msra.mxu1 %v2817_v62  ;;  %390 = vmatprep.mubr.f32.mxu0 %v4128_v48 }
  0x43   :  { %427 = vmatprep.subr.mxu1 %v2824_v63  ;;  %461 = vmatprep.mubr.f32.mxu1 %v4128_v48 }
  0x44   :  { %428 = vmatpush1.msra.mxu1 %v2830_v58  ;;  %571 = vmatprep.subr.mxu0 %v2451_v0 }
  0x45   :  { %642 = vmatprep.subr.mxu1 %v2498_v9  ;;  %v16_v9 = vld [vmem:[%s4036_s0 + $0x18] sm:$0xff] }
  0xe2   :  { %v148_v54 = vpop.f32.mrf.mxu0 }
  0xe3   :  { %v224_v62 = vadd.f32 %v148_v54, %v13_v56 }
  0xe4   :  { %v150_v61 = vpop.f32.mrf.mxu0  ;;  %v219_v58 = vpop.f32.mrf.mxu1 }
  0xe5   :  { %v2220_v63 = vmul.f32 -1.442695, %v224_v62  ;;  %v225_v52 = vadd.f32 %v150_v61, %v14_v3  ;;  %v226_v59 = vadd.f32 %v219_v58, %v15_v60  ;;  %v4145_v58 = vmov 0.0   ;;  %v4147_v60 = vld [vmem:[#allocation4_spill] sm:$0xff] }
  0xe6   :  { %v221_v0 = vpop.f32.mrf.mxu1 }
  0xe7   :  { %2288 = vpow2.f32 %v2220_v63  ;;  %v2221_v48 = vmul.f32 -1.442695, %v225_v52  ;;  %v227_v50 = vadd.f32 %v221_v0, %v16_v9 }
  0xe9   :  { %2290 = vpow2.f32 %v2221_v48  ;;  %v2222_v57 = vmul.f32 -1.442695, %v227_v50 }
  0xea   :  { %2292 = vtanh.f32 %v226_v59  ;;  %v4146_v59 = vld [vmem:[#allocation22_spill] sm:$0xff] }
  0xeb   :  { %2294 = vpow2.f32 %v2222_v57  ;;  %v4144_v57 = vld [vmem:[#allocation16_spill] sm:$0xff] }
  0xf4   :  { %v2289_v54 = vpop.eup %2288 }
  0xf5   :  { %v231_v56 = vadd.f32 1.0, %v2289_v54  ;;  %v4148_v54 = vld [vmem:[#allocation5_spill] sm:$0xff] }
  0xf6   :  { %v2291_v3 = vpop.eup %2290 }
  0xf7   :  { %2296 = vrcp.f32 %v231_v56  ;;  %v237_v52 = vadd.f32 1.0, %v2291_v3  ;;  %v2293_v48 = vpop.eup %2292  ;;  %v2223_v56 = vld [vmem:[%s4036_s0 + $0x20] sm:$0xff] }
  0xf8   :  { %v2295_v61 = vpop.eup %2294 }
  0xf9   :  { %2298 = vrcp.f32 %v237_v52  ;;  %v244_v46 = vadd.f32 1.0, %v2295_v61  ;;  %v2224_v52 = vld [vmem:[%s4036_s0 + $0x28] sm:$0xff] }
  0xfb   :  { %2300 = vrcp.f32 %v244_v46  ;;  %v4142_v46 = vld [vmem:[#allocation14_spill] sm:$0xff] }
 0x104   :  { %v2297_v62 = vpop.eup %2296 }
 0x105   :  { %v249_v44 = vmul.f32 %v2297_v62, %v2293_v48 }
 0x106   :  { %v2299_v63 = vpop.eup %2298 }
 0x107   :  { %v248_v55 = vmul.f32 0.0, %v2299_v63 }
 0x108   :  { %v2301_v0 = vpop.eup %2300 }
 0x109   :  { %v2916_v53 = vadd.f32 %v249_v44, %v248_v55  ;;  %v4141_v44 = vld [vmem:[#allocation20_spill] sm:$0xff]  ;;  %v4143_v55 = vld [vmem:[#allocation21_spill] sm:$0xff] }
 0x10b   :  { %2302 = vtanh.f32 %v2916_v53 }
 0x118   :  { %v2303_v9 = vpop.eup %2302 }
 0x119   :  { %v252_v50 = vmul.f32 %v2303_v9, %v2301_v0 }
 0x11b   :  { %255 = vst [vmem:[%s4037_s2] sm:$0xff] %v252_v50  ;;  %391 = vmatmul.mubr.f32.vlgmr.msra.gmra.mxu0 %v252_v50  ;;  %462 = vmatmul.mubr.f32.vlgmr.msra.gmra.mxu1 %v252_v50  ;;  %v2226_v50 = vld [vmem:[%s4036_s0 + $0x38] sm:$0xff] }
 0x11c   :  { %572 = vmatpush1.msra.mxu0 %v2456_v1  ;;  %643 = vmatpush1.msra.mxu1 %v2510_v11 }
 0x11d   :  { %573 = vmatprep.subr.mxu0 %v2461_v2  ;;  %644 = vmatprep.subr.mxu1 %v2522_v13 }
 0x11e   :  { %574 = vmatpush1.msra.mxu0 %v2469_v4  ;;  %645 = vmatpush1.msra.mxu1 %v2527_v14 }
 0x11f   :  { %575 = vmatprep.subr.mxu0 %v2475_v5  ;;  %646 = vmatprep.subr.mxu1 %v2539_v16 }
 0x120   :  { %576 = vmatpush1.msra.mxu0 %v2481_v6  ;;  %647 = vmatpush1.msra.mxu1 %v2551_v18 }
 0x121   :  { %577 = vmatprep.subr.mxu0 %v2487_v7  ;;  %648 = vmatprep.subr.mxu1 %v2556_v19 }
 0x122   :  { %578 = vmatpush1.msra.mxu0 %v2493_v8  ;;  %649 = vmatpush1.msra.mxu1 %v2568_v21 }
 0x123   :  { %579 = vmatprep.subr.mxu0 %v2504_v10  ;;  %650 = vmatprep.subr.mxu1 %v2580_v23 }
 0x124   :  { %580 = vmatpush1.msra.mxu0 %v2516_v12  ;;  %651 = vmatpush1.msra.mxu1 %v2592_v25 }
 0x125   :  { %581 = vmatprep.subr.mxu0 %v2533_v15  ;;  %652 = vmatprep.subr.mxu1 %v2604_v27 }
 0x126   :  { %582 = vmatpush1.msra.mxu0 %v2545_v17  ;;  %653 = vmatpush1.msra.mxu1 %v2616_v29 }
 0x127   :  { %583 = vmatprep.subr.mxu0 %v2562_v20  ;;  %654 = vmatprep.subr.mxu1 %v2628_v31  ;;  %v4129_v20 = vld [vmem:[#allocation11_spill] sm:$0xff] }
 0x128   :  { %584 = vmatpush1.msra.mxu0 %v2574_v22  ;;  %655 = vmatpush1.msra.mxu1 %v2640_v33  ;;  %v4130_v22 = vld [vmem:[#allocation6_spill] sm:$0xff] }
 0x129   :  { %585 = vmatprep.subr.mxu0 %v2586_v24  ;;  %656 = vmatprep.subr.mxu1 %v2652_v35  ;;  %v4131_v24 = vld [vmem:[#allocation13_spill] sm:$0xff] }
 0x12a   :  { %586 = vmatpush1.msra.mxu0 %v2598_v26  ;;  %657 = vmatpush1.msra.mxu1 %v2664_v37  ;;  %v4132_v26 = vld [vmem:[#allocation7_spill] sm:$0xff] }
 0x12b   :  { %587 = vmatprep.subr.mxu0 %v2610_v28  ;;  %658 = vmatprep.subr.mxu1 %v2676_v39  ;;  %v4133_v28 = vld [vmem:[#allocation15_spill] sm:$0xff] }
 0x12c   :  { %588 = vmatpush1.msra.mxu0 %v2622_v30  ;;  %659 = vmatpush1.msra.mxu1 %v2688_v41  ;;  %v4134_v30 = vld [vmem:[#allocation8_spill] sm:$0xff] }
 0x12d   :  { %589 = vmatprep.subr.mxu0 %v2634_v32  ;;  %660 = vmatprep.subr.mxu1 %v2700_v43  ;;  %v4135_v32 = vld [vmem:[#allocation17_spill] sm:$0xff] }
 0x12e   :  { %590 = vmatpush1.msra.mxu0 %v2646_v34  ;;  %661 = vmatpush1.msra.mxu1 %v2712_v45  ;;  %v4136_v34 = vld [vmem:[#allocation9_spill] sm:$0xff] }
 0x12f   :  { %591 = vmatprep.subr.mxu0 %v2658_v36  ;;  %662 = vmatprep.subr.mxu1 %v2724_v47  ;;  %v4137_v36 = vld [vmem:[#allocation18_spill] sm:$0xff] }
 0x130   :  { %592 = vmatpush1.msra.mxu0 %v2670_v38  ;;  %663 = vmatpush1.msra.mxu1 %v2736_v49  ;;  %v4138_v38 = vld [vmem:[#allocation10_spill] sm:$0xff] }
 0x131   :  { %593 = vmatprep.subr.mxu0 %v2682_v40  ;;  %664 = vmatprep.subr.mxu1 %v2748_v51  ;;  %v4139_v40 = vld [vmem:[#allocation19_spill] sm:$0xff] }
 0x132   :  { %594 = vmatpush1.msra.mxu0 %v2694_v42  ;;  %665 = vmatpush1.msra.mxu1 %v4129_v20  ;;  %v4140_v42 = vld [vmem:[#allocation12_spill] sm:$0xff] }
 0x133   :  { %595 = vmatprep.subr.mxu0 %v4130_v22  ;;  %666 = vmatprep.subr.mxu1 %v4131_v24 }
 0x134   :  { %596 = vmatpush1.msra.mxu0 %v4132_v26  ;;  %667 = vmatpush1.msra.mxu1 %v4133_v28 }
 0x135   :  { %597 = vmatprep.subr.mxu0 %v4134_v30  ;;  %668 = vmatprep.subr.mxu1 %v4135_v32  ;;  %v2225_v30 = vld [vmem:[%s4036_s0 + $0x30] sm:$0xff] }
 0x136   :  { %598 = vmatpush1.msra.mxu0 %v4136_v34  ;;  %669 = vmatpush1.msra.mxu1 %v4137_v36 }
 0x137   :  { %599 = vmatprep.subr.mxu0 %v4138_v38  ;;  %670 = vmatprep.subr.mxu1 %v4139_v40 }
 0x138   :  { %600 = vmatpush1.msra.mxu0 %v4140_v42  ;;  %671 = vmatpush1.msra.mxu1 %v4141_v44 }
 0x139   :  { %601 = vmatprep.subr.mxu0 %v4142_v46  ;;  %672 = vmatprep.subr.mxu1 %v4143_v55 }
 0x13a   :  { %602 = vmatpush1.msra.mxu0 %v4144_v57  ;;  %635 = vmatprep.mubr.f32.mxu0 %v4145_v58 }
 0x13b   :  { %673 = vmatpush1.msra.mxu1 %v4146_v59  ;;  %706 = vmatprep.mubr.f32.mxu1 %v4145_v58 }
 0x13c   :  { %816 = vmatprep.subr.mxu0 %v4147_v60  ;;  %887 = vmatprep.subr.mxu1 %v4148_v54 }
 0x1db   :  { %v392_v3 = vpop.f32.mrf.mxu0  ;;  %v463_v0 = vpop.f32.mrf.mxu1 }
 0x1dc   :  { %v468_v48 = vadd.f32 %v2223_v56, %v392_v3  ;;  %v470_v42 = vadd.f32 %v2225_v30, %v463_v0 }
 0x1dd   :  { %v394_v61 = vpop.f32.mrf.mxu0  ;;  %v465_v22 = vpop.f32.mrf.mxu1 }
 0x1de   :  { %v2227_v62 = vmul.f32 -1.442695, %v468_v48  ;;  %v469_v63 = vadd.f32 %v2224_v52, %v394_v61  ;;  %v471_v26 = vadd.f32 %v2226_v50, %v465_v22 }
 0x1e0   :  { %2304 = vpow2.f32 %v2227_v62  ;;  %v2228_v9 = vmul.f32 -1.442695, %v469_v63  ;;  %v2229_v34 = vmul.f32 -1.442695, %v471_v26 }
 0x1e2   :  { %2306 = vpow2.f32 %v2228_v9 }
 0x1e3   :  { %2308 = vpow2.f32 %v2229_v34 }
 0x1ed   :  { %v2305_v38 = vpop.eup %2304 }
 0x1ee   :  { %v475_v46 = vadd.f32 1.0, %v2305_v38 }
 0x1ef   :  { %v2307_v57 = vpop.eup %2306 }
 0x1f0   :  { %2310 = vrcp.f32 %v475_v46  ;;  %v481_v60 = vadd.f32 1.0, %v2307_v57  ;;  %v2309_v54 = vpop.eup %2308  ;;  %v3195_v57 = vld [vmem:[%s4035_s1 + $0x1e8] sm:$0xff] }
 0x1f1   :  { %2312 = vtanh.f32 %v470_v42  ;;  %v488_v48 = vadd.f32 1.0, %v2309_v54  ;;  %4157 = vst [vmem:[#allocation18_spill] sm:$0xff] %v3195_v57  ;;  %v3207_v54 = vld [vmem:[%s4035_s1 + $0x1e0] sm:$0xff] }
 0x1f2   :  { %2314 = vrcp.f32 %v481_v60  ;;  %v3200_v60 = vld [vmem:[%s4035_s1 + $0x1f8] sm:$0xff] }
 0x1f3   :  { %2316 = vrcp.f32 %v488_v48  ;;  %4158 = vst [vmem:[#allocation10_spill] sm:$0xff] %v3200_v60  ;;  %v3231_v48 = vld [vmem:[%s4035_s1 + $0x1c0] sm:$0xff] }
 0x1fd   :  { %v2311_v56 = vpop.eup %2310 }
 0x1fe   :  { %v2313_v3 = vpop.eup %2312 }
 0x1ff   :  { %v2315_v52 = vpop.eup %2314  ;;  %v493_v61 = vmul.f32 %v2313_v3, %v2311_v56  ;;  %v3212_v56 = vld [vmem:[%s4035_s1 + $0x1f0] sm:$0xff]  ;;  %v3219_v3 = vld [vmem:[%s4035_s1 + $0x1c8] sm:$0xff] }
 0x200   :  { %v492_v62 = vmul.f32 %v2315_v52, %v2916_v53  ;;  %v2317_v0 = vpop.eup %2316  ;;  %v3224_v52 = vld [vmem:[%s4035_s1 + $0x1d8] sm:$0xff] }
 0x202   :  { %v3001_v63 = vadd.f32 %v493_v61, %v492_v62  ;;  %v3236_v61 = vld [vmem:[%s4035_s1 + $0x1d0] sm:$0xff]  ;;  %v3243_v62 = vld [vmem:[%s4035_s1 + $0x1a8] sm:$0xff] }
 0x204   :  { %2318 = vtanh.f32 %v3001_v63 }
 0x211   :  { %v2319_v9 = vpop.eup %2318 }
 0x212   :  { %v496_v50 = vmul.f32 %v2319_v9, %v2317_v0  ;;  %v3255_v0 = vld [vmem:[%s4035_s1 + $0x1a0] sm:$0xff]  ;;  %v3260_v9 = vld [vmem:[%s4035_s1 + $0x1b0] sm:$0xff] }
 0x214   :  { %2230 = vst [vmem:[%s4037_s2 + $0x8] sm:$0xff] %v496_v50  ;;  %636 = vmatmul.mubr.f32.vlgmr.msra.gmra.mxu0 %v496_v50  ;;  %707 = vmatmul.mubr.f32.vlgmr.msra.gmra.mxu1 %v496_v50  ;;  %v3267_v50 = vld [vmem:[%s4035_s1 + $0x188] sm:$0xff] }
 0x215   :  { %817 = vmatpush1.msra.mxu0 %v2456_v1  ;;  %888 = vmatpush1.msra.mxu1 %v2510_v11  ;;  %v3054_v1 = vld [vmem:[%s4035_s1 + $0x128] sm:$0xff] }
 0x216   :  { %818 = vmatprep.subr.mxu0 %v2461_v2  ;;  %889 = vmatprep.subr.mxu1 %v2522_v13  ;;  %v3060_v2 = vld [vmem:[%s4035_s1 + $0x120] sm:$0xff]  ;;  %v3100_v11 = vld [vmem:[%s4035_s1 + $0xa8] sm:$0xff] }
 0x217   :  { %819 = vmatpush1.msra.mxu0 %v2469_v4  ;;  %890 = vmatpush1.msra.mxu1 %v2527_v14  ;;  %v3066_v4 = vld [vmem:[%s4035_s1 + $0x108] sm:$0xff]  ;;  %v3118_v14 = vld [vmem:[%s4035_s1 + $0x80] sm:$0xff] }
 0x218   :  { %820 = vmatprep.subr.mxu0 %v2475_v5  ;;  %891 = vmatprep.subr.mxu1 %v2539_v16  ;;  %v3071_v5 = vld [vmem:[%s4035_s1 + $0x100] sm:$0xff]  ;;  %v3112_v13 = vld [vmem:[%s4035_s1 + $0x88] sm:$0xff] }
 0x219   :  { %821 = vmatpush1.msra.mxu0 %v2481_v6  ;;  %892 = vmatpush1.msra.mxu1 %v2551_v18  ;;  %v3076_v6 = vld [vmem:[%s4035_s1 + $0xe8] sm:$0xff]  ;;  %v3130_v16 = vld [vmem:[%s4035_s1 + $0x60] sm:$0xff] }
 0x21a   :  { %822 = vmatprep.subr.mxu0 %v2487_v7  ;;  %893 = vmatprep.subr.mxu1 %v2556_v19  ;;  %v3082_v7 = vld [vmem:[%s4035_s1 + $0xe0] sm:$0xff]  ;;  %4150 = vst [vmem:[#allocation6_spill] sm:$0xff] %v3130_v16  ;;  %v3148_v19 = vld [vmem:[%s4035_s1 + $0x28] sm:$0xff] }
 0x21b   :  { %823 = vmatpush1.msra.mxu0 %v2493_v8  ;;  %894 = vmatpush1.msra.mxu1 %v2568_v21  ;;  %v3088_v8 = vld [vmem:[%s4035_s1 + $0xc8] sm:$0xff]  ;;  %v3142_v18 = vld [vmem:[%s4035_s1 + $0x40] sm:$0xff]  ;;  %4153 = vst [vmem:[#allocation15_spill] sm:$0xff] %v3148_v19 }
 0x21c   :  { %824 = vmatprep.subr.mxu0 %v2504_v10  ;;  %895 = vmatprep.subr.mxu1 %v2580_v23  ;;  %v3094_v10 = vld [vmem:[%s4035_s1 + $0xc0] sm:$0xff]  ;;  %4152 = vst [vmem:[#allocation7_spill] sm:$0xff] %v3142_v18  ;;  %v3160_v23 = vld [vmem:[%s4035_s1 + $0x8] sm:$0xff] }
 0x21d   :  { %825 = vmatpush1.msra.mxu0 %v2516_v12  ;;  %896 = vmatpush1.msra.mxu1 %v2592_v25  ;;  %v3106_v12 = vld [vmem:[%s4035_s1 + $0xa0] sm:$0xff]  ;;  %4155 = vst [vmem:[#allocation17_spill] sm:$0xff] %v3160_v23 }
 0x21e   :  { %826 = vmatprep.subr.mxu0 %v2533_v15  ;;  %897 = vmatprep.subr.mxu1 %v2604_v27  ;;  %v3124_v15 = vld [vmem:[%s4035_s1 + $0x68] sm:$0xff]  ;;  %v3154_v21 = vld [vmem:[%s4035_s1 + $0x20] sm:$0xff] }
 0x21f   :  { %827 = vmatpush1.msra.mxu0 %v2545_v17  ;;  %898 = vmatpush1.msra.mxu1 %v2616_v29  ;;  %4149 = vst [vmem:[#allocation11_spill] sm:$0xff] %v3124_v15  ;;  %v3136_v17 = vld [vmem:[%s4035_s1 + $0x48] sm:$0xff]  ;;  %4154 = vst [vmem:[#allocation8_spill] sm:$0xff] %v3154_v21  ;;  %v3166_v25 = vld [vmem:[%s4035_s1] sm:$0xff] }
 0x220   :  { %899 = vmatprep.subr.mxu1 %v2628_v31  ;;  %880 = vmatprep.mubr.f32.mxu0 %v4145_v58  ;;  %4151 = vst [vmem:[#allocation13_spill] sm:$0xff] %v3136_v17  ;;  %4156 = vst [vmem:[#allocation9_spill] sm:$0xff] %v3166_v25  ;;  %v2231_v27 = vld [vmem:[%s4036_s0 + $0x40] sm:$0xff]  ;;  %v2232_v31 = vld [vmem:[%s4036_s0 + $0x48] sm:$0xff] }
 0x221   :  { %900 = vmatpush1.msra.mxu1 %v2640_v33  ;;  %951 = vmatprep.mubr.f32.mxu1 %v4145_v58 }
 0x222   :  { %901 = vmatprep.subr.mxu1 %v2652_v35  ;;  %828 = vmatprep.subr.mxu0 %v3054_v1 }
 0x223   :  { %902 = vmatpush1.msra.mxu1 %v2664_v37  ;;  %829 = vmatpush1.msra.mxu0 %v3060_v2 }
 0x224   :  { %903 = vmatprep.subr.mxu1 %v2676_v39  ;;  %830 = vmatprep.subr.mxu0 %v3066_v4 }
 0x225   :  { %904 = vmatpush1.msra.mxu1 %v2688_v41  ;;  %831 = vmatpush1.msra.mxu0 %v3071_v5 }
 0x226   :  { %905 = vmatprep.subr.mxu1 %v2700_v43  ;;  %832 = vmatprep.subr.mxu0 %v3076_v6 }
 0x227   :  { %906 = vmatpush1.msra.mxu1 %v2712_v45  ;;  %833 = vmatpush1.msra.mxu0 %v3082_v7  ;;  %v2234_v45 = vld [vmem:[%s4036_s0 + $0x58] sm:$0xff] }
 0x228   :  { %907 = vmatprep.subr.mxu1 %v2724_v47  ;;  %834 = vmatprep.subr.mxu0 %v3088_v8 }
 0x229   :  { %908 = vmatpush1.msra.mxu1 %v2736_v49  ;;  %835 = vmatpush1.msra.mxu0 %v3094_v10 }
 0x22a   :  { %909 = vmatprep.subr.mxu1 %v2748_v51  ;;  %836 = vmatprep.subr.mxu0 %v3100_v11  ;;  %v2233_v51 = vld [vmem:[%s4036_s0 + $0x50] sm:$0xff] }
 0x22b   :  { %910 = vmatpush1.msra.mxu1 %v4129_v20  ;;  %837 = vmatpush1.msra.mxu0 %v3106_v12 }
 0x22c   :  { %911 = vmatprep.subr.mxu1 %v4131_v24  ;;  %838 = vmatprep.subr.mxu0 %v3112_v13 }
 0x22d   :  { %912 = vmatpush1.msra.mxu1 %v4133_v28  ;;  %839 = vmatpush1.msra.mxu0 %v3118_v14 }
 0x22e   :  { %913 = vmatprep.subr.mxu1 %v4135_v32  ;;  %840 = vmatprep.subr.mxu0 %v3124_v15 }
 0x22f   :  { %914 = vmatpush1.msra.mxu1 %v4137_v36  ;;  %841 = vmatpush1.msra.mxu0 %v3130_v16 }
 0x230   :  { %915 = vmatprep.subr.mxu1 %v4139_v40  ;;  %842 = vmatprep.subr.mxu0 %v3136_v17 }
 0x231   :  { %916 = vmatpush1.msra.mxu1 %v4141_v44  ;;  %843 = vmatpush1.msra.mxu0 %v3142_v18 }
 0x232   :  { %917 = vmatprep.subr.mxu1 %v4143_v55  ;;  %844 = vmatprep.subr.mxu0 %v3148_v19 }
 0x233   :  { %918 = vmatpush1.msra.mxu1 %v4146_v59  ;;  %845 = vmatpush1.msra.mxu0 %v3154_v21 }
 0x234   :  { %846 = vmatprep.subr.mxu0 %v3160_v23  ;;  %1132 = vmatprep.subr.mxu1 %v3200_v60 }
 0x235   :  { %847 = vmatpush1.msra.mxu0 %v3166_v25 }
 0x236   :  { %1061 = vmatprep.subr.mxu0 %v3195_v57 }
 0x2d4   :  { %v637_v29 = vpop.f32.mrf.mxu0  ;;  %v708_v41 = vpop.f32.mrf.mxu1 }
 0x2d5   :  { %v713_v33 = vadd.f32 %v2231_v27, %v637_v29  ;;  %v715_v24 = vadd.f32 %v2233_v51, %v708_v41  ;;  %v3272_v27 = vld [vmem:[%s4035_s1 + $0x198] sm:$0xff]  ;;  %v3279_v29 = vld [vmem:[%s4035_s1 + $0x180] sm:$0xff]  ;;  %v3315_v41 = vld [vmem:[%s4035_s1 + $0x148] sm:$0xff] }
 0x2d6   :  { %v639_v35 = vpop.f32.mrf.mxu0  ;;  %v710_v47 = vpop.f32.mrf.mxu1  ;;  %v3346_v51 = vld [vmem:[%s4035_s1 + $0x130] sm:$0xff] }
 0x2d7   :  { %v2235_v37 = vmul.f32 -1.442695, %v713_v33  ;;  %v714_v39 = vadd.f32 %v2232_v31, %v639_v35  ;;  %v716_v49 = vadd.f32 %v2234_v45, %v710_v47  ;;  %v3284_v31 = vld [vmem:[%s4035_s1 + $0x190] sm:$0xff]  ;;  %v3291_v33 = vld [vmem:[%s4035_s1 + $0x168] sm:$0xff]  ;;  %v3296_v35 = vld [vmem:[%s4035_s1 + $0x178] sm:$0xff] }
 0x2d8   :  { %v3327_v45 = vld [vmem:[%s4035_s1 + $0x140] sm:$0xff]  ;;  %v3332_v47 = vld [vmem:[%s4035_s1 + $0x150] sm:$0xff] }
 0x2d9   :  { %2320 = vpow2.f32 %v2235_v37  ;;  %v2236_v43 = vmul.f32 -1.442695, %v714_v39  ;;  %v2237_v53 = vmul.f32 -1.442695, %v716_v49  ;;  %v3303_v37 = vld [vmem:[%s4035_s1 + $0x160] sm:$0xff]  ;;  %v3308_v39 = vld [vmem:[%s4035_s1 + $0x170] sm:$0xff] }
 0x2da   :  { %v3339_v49 = vld [vmem:[%s4035_s1 + $0x138] sm:$0xff] }
 0x2db   :  { %2322 = vpow2.f32 %v2236_v43  ;;  %v3320_v43 = vld [vmem:[%s4035_s1 + $0x158] sm:$0xff] }
 0x2dc   :  { %2324 = vpow2.f32 %v2237_v53  ;;  %v3353_v53 = vld [vmem:[%s4035_s1 + $0x118] sm:$0xff] }
 0x2e6   :  { %v2321_v20 = vpop.eup %2320 }
 0x2e7   :  { %v720_v28 = vadd.f32 1.0, %v2321_v20  ;;  %v3358_v20 = vld [vmem:[%s4035_s1 + $0x110] sm:$0xff] }
 0x2e8   :  { %v2323_v32 = vpop.eup %2322 }
 0x2e9   :  { %2326 = vrcp.f32 %v720_v28  ;;  %v726_v36 = vadd.f32 1.0, %v2323_v32  ;;  %v2325_v40 = vpop.eup %2324  ;;  %v3370_v28 = vld [vmem:[%s4035_s1 + $0xf0] sm:$0xff]  ;;  %v3377_v32 = vld [vmem:[%s4035_s1 + $0xd8] sm:$0xff] }
 0x2ea   :  { %2328 = vtanh.f32 %v715_v24  ;;  %v733_v22 = vadd.f32 1.0, %v2325_v40  ;;  %v3363_v24 = vld [vmem:[%s4035_s1 + $0xf8] sm:$0xff] }
 0x2eb   :  { %2330 = vrcp.f32 %v726_v36  ;;  %v3384_v36 = vld [vmem:[%s4035_s1 + $0xd0] sm:$0xff]  ;;  %v3391_v40 = vld [vmem:[%s4035_s1 + $0xb8] sm:$0xff] }
 0x2ec   :  { %2332 = vrcp.f32 %v733_v22  ;;  %v3419_v22 = vld [vmem:[%s4035_s1 + $0x78] sm:$0xff] }
 0x2ed   :  { %4159 = vst [vmem:[#allocation19_spill] sm:$0xff] %v3419_v22 }
 0x2f6   :  { %v2327_v44 = vpop.eup %2326 }
 0x2f7   :  { %v2329_v55 = vpop.eup %2328 }
 0x2f8   :  { %v2331_v59 = vpop.eup %2330  ;;  %v738_v26 = vmul.f32 %v2329_v55, %v2327_v44  ;;  %v3398_v44 = vld [vmem:[%s4035_s1 + $0xb0] sm:$0xff]  ;;  %v3405_v55 = vld [vmem:[%s4035_s1 + $0x98] sm:$0xff] }
 0x2f9   :  { %v737_v30 = vmul.f32 %v2331_v59, %v3001_v63  ;;  %v2333_v38 = vpop.eup %2332  ;;  %v3248_v63 = vld [vmem:[%s4035_s1 + $0x1b8] sm:$0xff]  ;;  %v3412_v59 = vld [vmem:[%s4035_s1 + $0x90] sm:$0xff] }
 0x2fb   :  { %v3184_v34 = vadd.f32 %v738_v26, %v737_v30  ;;  %v3426_v26 = vld [vmem:[%s4035_s1 + $0x70] sm:$0xff]  ;;  %v3433_v30 = vld [vmem:[%s4035_s1 + $0x58] sm:$0xff] }
 0x2fc   :  { %4160 = vst [vmem:[#allocation12_spill] sm:$0xff] %v3426_v26  ;;  %4161 = vst [vmem:[#allocation20_spill] sm:$0xff] %v3433_v30 }
 0x2fd   :  { %2334 = vtanh.f32 %v3184_v34 }
 0x30a   :  { %v2335_v42 = vpop.eup %2334 }
 0x30b   :  { %v741_v46 = vmul.f32 %v2335_v42, %v2333_v38  ;;  %v3440_v38 = vld [vmem:[%s4035_s1 + $0x50] sm:$0xff]  ;;  %v3447_v42 = vld [vmem:[%s4035_s1 + $0x38] sm:$0xff] }
 0x30c   :  { %4162 = vst [vmem:[#allocation14_spill] sm:$0xff] %v3440_v38  ;;  %4163 = vst [vmem:[#allocation21_spill] sm:$0xff] %v3447_v42 }
 0x30d   :  { %2238 = vst [vmem:[%s4037_s2 + $0x10] sm:$0xff] %v741_v46  ;;  %881 = vmatmul.mubr.f32.vlgmr.msra.gmra.mxu0 %v741_v46  ;;  %952 = vmatmul.mubr.f32.vlgmr.msra.gmra.mxu1 %v741_v46  ;;  %v3454_v46 = vld [vmem:[%s4035_s1 + $0x30] sm:$0xff] }
 0x30e   :  { %1125 = vmatprep.mubr.f32.mxu0 %v4145_v58  ;;  %1196 = vmatprep.mubr.f32.mxu1 %v4145_v58  ;;  %4164 = vst [vmem:[#allocation16_spill] sm:$0xff] %v3454_v46  ;;  %v3461_v58 = vld [vmem:[%s4035_s1 + $0x18] sm:$0xff] }
 0x30f   :  { %1062 = vmatpush1.msra.mxu0 %v3207_v54  ;;  %1133 = vmatpush1.msra.mxu1 %v3212_v56  ;;  %4165 = vst [vmem:[#allocation22_spill] sm:$0xff] %v3461_v58 }
 0x310   :  { %1063 = vmatprep.subr.mxu0 %v3219_v3  ;;  %1134 = vmatprep.subr.mxu1 %v3224_v52 }
 0x311   :  { %1064 = vmatpush1.msra.mxu0 %v3231_v48  ;;  %1135 = vmatpush1.msra.mxu1 %v3236_v61 }
 0x312   :  { %1065 = vmatprep.subr.mxu0 %v3243_v62  ;;  %1136 = vmatprep.subr.mxu1 %v3248_v63 }
 0x313   :  { %1066 = vmatpush1.msra.mxu0 %v3255_v0  ;;  %1137 = vmatpush1.msra.mxu1 %v3260_v9 }
 0x314   :  { %1067 = vmatprep.subr.mxu0 %v3267_v50  ;;  %1138 = vmatprep.subr.mxu1 %v3272_v27 }
 0x315   :  { %1068 = vmatpush1.msra.mxu0 %v3279_v29  ;;  %1139 = vmatpush1.msra.mxu1 %v3284_v31 }
 0x316   :  { %1069 = vmatprep.subr.mxu0 %v3291_v33  ;;  %1140 = vmatprep.subr.mxu1 %v3296_v35 }
 0x317   :  { %1070 = vmatpush1.msra.mxu0 %v3303_v37  ;;  %1141 = vmatpush1.msra.mxu1 %v3308_v39 }
 0x318   :  { %1071 = vmatprep.subr.mxu0 %v3315_v41  ;;  %1142 = vmatprep.subr.mxu1 %v3320_v43 }
 0x319   :  { %1072 = vmatpush1.msra.mxu0 %v3327_v45  ;;  %1143 = vmatpush1.msra.mxu1 %v3332_v47 }
 0x31a   :  { %1073 = vmatprep.subr.mxu0 %v3054_v1  ;;  %1144 = vmatprep.subr.mxu1 %v3339_v49 }
 0x31b   :  { %1074 = vmatpush1.msra.mxu0 %v3060_v2  ;;  %1145 = vmatpush1.msra.mxu1 %v3346_v51 }
 0x31c   :  { %1075 = vmatprep.subr.mxu0 %v3066_v4  ;;  %1146 = vmatprep.subr.mxu1 %v3353_v53 }
 0x31d   :  { %1076 = vmatpush1.msra.mxu0 %v3071_v5  ;;  %1147 = vmatpush1.msra.mxu1 %v3358_v20 }
 0x31e   :  { %1077 = vmatprep.subr.mxu0 %v3076_v6  ;;  %1148 = vmatprep.subr.mxu1 %v3363_v24 }
 0x31f   :  { %1078 = vmatpush1.msra.mxu0 %v3082_v7  ;;  %1149 = vmatpush1.msra.mxu1 %v3370_v28 }
 0x320   :  { %1079 = vmatprep.subr.mxu0 %v3088_v8  ;;  %1150 = vmatprep.subr.mxu1 %v3377_v32 }
 0x321   :  { %1080 = vmatpush1.msra.mxu0 %v3094_v10  ;;  %1151 = vmatpush1.msra.mxu1 %v3384_v36 }
 0x322   :  { %1081 = vmatprep.subr.mxu0 %v3100_v11  ;;  %1152 = vmatprep.subr.mxu1 %v3391_v40 }
 0x323   :  { %1082 = vmatpush1.msra.mxu0 %v3106_v12  ;;  %1153 = vmatpush1.msra.mxu1 %v3398_v44 }
 0x324   :  { %1083 = vmatprep.subr.mxu0 %v3112_v13  ;;  %1154 = vmatprep.subr.mxu1 %v3405_v55 }
 0x325   :  { %1084 = vmatpush1.msra.mxu0 %v3118_v14  ;;  %1155 = vmatpush1.msra.mxu1 %v3412_v59 }
 0x326   :  { %1085 = vmatprep.subr.mxu0 %v3124_v15  ;;  %1156 = vmatprep.subr.mxu1 %v3419_v22 }
 0x327   :  { %1086 = vmatpush1.msra.mxu0 %v3130_v16  ;;  %1157 = vmatpush1.msra.mxu1 %v3426_v26 }
 0x328   :  { %1087 = vmatprep.subr.mxu0 %v3136_v17  ;;  %1158 = vmatprep.subr.mxu1 %v3433_v30  ;;  %v3468_v30 = vld [vmem:[%s4035_s1 + $0x10] sm:$0xff] }
 0x329   :  { %1088 = vmatpush1.msra.mxu0 %v3142_v18  ;;  %1159 = vmatpush1.msra.mxu1 %v3440_v38  ;;  %4166 = vst [vmem:[#allocation4_spill] sm:$0xff] %v3468_v30  ;;  %v2241_v17 = vld [vmem:[%s4036_s0 + $0x70] sm:$0xff] }
 0x32a   :  { %1089 = vmatprep.subr.mxu0 %v3148_v19  ;;  %1160 = vmatprep.subr.mxu1 %v3447_v42  ;;  %v2239_v42 = vld [vmem:[%s4036_s0 + $0x60] sm:$0xff] }
 0x32b   :  { %1090 = vmatpush1.msra.mxu0 %v3154_v21  ;;  %1161 = vmatpush1.msra.mxu1 %v3454_v46  ;;  %v2240_v46 = vld [vmem:[%s4036_s0 + $0x68] sm:$0xff] }
 0x32c   :  { %1091 = vmatprep.subr.mxu0 %v3160_v23  ;;  %1162 = vmatprep.subr.mxu1 %v3461_v58 }
 0x32d   :  { %1092 = vmatpush1.msra.mxu0 %v3166_v25  ;;  %1163 = vmatpush1.msra.mxu1 %v3468_v30 }
 0x32e   :  { %1306 = vmatprep.subr.mxu0 %v3195_v57  ;;  %1377 = vmatprep.subr.mxu1 %v3200_v60  ;;  %v2242_v60 = vld [vmem:[%s4036_s0 + $0x78] sm:$0xff] }
 0x3cd   :  { %v882_v19 = vpop.f32.mrf.mxu0  ;;  %v953_v25 = vpop.f32.mrf.mxu1 }
 0x3ce   :  { %v958_v23 = vadd.f32 %v2239_v42, %v882_v19  ;;  %v960_v19 = vadd.f32 %v2241_v17, %v953_v25  ;;  %v4167_v25 = vld [vmem:[#allocation11_spill] sm:$0xff] }
 0x3cf   :  { %v884_v21 = vpop.f32.mrf.mxu0  ;;  %v955_v57 = vpop.f32.mrf.mxu1 }
 0x3d0   :  { %v2243_v58 = vmul.f32 -1.442695, %v958_v23  ;;  %v959_v38 = vadd.f32 %v2240_v46, %v884_v21  ;;  %v961_v18 = vadd.f32 %v2242_v60, %v955_v57 }
 0x3d2   :  { %2336 = vpow2.f32 %v2243_v58  ;;  %v2244_v30 = vmul.f32 -1.442695, %v959_v38  ;;  %v2245_v26 = vmul.f32 -1.442695, %v961_v18 }
 0x3d4   :  { %2338 = vpow2.f32 %v2244_v30 }
 0x3d5   :  { %2340 = vpow2.f32 %v2245_v26  ;;  %v4170_v26 = vld [vmem:[#allocation12_spill] sm:$0xff] }
 0x3df   :  { %v2337_v16 = vpop.eup %2336 }
 0x3e0   :  { %v965_v42 = vadd.f32 1.0, %v2337_v16 }
 0x3e1   :  { %v2339_v23 = vpop.eup %2338 }
 0x3e2   :  { %2342 = vrcp.f32 %v965_v42  ;;  %v971_v58 = vadd.f32 1.0, %v2339_v23  ;;  %v2341_v21 = vpop.eup %2340  ;;  %v4172_v42 = vld [vmem:[#allocation20_spill] sm:$0xff]  ;;  %v4173_v23 = vld [vmem:[#allocation7_spill] sm:$0xff] }
 0x3e3   :  { %2344 = vtanh.f32 %v960_v19  ;;  %v978_v22 = vadd.f32 1.0, %v2341_v21  ;;  %v4171_v19 = vld [vmem:[#allocation13_spill] sm:$0xff]  ;;  %v4175_v21 = vld [vmem:[#allocation15_spill] sm:$0xff] }
 0x3e4   :  { %2346 = vrcp.f32 %v971_v58  ;;  %v4174_v58 = vld [vmem:[#allocation14_spill] sm:$0xff] }
 0x3e5   :  { %2348 = vrcp.f32 %v978_v22  ;;  %v4169_v22 = vld [vmem:[#allocation6_spill] sm:$0xff] }
 0x3ef   :  { %v2343_v30 = vpop.eup %2342 }
 0x3f0   :  { %v2345_v38 = vpop.eup %2344 }
 0x3f1   :  { %v2347_v46 = vpop.eup %2346  ;;  %v983_v57 = vmul.f32 %v2345_v38, %v2343_v30  ;;  %v4176_v30 = vld [vmem:[#allocation21_spill] sm:$0xff]  ;;  %v4177_v38 = vld [vmem:[#allocation8_spill] sm:$0xff] }
 0x3f2   :  { %v982_v60 = vmul.f32 %v2347_v46, %v3184_v34  ;;  %v2349_v16 = vpop.eup %2348  ;;  %v4168_v34 = vld [vmem:[#allocation19_spill] sm:$0xff]  ;;  %v4178_v46 = vld [vmem:[#allocation16_spill] sm:$0xff] }
 0x3f4   :  { %v3491_v15 = vadd.f32 %v983_v57, %v982_v60  ;;  %v4179_v57 = vld [vmem:[#allocation17_spill] sm:$0xff]  ;;  %v4180_v60 = vld [vmem:[#allocation22_spill] sm:$0xff] }
 0x3f6   :  { %2350 = vtanh.f32 %v3491_v15 }
 0x403   :  { %v2351_v17 = vpop.eup %2350 }
 0x404   :  { %v986_v18 = vmul.f32 %v2351_v17, %v2349_v16  ;;  %v4181_v16 = vld [vmem:[#allocation9_spill] sm:$0xff]  ;;  %v4182_v17 = vmov 0.0  }
 0x406   :  { %2246 = vst [vmem:[%s4037_s2 + $0x18] sm:$0xff] %v986_v18  ;;  %1126 = vmatmul.mubr.f32.vlgmr.msra.gmra.mxu0 %v986_v18  ;;  %1197 = vmatmul.mubr.f32.vlgmr.msra.gmra.mxu1 %v986_v18  ;;  %v4183_v18 = vld [vmem:[#allocation4_spill] sm:$0xff] }
 0x407   :  { %1307 = vmatpush1.msra.mxu0 %v3207_v54  ;;  %1378 = vmatpush1.msra.mxu1 %v3212_v56 }
 0x408   :  { %1308 = vmatprep.subr.mxu0 %v3219_v3  ;;  %1379 = vmatprep.subr.mxu1 %v3224_v52 }
 0x409   :  { %1309 = vmatpush1.msra.mxu0 %v3231_v48  ;;  %1380 = vmatpush1.msra.mxu1 %v3236_v61 }
 0x40a   :  { %1310 = vmatprep.subr.mxu0 %v3243_v62  ;;  %1381 = vmatprep.subr.mxu1 %v3248_v63 }
 0x40b   :  { %1311 = vmatpush1.msra.mxu0 %v3255_v0  ;;  %1382 = vmatpush1.msra.mxu1 %v3260_v9 }
 0x40c   :  { %1312 = vmatprep.subr.mxu0 %v3267_v50  ;;  %1383 = vmatprep.subr.mxu1 %v3272_v27 }
 0x40d   :  { %1313 = vmatpush1.msra.mxu0 %v3279_v29  ;;  %1384 = vmatpush1.msra.mxu1 %v3284_v31 }
 0x40e   :  { %1314 = vmatprep.subr.mxu0 %v3291_v33  ;;  %1385 = vmatprep.subr.mxu1 %v3296_v35 }
 0x40f   :  { %1315 = vmatpush1.msra.mxu0 %v3303_v37  ;;  %1386 = vmatpush1.msra.mxu1 %v3308_v39 }
 0x410   :  { %1316 = vmatprep.subr.mxu0 %v3315_v41  ;;  %1387 = vmatprep.subr.mxu1 %v3320_v43 }
 0x411   :  { %1317 = vmatpush1.msra.mxu0 %v3327_v45  ;;  %1388 = vmatpush1.msra.mxu1 %v3332_v47 }
 0x412   :  { %1318 = vmatprep.subr.mxu0 %v3054_v1  ;;  %1389 = vmatprep.subr.mxu1 %v3339_v49 }
 0x413   :  { %1319 = vmatpush1.msra.mxu0 %v3060_v2  ;;  %1390 = vmatpush1.msra.mxu1 %v3346_v51 }
 0x414   :  { %1320 = vmatprep.subr.mxu0 %v3066_v4  ;;  %1391 = vmatprep.subr.mxu1 %v3353_v53 }
 0x415   :  { %1321 = vmatpush1.msra.mxu0 %v3071_v5  ;;  %1392 = vmatpush1.msra.mxu1 %v3358_v20 }
 0x416   :  { %1322 = vmatprep.subr.mxu0 %v3076_v6  ;;  %1393 = vmatprep.subr.mxu1 %v3363_v24 }
 0x417   :  { %1323 = vmatpush1.msra.mxu0 %v3082_v7  ;;  %1394 = vmatpush1.msra.mxu1 %v3370_v28 }
 0x418   :  { %1324 = vmatprep.subr.mxu0 %v3088_v8  ;;  %1395 = vmatprep.subr.mxu1 %v3377_v32 }
 0x419   :  { %1325 = vmatpush1.msra.mxu0 %v3094_v10  ;;  %1396 = vmatpush1.msra.mxu1 %v3384_v36 }
 0x41a   :  { %1326 = vmatprep.subr.mxu0 %v3100_v11  ;;  %1397 = vmatprep.subr.mxu1 %v3391_v40 }
 0x41b   :  { %1327 = vmatpush1.msra.mxu0 %v3106_v12  ;;  %1398 = vmatpush1.msra.mxu1 %v3398_v44 }
 0x41c   :  { %1328 = vmatprep.subr.mxu0 %v3112_v13  ;;  %1399 = vmatprep.subr.mxu1 %v3405_v55 }
 0x41d   :  { %1329 = vmatpush1.msra.mxu0 %v3118_v14  ;;  %1400 = vmatpush1.msra.mxu1 %v3412_v59 }
 0x41e   :  { %1330 = vmatprep.subr.mxu0 %v4167_v25  ;;  %1401 = vmatprep.subr.mxu1 %v4168_v34 }
 0x41f   :  { %1331 = vmatpush1.msra.mxu0 %v4169_v22  ;;  %1402 = vmatpush1.msra.mxu1 %v4170_v26 }
 0x420   :  { %1332 = vmatprep.subr.mxu0 %v4171_v19  ;;  %1403 = vmatprep.subr.mxu1 %v4172_v42  ;;  %v2249_v19 = vld [vmem:[%s4036_s0 + $0x90] sm:$0xff] }
 0x421   :  { %1333 = vmatpush1.msra.mxu0 %v4173_v23  ;;  %1404 = vmatpush1.msra.mxu1 %v4174_v58  ;;  %v4184_v58 = vld [vmem:[#allocation18_spill] sm:$0xff] }
 0x422   :  { %1334 = vmatprep.subr.mxu0 %v4175_v21  ;;  %1405 = vmatprep.subr.mxu1 %v4176_v30  ;;  %v4185_v21 = vld [vmem:[#allocation10_spill] sm:$0xff] }
 0x423   :  { %1335 = vmatpush1.msra.mxu0 %v4177_v38  ;;  %1406 = vmatpush1.msra.mxu1 %v4178_v46  ;;  %v2247_v46 = vld [vmem:[%s4036_s0 + $0x80] sm:$0xff] }
 0x424   :  { %1336 = vmatprep.subr.mxu0 %v4179_v57  ;;  %1407 = vmatprep.subr.mxu1 %v4180_v60  ;;  %v2248_v60 = vld [vmem:[%s4036_s0 + $0x88] sm:$0xff] }
 0x425   :  { %1337 = vmatpush1.msra.mxu0 %v4181_v16  ;;  %1370 = vmatprep.mubr.f32.mxu0 %v4182_v17 }
 0x426   :  { %1408 = vmatpush1.msra.mxu1 %v4183_v18  ;;  %1441 = vmatprep.mubr.f32.mxu1 %v4182_v17 }
 0x427   :  { %1551 = vmatprep.subr.mxu0 %v4184_v58  ;;  %1622 = vmatprep.subr.mxu1 %v4185_v21  ;;  %v2250_v21 = vld [vmem:[%s4036_s0 + $0x98] sm:$0xff] }
 0x4c6   :  { %v1127_v38 = vpop.f32.mrf.mxu0  ;;  %v1198_v18 = vpop.f32.mrf.mxu1 }
 0x4c7   :  { %v1203_v16 = vadd.f32 %v2247_v46, %v1127_v38  ;;  %v1205_v38 = vadd.f32 %v2249_v19, %v1198_v18  ;;  %v4201_v18 = vmov 0.0  }
 0x4c8   :  { %v1129_v57 = vpop.f32.mrf.mxu0  ;;  %v1200_v58 = vpop.f32.mrf.mxu1 }
 0x4c9   :  { %v2251_v30 = vmul.f32 -1.442695, %v1203_v16  ;;  %v1204_v23 = vadd.f32 %v2248_v60, %v1129_v57  ;;  %v1206_v42 = vadd.f32 %v2250_v21, %v1200_v58 }
 0x4cb   :  { %2352 = vpow2.f32 %v2251_v30  ;;  %v2252_v17 = vmul.f32 -1.442695, %v1204_v23  ;;  %v2253_v26 = vmul.f32 -1.442695, %v1206_v42  ;;  %v4200_v42 = vld [vmem:[#allocation9_spill] sm:$0xff] }
 0x4cd   :  { %2354 = vpow2.f32 %v2252_v17 }
 0x4ce   :  { %2356 = vpow2.f32 %v2253_v26 }
 0x4d8   :  { %v2353_v22 = vpop.eup %2352 }
 0x4d9   :  { %v1210_v46 = vadd.f32 1.0, %v2353_v22 }
 0x4da   :  { %v2355_v16 = vpop.eup %2354 }
 0x4db   :  { %2358 = vrcp.f32 %v1210_v46  ;;  %v1216_v30 = vadd.f32 1.0, %v2355_v16  ;;  %v2357_v23 = vpop.eup %2356  ;;  %v4203_v46 = vld [vmem:[#allocation18_spill] sm:$0xff] }
 0x4dc   :  { %2360 = vtanh.f32 %v1205_v38  ;;  %v1223_v34 = vadd.f32 1.0, %v2357_v23  ;;  %v4202_v38 = vld [vmem:[#allocation4_spill] sm:$0xff]  ;;  %v4204_v16 = vld [vmem:[#allocation10_spill] sm:$0xff] }
 0x4dd   :  { %2362 = vrcp.f32 %v1216_v30  ;;  %v2255_v30 = vld [vmem:[%s4036_s0 + $0xa0] sm:$0xff] }
 0x4de   :  { %2364 = vrcp.f32 %v1223_v34  ;;  %v4199_v34 = vld [vmem:[#allocation22_spill] sm:$0xff] }
 0x4e8   :  { %v2359_v57 = vpop.eup %2358 }
 0x4e9   :  { %v2361_v60 = vpop.eup %2360 }
 0x4ea   :  { %v2363_v17 = vpop.eup %2362  ;;  %v1228_v58 = vmul.f32 %v2361_v60, %v2359_v57  ;;  %v2256_v57 = vld [vmem:[%s4036_s0 + $0xa8] sm:$0xff] }
 0x4eb   :  { %v1227_v21 = vmul.f32 %v2363_v17, %v3491_v15  ;;  %v2365_v22 = vpop.eup %2364  ;;  %v4198_v15 = vld [vmem:[#allocation17_spill] sm:$0xff] }
 0x4ed   :  { %v3576_v25 = vadd.f32 %v1228_v58, %v1227_v21 }
 0x4ef   :  { %2366 = vtanh.f32 %v3576_v25 }
 0x4fc   :  { %v2367_v19 = vpop.eup %2366 }
 0x4fd   :  { %v1231_v26 = vmul.f32 %v2367_v19, %v2365_v22 }
 0x4ff   :  { %2254 = vst [vmem:[%s4037_s2 + $0x20] sm:$0xff] %v1231_v26  ;;  %1371 = vmatmul.mubr.f32.vlgmr.msra.gmra.mxu0 %v1231_v26  ;;  %1442 = vmatmul.mubr.f32.vlgmr.msra.gmra.mxu1 %v1231_v26  ;;  %v2258_v26 = vld [vmem:[%s4036_s0 + $0xb8] sm:$0xff] }
 0x500   :  { %1552 = vmatpush1.msra.mxu0 %v3207_v54  ;;  %1623 = vmatpush1.msra.mxu1 %v3212_v56 }
 0x501   :  { %1553 = vmatprep.subr.mxu0 %v3219_v3  ;;  %1624 = vmatprep.subr.mxu1 %v3224_v52 }
 0x502   :  { %1554 = vmatpush1.msra.mxu0 %v3231_v48  ;;  %1625 = vmatpush1.msra.mxu1 %v3236_v61 }
 0x503   :  { %1555 = vmatprep.subr.mxu0 %v3243_v62  ;;  %1626 = vmatprep.subr.mxu1 %v3248_v63 }
 0x504   :  { %1556 = vmatpush1.msra.mxu0 %v3255_v0  ;;  %1627 = vmatpush1.msra.mxu1 %v3260_v9 }
 0x505   :  { %1557 = vmatprep.subr.mxu0 %v3267_v50  ;;  %1628 = vmatprep.subr.mxu1 %v3272_v27 }
 0x506   :  { %1558 = vmatpush1.msra.mxu0 %v3279_v29  ;;  %1629 = vmatpush1.msra.mxu1 %v3284_v31 }
 0x507   :  { %1559 = vmatprep.subr.mxu0 %v3291_v33  ;;  %1630 = vmatprep.subr.mxu1 %v3296_v35 }
 0x508   :  { %1560 = vmatpush1.msra.mxu0 %v3303_v37  ;;  %1631 = vmatpush1.msra.mxu1 %v3308_v39 }
 0x509   :  { %1561 = vmatprep.subr.mxu0 %v3315_v41  ;;  %1632 = vmatprep.subr.mxu1 %v3320_v43 }
 0x50a   :  { %1562 = vmatpush1.msra.mxu0 %v3327_v45  ;;  %1633 = vmatpush1.msra.mxu1 %v3332_v47 }
 0x50b   :  { %1563 = vmatprep.subr.mxu0 %v3054_v1  ;;  %1634 = vmatprep.subr.mxu1 %v3339_v49  ;;  %v4186_v1 = vld [vmem:[#allocation11_spill] sm:$0xff] }
 0x50c   :  { %1564 = vmatpush1.msra.mxu0 %v3060_v2  ;;  %1635 = vmatpush1.msra.mxu1 %v3346_v51  ;;  %v4187_v2 = vld [vmem:[#allocation19_spill] sm:$0xff] }
 0x50d   :  { %1565 = vmatprep.subr.mxu0 %v3066_v4  ;;  %1636 = vmatprep.subr.mxu1 %v3353_v53  ;;  %v4188_v4 = vld [vmem:[#allocation6_spill] sm:$0xff] }
 0x50e   :  { %1566 = vmatpush1.msra.mxu0 %v3071_v5  ;;  %1637 = vmatpush1.msra.mxu1 %v3358_v20  ;;  %v4189_v5 = vld [vmem:[#allocation12_spill] sm:$0xff] }
 0x50f   :  { %1567 = vmatprep.subr.mxu0 %v3076_v6  ;;  %1638 = vmatprep.subr.mxu1 %v3363_v24  ;;  %v4190_v6 = vld [vmem:[#allocation13_spill] sm:$0xff] }
 0x510   :  { %1568 = vmatpush1.msra.mxu0 %v3082_v7  ;;  %1639 = vmatpush1.msra.mxu1 %v3370_v28  ;;  %v4191_v7 = vld [vmem:[#allocation20_spill] sm:$0xff] }
 0x511   :  { %1569 = vmatprep.subr.mxu0 %v3088_v8  ;;  %1640 = vmatprep.subr.mxu1 %v3377_v32  ;;  %v4192_v8 = vld [vmem:[#allocation7_spill] sm:$0xff] }
 0x512   :  { %1570 = vmatpush1.msra.mxu0 %v3094_v10  ;;  %1641 = vmatpush1.msra.mxu1 %v3384_v36  ;;  %v4193_v10 = vld [vmem:[#allocation14_spill] sm:$0xff] }
 0x513   :  { %1571 = vmatprep.subr.mxu0 %v3100_v11  ;;  %1642 = vmatprep.subr.mxu1 %v3391_v40  ;;  %v4194_v11 = vld [vmem:[#allocation15_spill] sm:$0xff] }
 0x514   :  { %1572 = vmatpush1.msra.mxu0 %v3106_v12  ;;  %1643 = vmatpush1.msra.mxu1 %v3398_v44  ;;  %v4195_v12 = vld [vmem:[#allocation21_spill] sm:$0xff] }
 0x515   :  { %1573 = vmatprep.subr.mxu0 %v3112_v13  ;;  %1644 = vmatprep.subr.mxu1 %v3405_v55  ;;  %v4196_v13 = vld [vmem:[#allocation8_spill] sm:$0xff] }
 0x516   :  { %1574 = vmatpush1.msra.mxu0 %v3118_v14  ;;  %1645 = vmatpush1.msra.mxu1 %v3412_v59  ;;  %v4197_v14 = vld [vmem:[#allocation16_spill] sm:$0xff] }
 0x517   :  { %1575 = vmatprep.subr.mxu0 %v4186_v1  ;;  %1646 = vmatprep.subr.mxu1 %v4187_v2 }
 0x518   :  { %1576 = vmatpush1.msra.mxu0 %v4188_v4  ;;  %1647 = vmatpush1.msra.mxu1 %v4189_v5 }
 0x519   :  { %1577 = vmatprep.subr.mxu0 %v4190_v6  ;;  %1648 = vmatprep.subr.mxu1 %v4191_v7  ;;  %v2257_v6 = vld [vmem:[%s4036_s0 + $0xb0] sm:$0xff] }
 0x51a   :  { %1578 = vmatpush1.msra.mxu0 %v4192_v8  ;;  %1649 = vmatpush1.msra.mxu1 %v4193_v10 }
 0x51b   :  { %1579 = vmatprep.subr.mxu0 %v4194_v11  ;;  %1650 = vmatprep.subr.mxu1 %v4195_v12 }
 0x51c   :  { %1580 = vmatpush1.msra.mxu0 %v4196_v13  ;;  %1651 = vmatpush1.msra.mxu1 %v4197_v14 }
 0x51d   :  { %1581 = vmatprep.subr.mxu0 %v4198_v15  ;;  %1652 = vmatprep.subr.mxu1 %v4199_v34 }
 0x51e   :  { %1582 = vmatpush1.msra.mxu0 %v4200_v42  ;;  %1615 = vmatprep.mubr.f32.mxu0 %v4201_v18 }
 0x51f   :  { %1653 = vmatpush1.msra.mxu1 %v4202_v38  ;;  %1686 = vmatprep.mubr.f32.mxu1 %v4201_v18 }
 0x520   :  { %1796 = vmatprep.subr.mxu0 %v4203_v46  ;;  %1867 = vmatprep.subr.mxu1 %v4204_v16 }
 0x5bf   :  { %v1372_v23 = vpop.f32.mrf.mxu0  ;;  %v1443_v22 = vpop.f32.mrf.mxu1 }
 0x5c0   :  { %v1448_v60 = vadd.f32 %v2255_v30, %v1372_v23  ;;  %v1450_v13 = vadd.f32 %v2257_v6, %v1443_v22 }
 0x5c1   :  { %v1374_v17 = vpop.f32.mrf.mxu0  ;;  %v1445_v1 = vpop.f32.mrf.mxu1 }
 0x5c2   :  { %v2259_v58 = vmul.f32 -1.442695, %v1448_v60  ;;  %v1449_v21 = vadd.f32 %v2256_v57, %v1374_v17  ;;  %v1451_v4 = vadd.f32 %v2258_v26, %v1445_v1 }
 0x5c4   :  { %2368 = vpow2.f32 %v2259_v58  ;;  %v2260_v19 = vmul.f32 -1.442695, %v1449_v21  ;;  %v2261_v8 = vmul.f32 -1.442695, %v1451_v4 }
 0x5c6   :  { %2370 = vpow2.f32 %v2260_v19 }
 0x5c7   :  { %2372 = vpow2.f32 %v2261_v8 }
 0x5d1   :  { %v2369_v11 = vpop.eup %2368 }
 0x5d2   :  { %v1455_v15 = vadd.f32 1.0, %v2369_v11 }
 0x5d3   :  { %v2371_v42 = vpop.eup %2370 }
 0x5d4   :  { %2374 = vrcp.f32 %v1455_v15  ;;  %v1461_v46 = vadd.f32 1.0, %v2371_v42  ;;  %v2373_v16 = vpop.eup %2372  ;;  %v2038_v42 = vld [vmem:[%s4035_s1 + $0x1e8] sm:$0xff] }
 0x5d5   :  { %2376 = vtanh.f32 %v1450_v13  ;;  %v1468_v60 = vadd.f32 1.0, %v2373_v16  ;;  %v2037_v16 = vld [vmem:[%s4035_s1 + $0x1e0] sm:$0xff] }
 0x5d6   :  { %2378 = vrcp.f32 %v1461_v46  ;;  %v2040_v46 = vld [vmem:[%s4035_s1 + $0x1f8] sm:$0xff] }
 0x5d7   :  { %2380 = vrcp.f32 %v1468_v60  ;;  %v2035_v60 = vld [vmem:[%s4035_s1 + $0x1d0] sm:$0xff] }
 0x5e1   :  { %v2375_v30 = vpop.eup %2374 }
 0x5e2   :  { %v2377_v23 = vpop.eup %2376 }
 0x5e3   :  { %v2379_v57 = vpop.eup %2378  ;;  %v1473_v17 = vmul.f32 %v2377_v23, %v2375_v30  ;;  %v2039_v30 = vld [vmem:[%s4035_s1 + $0x1f0] sm:$0xff]  ;;  %v2036_v23 = vld [vmem:[%s4035_s1 + $0x1d8] sm:$0xff] }
 0x5e4   :  { %v1472_v58 = vmul.f32 %v2379_v57, %v3576_v25  ;;  %v2381_v22 = vpop.eup %2380  ;;  %v2033_v57 = vld [vmem:[%s4035_s1 + $0x1c0] sm:$0xff] }
 0x5e6   :  { %v3661_v21 = vadd.f32 %v1473_v17, %v1472_v58  ;;  %v2030_v17 = vld [vmem:[%s4035_s1 + $0x1a8] sm:$0xff]  ;;  %v2032_v58 = vld [vmem:[%s4035_s1 + $0x1b8] sm:$0xff] }
 0x5e8   :  { %2382 = vtanh.f32 %v3661_v21 }
 0x5f5   :  { %v2383_v19 = vpop.eup %2382 }
 0x5f6   :  { %v1476_v26 = vmul.f32 %v2383_v19, %v2381_v22  ;;  %v2031_v22 = vld [vmem:[%s4035_s1 + $0x1b0] sm:$0xff]  ;;  %v2026_v19 = vld [vmem:[%s4035_s1 + $0x188] sm:$0xff] }
 0x5f8   :  { %2262 = vst [vmem:[%s4037_s2 + $0x28] sm:$0xff] %v1476_v26  ;;  %1616 = vmatmul.mubr.f32.vlgmr.msra.gmra.mxu0 %v1476_v26  ;;  %1687 = vmatmul.mubr.f32.vlgmr.msra.gmra.mxu1 %v1476_v26  ;;  %v2028_v26 = vld [vmem:[%s4035_s1 + $0x198] sm:$0xff] }
 0x5f9   :  { %1797 = vmatpush1.msra.mxu0 %v3207_v54  ;;  %1868 = vmatpush1.msra.mxu1 %v3212_v56  ;;  %v3714_v54 = vld [vmem:[%s4035_s1 + $0x128] sm:$0xff]  ;;  %v3720_v56 = vld [vmem:[%s4035_s1 + $0x120] sm:$0xff] }
 0x5fa   :  { %1798 = vmatprep.subr.mxu0 %v3219_v3  ;;  %1869 = vmatprep.subr.mxu1 %v3224_v52  ;;  %v3726_v3 = vld [vmem:[%s4035_s1 + $0x108] sm:$0xff]  ;;  %v3731_v52 = vld [vmem:[%s4035_s1 + $0x100] sm:$0xff] }
 0x5fb   :  { %1799 = vmatpush1.msra.mxu0 %v3231_v48  ;;  %1870 = vmatpush1.msra.mxu1 %v3236_v61  ;;  %v3736_v48 = vld [vmem:[%s4035_s1 + $0xe8] sm:$0xff]  ;;  %v3742_v61 = vld [vmem:[%s4035_s1 + $0xe0] sm:$0xff] }
 0x5fc   :  { %1800 = vmatprep.subr.mxu0 %v3243_v62  ;;  %1871 = vmatprep.subr.mxu1 %v3248_v63  ;;  %v3748_v62 = vld [vmem:[%s4035_s1 + $0xc8] sm:$0xff]  ;;  %v3754_v63 = vld [vmem:[%s4035_s1 + $0xc0] sm:$0xff] }
 0x5fd   :  { %1801 = vmatpush1.msra.mxu0 %v3255_v0  ;;  %1872 = vmatpush1.msra.mxu1 %v3260_v9  ;;  %v3760_v0 = vld [vmem:[%s4035_s1 + $0xa8] sm:$0xff]  ;;  %v3766_v9 = vld [vmem:[%s4035_s1 + $0xa0] sm:$0xff] }
 0x5fe   :  { %1802 = vmatprep.subr.mxu0 %v3267_v50  ;;  %1873 = vmatprep.subr.mxu1 %v3272_v27  ;;  %v3772_v50 = vld [vmem:[%s4035_s1 + $0x88] sm:$0xff]  ;;  %v3778_v27 = vld [vmem:[%s4035_s1 + $0x80] sm:$0xff] }
 0x5ff   :  { %1803 = vmatpush1.msra.mxu0 %v3279_v29  ;;  %1874 = vmatpush1.msra.mxu1 %v3284_v31  ;;  %v3784_v29 = vld [vmem:[%s4035_s1 + $0x68] sm:$0xff]  ;;  %v3790_v31 = vld [vmem:[%s4035_s1 + $0x60] sm:$0xff] }
 0x600   :  { %1804 = vmatprep.subr.mxu0 %v3291_v33  ;;  %1875 = vmatprep.subr.mxu1 %v3296_v35  ;;  %v3796_v33 = vld [vmem:[%s4035_s1 + $0x48] sm:$0xff]  ;;  %v3802_v35 = vld [vmem:[%s4035_s1 + $0x40] sm:$0xff] }
 0x601   :  { %1805 = vmatpush1.msra.mxu0 %v3303_v37  ;;  %1876 = vmatpush1.msra.mxu1 %v3308_v39  ;;  %v3808_v37 = vld [vmem:[%s4035_s1 + $0x28] sm:$0xff]  ;;  %v3814_v39 = vld [vmem:[%s4035_s1 + $0x20] sm:$0xff] }
 0x602   :  { %1806 = vmatprep.subr.mxu0 %v3315_v41  ;;  %1877 = vmatprep.subr.mxu1 %v3320_v43  ;;  %v3820_v41 = vld [vmem:[%s4035_s1 + $0x8] sm:$0xff]  ;;  %v3826_v43 = vld [vmem:[%s4035_s1] sm:$0xff] }
 0x603   :  { %1807 = vmatpush1.msra.mxu0 %v3327_v45  ;;  %1878 = vmatpush1.msra.mxu1 %v3332_v47  ;;  %v2263_v45 = vld [vmem:[%s4036_s0 + $0xc0] sm:$0xff] }
 0x604   :  { %1879 = vmatprep.subr.mxu1 %v3339_v49  ;;  %1860 = vmatprep.mubr.f32.mxu0 %v4201_v18  ;;  %v2264_v49 = vld [vmem:[%s4036_s0 + $0xc8] sm:$0xff] }
 0x605   :  { %1880 = vmatpush1.msra.mxu1 %v3346_v51  ;;  %1931 = vmatprep.mubr.f32.mxu1 %v4201_v18 }
 0x606   :  { %1881 = vmatprep.subr.mxu1 %v3353_v53  ;;  %1808 = vmatprep.subr.mxu0 %v3714_v54 }
 0x607   :  { %1882 = vmatpush1.msra.mxu1 %v3358_v20  ;;  %1809 = vmatpush1.msra.mxu0 %v3720_v56 }
 0x608   :  { %1883 = vmatprep.subr.mxu1 %v3363_v24  ;;  %1810 = vmatprep.subr.mxu0 %v3726_v3 }
 0x609   :  { %1884 = vmatpush1.msra.mxu1 %v3370_v28  ;;  %1811 = vmatpush1.msra.mxu0 %v3731_v52 }
 0x60a   :  { %1885 = vmatprep.subr.mxu1 %v3377_v32  ;;  %1812 = vmatprep.subr.mxu0 %v3736_v48 }
 0x60b   :  { %1886 = vmatpush1.msra.mxu1 %v3384_v36  ;;  %1813 = vmatpush1.msra.mxu0 %v3742_v61  ;;  %v2266_v36 = vld [vmem:[%s4036_s0 + $0xd8] sm:$0xff] }
 0x60c   :  { %1887 = vmatprep.subr.mxu1 %v3391_v40  ;;  %1814 = vmatprep.subr.mxu0 %v3748_v62 }
 0x60d   :  { %1888 = vmatpush1.msra.mxu1 %v3398_v44  ;;  %1815 = vmatpush1.msra.mxu0 %v3754_v63 }
 0x60e   :  { %1889 = vmatprep.subr.mxu1 %v3405_v55  ;;  %1816 = vmatprep.subr.mxu0 %v3760_v0  ;;  %v2265_v55 = vld [vmem:[%s4036_s0 + $0xd0] sm:$0xff] }
 0x60f   :  { %1890 = vmatpush1.msra.mxu1 %v3412_v59  ;;  %1817 = vmatpush1.msra.mxu0 %v3766_v9 }
 0x610   :  { %1891 = vmatprep.subr.mxu1 %v4187_v2  ;;  %1818 = vmatprep.subr.mxu0 %v3772_v50 }
 0x611   :  { %1892 = vmatpush1.msra.mxu1 %v4189_v5  ;;  %1819 = vmatpush1.msra.mxu0 %v3778_v27 }
 0x612   :  { %1893 = vmatprep.subr.mxu1 %v4191_v7  ;;  %1820 = vmatprep.subr.mxu0 %v3784_v29 }
 0x613   :  { %1894 = vmatpush1.msra.mxu1 %v4193_v10  ;;  %1821 = vmatpush1.msra.mxu0 %v3790_v31 }
 0x614   :  { %1895 = vmatprep.subr.mxu1 %v4195_v12  ;;  %1822 = vmatprep.subr.mxu0 %v3796_v33 }
 0x615   :  { %1896 = vmatpush1.msra.mxu1 %v4197_v14  ;;  %1823 = vmatpush1.msra.mxu0 %v3802_v35 }
 0x616   :  { %1897 = vmatprep.subr.mxu1 %v4199_v34  ;;  %1824 = vmatprep.subr.mxu0 %v3808_v37 }
 0x617   :  { %1898 = vmatpush1.msra.mxu1 %v4202_v38  ;;  %1825 = vmatpush1.msra.mxu0 %v3814_v39 }
 0x618   :  { %1826 = vmatprep.subr.mxu0 %v3820_v41  ;;  %2112 = vmatprep.subr.mxu1 %v2040_v46 }
 0x619   :  { %1827 = vmatpush1.msra.mxu0 %v3826_v43 }
 0x61a   :  { %2041 = vmatprep.subr.mxu0 %v2038_v42 }
 0x6b8   :  { %v1617_v47 = vpop.f32.mrf.mxu0  ;;  %v1688_v28 = vpop.f32.mrf.mxu1 }
 0x6b9   :  { %v1693_v51 = vadd.f32 %v2263_v45, %v1617_v47  ;;  %v1695_v2 = vadd.f32 %v2265_v55, %v1688_v28  ;;  %v2025_v45 = vld [vmem:[%s4035_s1 + $0x180] sm:$0xff]  ;;  %v2027_v47 = vld [vmem:[%s4035_s1 + $0x190] sm:$0xff]  ;;  %v2020_v28 = vld [vmem:[%s4035_s1 + $0x158] sm:$0xff] }
 0x6ba   :  { %v1619_v53 = vpop.f32.mrf.mxu0  ;;  %v1690_v40 = vpop.f32.mrf.mxu1  ;;  %v2012_v55 = vld [vmem:[%s4035_s1 + $0x118] sm:$0xff] }
 0x6bb   :  { %v2267_v20 = vmul.f32 -1.442695, %v1693_v51  ;;  %v1694_v24 = vadd.f32 %v2264_v49, %v1619_v53  ;;  %v1696_v44 = vadd.f32 %v2266_v36, %v1690_v40  ;;  %v2022_v49 = vld [vmem:[%s4035_s1 + $0x168] sm:$0xff]  ;;  %v2024_v51 = vld [vmem:[%s4035_s1 + $0x178] sm:$0xff]  ;;  %v2021_v53 = vld [vmem:[%s4035_s1 + $0x160] sm:$0xff] }
 0x6bc   :  { %v2019_v36 = vld [vmem:[%s4035_s1 + $0x150] sm:$0xff]  ;;  %v2016_v40 = vld [vmem:[%s4035_s1 + $0x138] sm:$0xff] }
 0x6bd   :  { %2384 = vpow2.f32 %v2267_v20  ;;  %v2268_v32 = vmul.f32 -1.442695, %v1694_v24  ;;  %v2269_v59 = vmul.f32 -1.442695, %v1696_v44  ;;  %v2023_v20 = vld [vmem:[%s4035_s1 + $0x170] sm:$0xff]  ;;  %v2018_v24 = vld [vmem:[%s4035_s1 + $0x148] sm:$0xff] }
 0x6be   :  { %v2015_v44 = vld [vmem:[%s4035_s1 + $0x130] sm:$0xff] }
 0x6bf   :  { %2386 = vpow2.f32 %v2268_v32  ;;  %v2017_v32 = vld [vmem:[%s4035_s1 + $0x140] sm:$0xff] }
 0x6c0   :  { %2388 = vpow2.f32 %v2269_v59  ;;  %v2011_v59 = vld [vmem:[%s4035_s1 + $0x110] sm:$0xff] }
 0x6ca   :  { %v2385_v25 = vpop.eup %2384 }
 0x6cb   :  { %v1700_v5 = vadd.f32 1.0, %v2385_v25  ;;  %v2004_v25 = vld [vmem:[%s4035_s1 + $0xd8] sm:$0xff] }
 0x6cc   :  { %v2387_v7 = vpop.eup %2386 }
 0x6cd   :  { %2390 = vrcp.f32 %v1700_v5  ;;  %v1706_v10 = vadd.f32 1.0, %v2387_v7  ;;  %v2389_v12 = vpop.eup %2388 }
 0x6ce   :  { %2392 = vtanh.f32 %v1695_v2  ;;  %v1713_v1 = vadd.f32 1.0, %v2389_v12  ;;  %v2003_v2 = vld [vmem:[%s4035_s1 + $0xd0] sm:$0xff] }
 0x6cf   :  { %2394 = vrcp.f32 %v1706_v10 }
 0x6d0   :  { %2396 = vrcp.f32 %v1713_v1 }
 0x6da   :  { %v2391_v14 = vpop.eup %2390 }
 0x6db   :  { %v2393_v34 = vpop.eup %2392 }
 0x6dc   :  { %v2395_v38 = vpop.eup %2394  ;;  %v1718_v4 = vmul.f32 %v2393_v34, %v2391_v14 }
 0x6dd   :  { %v1717_v6 = vmul.f32 %v2395_v38, %v3661_v21  ;;  %v2397_v11 = vpop.eup %2396  ;;  %v2029_v21 = vld [vmem:[%s4035_s1 + $0x1a0] sm:$0xff]  ;;  %v2273_v38 = vld [vmem:[%s4036_s0 + $0xf0] sm:$0xff] }
 0x6df   :  { %v3844_v8 = vadd.f32 %v1718_v4, %v1717_v6 }
 0x6e1   :  { %2398 = vtanh.f32 %v3844_v8 }
 0x6ee   :  { %v2399_v13 = vpop.eup %2398 }
 0x6ef   :  { %v1721_v15 = vmul.f32 %v2399_v13, %v2397_v11 }
 0x6f1   :  { %2270 = vst [vmem:[%s4037_s2 + $0x30] sm:$0xff] %v1721_v15  ;;  %1861 = vmatmul.mubr.f32.vlgmr.msra.gmra.mxu0 %v1721_v15  ;;  %1932 = vmatmul.mubr.f32.vlgmr.msra.gmra.mxu1 %v1721_v15 }
 0x6f2   :  { %2105 = vmatprep.mubr.f32.mxu0 %v4201_v18  ;;  %2176 = vmatprep.mubr.f32.mxu1 %v4201_v18  ;;  %v2034_v18 = vld [vmem:[%s4035_s1 + $0x1c8] sm:$0xff] }
 0x6f3   :  { %2042 = vmatpush1.msra.mxu0 %v2037_v16  ;;  %2113 = vmatpush1.msra.mxu1 %v2039_v30 }
 0x6f4   :  { %2043 = vmatprep.subr.mxu0 %v2034_v18  ;;  %2114 = vmatprep.subr.mxu1 %v2036_v23 }
 0x6f5   :  { %2044 = vmatpush1.msra.mxu0 %v2033_v57  ;;  %2115 = vmatpush1.msra.mxu1 %v2035_v60 }
 0x6f6   :  { %2045 = vmatprep.subr.mxu0 %v2030_v17  ;;  %2116 = vmatprep.subr.mxu1 %v2032_v58 }
 0x6f7   :  { %2046 = vmatpush1.msra.mxu0 %v2029_v21  ;;  %2117 = vmatpush1.msra.mxu1 %v2031_v22  ;;  %v2279_v22 = vld [vmem:[%s4036_s0 + $0x100] sm:$0xff] }
 0x6f8   :  { %2047 = vmatprep.subr.mxu0 %v2026_v19  ;;  %2118 = vmatprep.subr.mxu1 %v2028_v26 }
 0x6f9   :  { %2048 = vmatpush1.msra.mxu0 %v2025_v45  ;;  %2119 = vmatpush1.msra.mxu1 %v2027_v47 }
 0x6fa   :  { %2049 = vmatprep.subr.mxu0 %v2022_v49  ;;  %2120 = vmatprep.subr.mxu1 %v2024_v51 }
 0x6fb   :  { %2050 = vmatpush1.msra.mxu0 %v2021_v53  ;;  %2121 = vmatpush1.msra.mxu1 %v2023_v20  ;;  %v2282_v20 = vld [vmem:[%s4036_s0 + $0x118] sm:$0xff] }
 0x6fc   :  { %2051 = vmatprep.subr.mxu0 %v2018_v24  ;;  %2122 = vmatprep.subr.mxu1 %v2020_v28 }
 0x6fd   :  { %2052 = vmatpush1.msra.mxu0 %v2017_v32  ;;  %2123 = vmatpush1.msra.mxu1 %v2019_v36  ;;  %v2281_v32 = vld [vmem:[%s4036_s0 + $0x110] sm:$0xff] }
 0x6fe   :  { %2053 = vmatprep.subr.mxu0 %v3714_v54  ;;  %2124 = vmatprep.subr.mxu1 %v2016_v40  ;;  %v2008_v54 = vld [vmem:[%s4035_s1 + $0xf8] sm:$0xff] }
 0x6ff   :  { %2054 = vmatpush1.msra.mxu0 %v3720_v56  ;;  %2125 = vmatpush1.msra.mxu1 %v2015_v44  ;;  %v2007_v56 = vld [vmem:[%s4035_s1 + $0xf0] sm:$0xff] }
 0x700   :  { %2055 = vmatprep.subr.mxu0 %v3726_v3  ;;  %2126 = vmatprep.subr.mxu1 %v2012_v55  ;;  %v2000_v3 = vld [vmem:[%s4035_s1 + $0xb8] sm:$0xff] }
 0x701   :  { %2056 = vmatpush1.msra.mxu0 %v3731_v52  ;;  %2127 = vmatpush1.msra.mxu1 %v2011_v59  ;;  %v1999_v52 = vld [vmem:[%s4035_s1 + $0xb0] sm:$0xff] }
 0x702   :  { %2057 = vmatprep.subr.mxu0 %v3736_v48  ;;  %2128 = vmatprep.subr.mxu1 %v2008_v54  ;;  %v1996_v48 = vld [vmem:[%s4035_s1 + $0x98] sm:$0xff] }
 0x703   :  { %2058 = vmatpush1.msra.mxu0 %v3742_v61  ;;  %2129 = vmatpush1.msra.mxu1 %v2007_v56  ;;  %v1995_v61 = vld [vmem:[%s4035_s1 + $0x90] sm:$0xff] }
 0x704   :  { %2059 = vmatprep.subr.mxu0 %v3748_v62  ;;  %2130 = vmatprep.subr.mxu1 %v2004_v25  ;;  %v1992_v62 = vld [vmem:[%s4035_s1 + $0x78] sm:$0xff] }
 0x705   :  { %2060 = vmatpush1.msra.mxu0 %v3754_v63  ;;  %2131 = vmatpush1.msra.mxu1 %v2003_v2  ;;  %v1991_v63 = vld [vmem:[%s4035_s1 + $0x70] sm:$0xff] }
 0x706   :  { %2061 = vmatprep.subr.mxu0 %v3760_v0  ;;  %2132 = vmatprep.subr.mxu1 %v2000_v3  ;;  %v1988_v0 = vld [vmem:[%s4035_s1 + $0x58] sm:$0xff] }
 0x707   :  { %2062 = vmatpush1.msra.mxu0 %v3766_v9  ;;  %2133 = vmatpush1.msra.mxu1 %v1999_v52  ;;  %v1987_v9 = vld [vmem:[%s4035_s1 + $0x50] sm:$0xff] }
 0x708   :  { %2063 = vmatprep.subr.mxu0 %v3772_v50  ;;  %2134 = vmatprep.subr.mxu1 %v1996_v48  ;;  %v1984_v50 = vld [vmem:[%s4035_s1 + $0x38] sm:$0xff] }
 0x709   :  { %2064 = vmatpush1.msra.mxu0 %v3778_v27  ;;  %2135 = vmatpush1.msra.mxu1 %v1995_v61  ;;  %v1983_v27 = vld [vmem:[%s4035_s1 + $0x30] sm:$0xff] }
 0x70a   :  { %2065 = vmatprep.subr.mxu0 %v3784_v29  ;;  %2136 = vmatprep.subr.mxu1 %v1992_v62  ;;  %v1980_v29 = vld [vmem:[%s4035_s1 + $0x18] sm:$0xff] }
 0x70b   :  { %2066 = vmatpush1.msra.mxu0 %v3790_v31  ;;  %2137 = vmatpush1.msra.mxu1 %v1991_v63  ;;  %v1979_v31 = vld [vmem:[%s4035_s1 + $0x10] sm:$0xff] }
 0x70c   :  { %2067 = vmatprep.subr.mxu0 %v3796_v33  ;;  %2138 = vmatprep.subr.mxu1 %v1988_v0  ;;  %v2271_v33 = vld [vmem:[%s4036_s0 + $0xe0] sm:$0xff] }
 0x70d   :  { %2068 = vmatpush1.msra.mxu0 %v3802_v35  ;;  %2139 = vmatpush1.msra.mxu1 %v1987_v9 }
 0x70e   :  { %2069 = vmatprep.subr.mxu0 %v3808_v37  ;;  %2140 = vmatprep.subr.mxu1 %v1984_v50  ;;  %v2272_v37 = vld [vmem:[%s4036_s0 + $0xe8] sm:$0xff] }
 0x70f   :  { %2070 = vmatpush1.msra.mxu0 %v3814_v39  ;;  %2141 = vmatpush1.msra.mxu1 %v1983_v27 }
 0x710   :  { %2071 = vmatprep.subr.mxu0 %v3820_v41  ;;  %2142 = vmatprep.subr.mxu1 %v1980_v29 }
 0x711   :  { %2072 = vmatpush1.msra.mxu0 %v3826_v43  ;;  %2143 = vmatpush1.msra.mxu1 %v1979_v31  ;;  %v2274_v43 = vld [vmem:[%s4036_s0 + $0xf8] sm:$0xff] }
 0x7b1   :  { %v1862_v35 = vpop.f32.mrf.mxu0  ;;  %v1933_v12 = vpop.f32.mrf.mxu1 }
 0x7b2   :  { %v1938_v5 = vadd.f32 %v2271_v33, %v1862_v35  ;;  %v1940_v6 = vadd.f32 %v2273_v38, %v1933_v12 }
 0x7b3   :  { %v1864_v7 = vpop.f32.mrf.mxu0  ;;  %v1935_v14 = vpop.f32.mrf.mxu1 }
 0x7b4   :  { %v2275_v10 = vmul.f32 -1.442695, %v1938_v5  ;;  %v1939_v39 = vadd.f32 %v2272_v37, %v1864_v7  ;;  %v1941_v34 = vadd.f32 %v2274_v43, %v1935_v14 }
 0x7b6   :  { %2400 = vpow2.f32 %v2275_v10  ;;  %v2276_v41 = vmul.f32 -1.442695, %v1939_v39  ;;  %v2277_v1 = vmul.f32 -1.442695, %v1941_v34 }
 0x7b8   :  { %2402 = vpow2.f32 %v2276_v41 }
 0x7b9   :  { %2404 = vpow2.f32 %v2277_v1 }
 0x7c3   :  { %v2401_v4 = vpop.eup %2400 }
 0x7c4   :  { %v1945_v11 = vadd.f32 1.0, %v2401_v4 }
 0x7c5   :  { %v2403_v13 = vpop.eup %2402 }
 0x7c6   :  { %2406 = vrcp.f32 %v1945_v11  ;;  %v1951_v15 = vadd.f32 1.0, %v2403_v13  ;;  %v2405_v42 = vpop.eup %2404 }
 0x7c7   :  { %2408 = vtanh.f32 %v1940_v6  ;;  %v1958_v18 = vadd.f32 1.0, %v2405_v42 }
 0x7c8   :  { %2410 = vrcp.f32 %v1951_v15 }
 0x7c9   :  { %2412 = vrcp.f32 %v1958_v18 }
 0x7d3   :  { %v2407_v46 = vpop.eup %2406 }
 0x7d4   :  { %v2409_v16 = vpop.eup %2408 }
 0x7d5   :  { %v2411_v30 = vpop.eup %2410  ;;  %v1963_v23 = vmul.f32 %v2409_v16, %v2407_v46 }
 0x7d6   :  { %v1962_v57 = vmul.f32 %v2411_v30, %v3844_v8  ;;  %v2413_v17 = vpop.eup %2412  ;;  %v2280_v8 = vld [vmem:[%s4036_s0 + $0x108] sm:$0xff] }
 0x7d8   :  { %v1964_v60 = vadd.f32 %v1963_v23, %v1962_v57 }
 0x7da   :  { %2414 = vtanh.f32 %v1964_v60 }
 0x7e7   :  { %v2415_v58 = vpop.eup %2414 }
 0x7e8   :  { %v1966_v21 = vmul.f32 %v2415_v58, %v2413_v17 }
 0x7ea   :  { %2278 = vst [vmem:[%s4037_s2 + $0x38] sm:$0xff] %v1966_v21  ;;  %2106 = vmatmul.mubr.f32.vlgmr.msra.gmra.mxu0 %v1966_v21  ;;  %2177 = vmatmul.mubr.f32.vlgmr.msra.gmra.mxu1 %v1966_v21 }
 0x8aa   :  { %v2107_v19 = vpop.f32.mrf.mxu0  ;;  %v2178_v51 = vpop.f32.mrf.mxu1 }
 0x8ab   :  { %v2183_v26 = vadd.f32 %v2279_v22, %v2107_v19  ;;  %v2185_v44 = vadd.f32 %v2281_v32, %v2178_v51 }
 0x8ac   :  { %v2109_v45 = vpop.f32.mrf.mxu0  ;;  %v2180_v24 = vpop.f32.mrf.mxu1 }
 0x8ad   :  { %v2283_v47 = vmul.f32 -1.442695, %v2183_v26  ;;  %v2184_v49 = vadd.f32 %v2280_v8, %v2109_v45  ;;  %v2186_v28 = vadd.f32 %v2282_v20, %v2180_v24 }
 0x8af   :  { %2416 = vpow2.f32 %v2283_v47  ;;  %v2284_v53 = vmul.f32 -1.442695, %v2184_v49  ;;  %v2285_v36 = vmul.f32 -1.442695, %v2186_v28 }
 0x8b1   :  { %2418 = vpow2.f32 %v2284_v53 }
 0x8b2   :  { %2420 = vpow2.f32 %v2285_v36 }
 0x8bc   :  { %v2417_v40 = vpop.eup %2416 }
 0x8bd   :  { %v2190_v55 = vadd.f32 1.0, %v2417_v40 }
 0x8be   :  { %v2419_v59 = vpop.eup %2418 }
 0x8bf   :  { %2422 = vrcp.f32 %v2190_v55  ;;  %v2196_v54 = vadd.f32 1.0, %v2419_v59  ;;  %v2421_v56 = vpop.eup %2420 }
 0x8c0   :  { %2424 = vtanh.f32 %v2185_v44  ;;  %v2203_v52 = vadd.f32 1.0, %v2421_v56 }
 0x8c1   :  { %2426 = vrcp.f32 %v2196_v54 }
 0x8c2   :  { %2428 = vrcp.f32 %v2203_v52 }
 0x8cc   :  { %v2423_v25 = vpop.eup %2422 }
 0x8cd   :  { %v2425_v2 = vpop.eup %2424 }
 0x8ce   :  { %v2427_v3 = vpop.eup %2426  ;;  %v2208_v48 = vmul.f32 %v2425_v2, %v2423_v25 }
 0x8cf   :  { %v2207_v61 = vmul.f32 %v2427_v3, %v1964_v60  ;;  %v2429_v63 = vpop.eup %2428 }
 0x8d1   :  { %v2209_v62 = vadd.f32 %v2208_v48, %v2207_v61 }
 0x8d3   :  { %2430 = vtanh.f32 %v2209_v62 }
 0x8e0   :  { %v2431_v0 = vpop.eup %2430 }
 0x8e1   :  { %v2211_v9 = vmul.f32 %v2431_v0, %v2429_v63 }
 0x8e3   :  { %2286 = vst [vmem:[%s4037_s2 + $0x40] sm:$0xff] %v2211_v9 }

</bundles_post_ra>
